<compile_context>
chip_gen: v7x
topology: tpu7x:2x2x1
jax: 0.10.0
libtpu: 0.0.40
codegen_flags: <defaults>
</compile_context>

<pallas_src>
import functools

import numpy as np
import jax
import jax.numpy as jnp
from jax.experimental import pallas as pl
from jax.experimental.pallas import tpu as pltpu

LN_EPS = 1e-5
BN_EPS = 1e-5
VMEM_LIMIT = 32 * 1024 * 1024  # safe on v5e/v6e/v7x; demo usage is far below


# --------------------------- in-kernel helpers ------------------------------

def _shift_zero(x, d, axis):
    # result[i] = x[i + d] along `axis`, zero-filled where out of range (|d|<=1)
    if d == 0:
        return x
    zshape = list(x.shape)
    zshape[axis] = 1
    z = jnp.zeros(zshape, x.dtype)
    n = x.shape[axis]
    if d == 1:
        body = jax.lax.slice_in_dim(x, 1, n, axis=axis)
        return jnp.concatenate([body, z], axis=axis)
    body = jax.lax.slice_in_dim(x, 0, n - 1, axis=axis)
    return jnp.concatenate([z, body], axis=axis)


def _shift_clamp(x, d, axis):
    # result[i] = x[clip(i + d, 0, n-1)] along `axis` (|d| == 1)
    n = x.shape[axis]
    if d == -1:
        edge = jax.lax.slice_in_dim(x, 0, 1, axis=axis)
        body = jax.lax.slice_in_dim(x, 0, n - 1, axis=axis)
        return jnp.concatenate([edge, body], axis=axis)
    body = jax.lax.slice_in_dim(x, 1, n, axis=axis)
    edge = jax.lax.slice_in_dim(x, n - 1, n, axis=axis)
    return jnp.concatenate([body, edge], axis=axis)


def _bilerp_phases(scale):
    # PyTorch bilinear, align_corners=False: output index i = k*scale + p reads
    # w0 * x[k + d] + w1 * x[k + d + 1]  (indices clamped to [0, n-1]).
    phases = []
    for p in range(scale):
        delta = (p + 0.5) / scale - 0.5
        if delta < 0.0:
            phases.append((-1, -delta, 1.0 + delta))
        else:
            phases.append((0, 1.0 - delta, delta))
    return phases


def _lerp(a, b, w0, w1):
    # fold away trivial weights (exact 0/1 only occur for odd scales)
    if w1 == 0.0:
        return a if w0 == 1.0 else w0 * a
    if w0 == 0.0:
        return b if w1 == 1.0 else w1 * b
    return w0 * a + w1 * b


def _upsample_axis(x, scale, axis):
    # x: (..., n, ...) f32 -> list over phase p of same-shape tensors holding
    # the bilinearly interpolated samples for output positions k*scale + p.
    phases = _bilerp_phases(scale)
    need_m = any(d == -1 and w0 != 0.0 for d, w0, _ in phases)
    need_p = any(d == 0 and w1 != 0.0 for d, _, w1 in phases)
    xm = _shift_clamp(x, -1, axis) if need_m else None
    xp = _shift_clamp(x, +1, axis) if need_p else None
    outs = []
    for d, w0, w1 in phases:
        outs.append(_lerp(xm, x, w0, w1) if d == -1 else _lerp(x, xp, w0, w1))
    return outs


def _conv_bn_relu_body(x_ref, w_ref, g_ref, b_ref, s_ref, t_ref, *,
                       apply_ln, ksize):
    # Shared in-kernel body: [LayerNorm] -> kxk conv (zero pad k//2, no bias)
    # -> BN(eval) scale/shift -> ReLU.  Returns f32 (H, W, Cout).
    _, H, W, C = x_ref.shape
    Cout = s_ref.shape[-1]
    x = x_ref[0].astype(jnp.float32)                       # (H, W, C)
    if apply_ln:
        mu = jnp.mean(x, axis=-1, keepdims=True)
        var = jnp.mean(jnp.square(x - mu), axis=-1, keepdims=True)
        x = (x - mu) * jax.lax.rsqrt(var + LN_EPS)
        x = x * g_ref[...].reshape(1, 1, C) + b_ref[...].reshape(1, 1, C)
    xc = x.astype(w_ref.dtype)                             # bf16 for the MXU
    off = ksize // 2
    acc = jnp.zeros((H * W, Cout), jnp.float32)
    tap = 0
    for dh in range(ksize):
        xr = _shift_zero(xc, dh - off, 0)
        for dw in range(ksize):
            xs = _shift_zero(xr, dw - off, 1)
            acc = acc + jnp.dot(xs.reshape(H * W, C), w_ref[tap],
                                preferred_element_type=jnp.float32)
            tap += 1
    y = jnp.maximum(acc * s_ref[...] + t_ref[...], 0.0)
    return y.reshape(H, W, Cout)


# ----------------------------- Pallas kernels -------------------------------

def _stage_kernel(x_ref, w_ref, g_ref, b_ref, s_ref, t_ref, o_ref, *,
                  apply_ln, ksize, scale):
    # One image per grid step: conv/BN/ReLU then bilinear upsample, all fused.
    # Output block (1, H, scale, W, scale*C) reshapes to (Ho, Wo, C) for free.
    y = _conv_bn_relu_body(x_ref, w_ref, g_ref, b_ref, s_ref, t_ref,
                           apply_ln=apply_ln, ksize=ksize)
    planes = []
    for hr in _upsample_axis(y, scale, 0):                 # height phases
        cols = _upsample_axis(hr, scale, 1)                # width phases
        planes.append(jnp.concatenate(cols, axis=-1))      # (H, W, scale*C)
    o_ref[0] = jnp.stack(planes, axis=1).astype(o_ref.dtype)


def _stage_cls_kernel(x_ref, w_ref, g_ref, b_ref, s_ref, t_ref, cw_ref, cb_ref,
                      o_ref, *, apply_ln, ksize, scale):
    # Final stage: conv/BN/ReLU -> bilinear upsample -> 1x1 cls_seg (+bias),
    # writing class logits directly (largest activation hits HBM exactly once).
    y = _conv_bn_relu_body(x_ref, w_ref, g_ref, b_ref, s_ref, t_ref,
                           apply_ln=apply_ln, ksize=ksize)
    H, W, Cout = y.shape
    nc = cw_ref.shape[-1]
    cw = cw_ref[...]
    cb = cb_ref[...]
    planes = []
    for hr in _upsample_axis(y, scale, 0):
        outs = []
        for col in _upsample_axis(hr, scale, 1):
            logits = jnp.dot(col.astype(cw.dtype).reshape(H * W, Cout), cw,
                             preferred_element_type=jnp.float32) + cb
            outs.append(logits.reshape(H, W, nc))
        planes.append(jnp.concatenate(outs, axis=-1))      # (H, W, scale*nc)
    o_ref[0] = jnp.stack(planes, axis=1).astype(o_ref.dtype)


# ----------------------------- Pallas wrappers ------------------------------

def conv_stage(x_nhwc, w_taps, bn_scale, bn_shift, ln_gamma=None, ln_beta=None,
               *, ksize, scale, out_dtype=jnp.bfloat16):
    N, H, W, C = x_nhwc.shape
    T, Cin, Cout = w_taps.shape
    assert ksize in (1, 3) and T == ksize * ksize and Cin == C
    apply_ln = ln_gamma is not None
    if ln_gamma is None:
        ln_gamma = jnp.ones((C,), jnp.float32)
        ln_beta = jnp.zeros((C,), jnp.float32)
    kern = functools.partial(_stage_kernel, apply_ln=apply_ln, ksize=ksize,
                             scale=scale)
    out5 = pl.pallas_call(
        kern,
        out_shape=jax.ShapeDtypeStruct((N, H, scale, W, scale * Cout),
                                       out_dtype),
        grid=(N,),
        in_specs=[
            pl.BlockSpec((1, H, W, C), lambda n: (n, 0, 0, 0)),
            pl.BlockSpec((T, C, Cout), lambda n: (0, 0, 0)),
            pl.BlockSpec((1, C), lambda n: (0, 0)),
            pl.BlockSpec((1, C), lambda n: (0, 0)),
            pl.BlockSpec((1, Cout), lambda n: (0, 0)),
            pl.BlockSpec((1, Cout), lambda n: (0, 0)),
        ],
        out_specs=pl.BlockSpec((1, H, scale, W, scale * Cout),
                               lambda n: (n, 0, 0, 0, 0)),
        compiler_params=pltpu.CompilerParams(
            dimension_semantics=("parallel",),
            vmem_limit_bytes=VMEM_LIMIT),
    )(x_nhwc, w_taps.astype(jnp.bfloat16),
      ln_gamma.reshape(1, C).astype(jnp.float32),
      ln_beta.reshape(1, C).astype(jnp.float32),
      bn_scale.reshape(1, Cout).astype(jnp.float32),
      bn_shift.reshape(1, Cout).astype(jnp.float32))
    # row-major-preserving reshape (free): (N,H,s,W,s*C) -> (N, H*s, W*s, C)
    return out5.reshape(N, H * scale, W * scale, Cout)


def conv_stage_cls(x_nhwc, w_taps, bn_scale, bn_shift, ln_gamma, ln_beta,
                   cls_w, cls_b, *, ksize, scale):
    N, H, W, C = x_nhwc.shape
    T, Cin, Cout = w_taps.shape
    nc = cls_w.shape[-1]
    assert ksize in (1, 3) and T == ksize * ksize and Cin == C
    apply_ln = ln_gamma is not None
    if ln_gamma is None:
        ln_gamma = jnp.ones((C,), jnp.float32)
        ln_beta = jnp.zeros((C,), jnp.float32)
    kern = functools.partial(_stage_cls_kernel, apply_ln=apply_ln, ksize=ksize,
                             scale=scale)
    out5 = pl.pallas_call(
        kern,
        out_shape=jax.ShapeDtypeStruct((N, H, scale, W, scale * nc),
                                       jnp.float32),
        grid=(N,),
        in_specs=[
            pl.BlockSpec((1, H, W, C), lambda n: (n, 0, 0, 0)),
            pl.BlockSpec((T, C, Cout), lambda n: (0, 0, 0)),
            pl.BlockSpec((1, C), lambda n: (0, 0)),
            pl.BlockSpec((1, C), lambda n: (0, 0)),
            pl.BlockSpec((1, Cout), lambda n: (0, 0)),
            pl.BlockSpec((1, Cout), lambda n: (0, 0)),
            pl.BlockSpec((Cout, nc), lambda n: (0, 0)),
            pl.BlockSpec((1, nc), lambda n: (0, 0)),
        ],
        out_specs=pl.BlockSpec((1, H, scale, W, scale * nc),
                               lambda n: (n, 0, 0, 0, 0)),
        compiler_params=pltpu.CompilerParams(
            dimension_semantics=("parallel",),
            vmem_limit_bytes=VMEM_LIMIT),
    )(x_nhwc, w_taps.astype(jnp.bfloat16),
      ln_gamma.reshape(1, C).astype(jnp.float32),
      ln_beta.reshape(1, C).astype(jnp.float32),
      bn_scale.reshape(1, Cout).astype(jnp.float32),
      bn_shift.reshape(1, Cout).astype(jnp.float32),
      cls_w.astype(jnp.bfloat16),
      cls_b.reshape(1, nc).astype(jnp.float32))
    return out5.reshape(N, H * scale, W * scale, nc)


# ------------------------------ parameters ----------------------------------

def init_params(key, in_channels, channels, num_classes, num_convs, kernel_size):
    params = {}
    keys = jax.random.split(key, 2 * num_convs + 4)
    # norm_layer = LayerNorm(in_channels) over channel dim of (n, h*w, c)
    params["ln_gamma"] = 1.0 + 0.1 * jax.random.normal(keys[0], (in_channels,), jnp.float32)
    params["ln_beta"] = 0.1 * jax.random.normal(keys[1], (in_channels,), jnp.float32)
    cin = in_channels
    for i in range(num_convs):
        wkey, bkey = keys[2 + 2 * i], keys[3 + 2 * i]
        # PyTorch Conv2d weight (Cout, Cin, kh, kw) -> tap-major (kh*kw, Cin, Cout)
        w = 0.05 * jax.random.normal(wkey, (channels, cin, kernel_size, kernel_size), jnp.float32)
        params[f"conv{i}_w"] = jnp.transpose(w, (2, 3, 1, 0)).reshape(
            kernel_size * kernel_size, cin, channels)
        # conv_norm = BatchNorm2d(channels), eval mode folded to scale/shift
        bn_gamma = 1.0 + 0.1 * jax.random.normal(bkey, (channels,), jnp.float32)
        bn_beta = jnp.linspace(-0.05, 0.05, channels, dtype=jnp.float32)
        running_mean = jnp.linspace(-0.1, 0.1, channels, dtype=jnp.float32)
        running_var = jnp.linspace(0.9, 1.1, channels, dtype=jnp.float32)
        scale = bn_gamma * jax.lax.rsqrt(running_var + BN_EPS)
        params[f"bn{i}_scale"] = scale
        params[f"bn{i}_shift"] = bn_beta - running_mean * scale
        cin = channels
    # cls_seg = Conv2d(channels, num_classes, 1) with bias
    wc = 0.05 * jax.random.normal(keys[-2], (num_classes, channels, 1, 1), jnp.float32)
    params["cls_w"] = jnp.transpose(wc, (2, 3, 1, 0)).reshape(channels, num_classes)
    params["cls_b"] = 0.01 * jax.random.normal(keys[-1], (num_classes,), jnp.float32)
    return params


# -------------------------------- forward -----------------------------------

def setr_up_head_forward(x_nchw, params, *, channels, num_classes, num_convs,
                         up_scale, kernel_size):
    assert num_convs >= 1, "cls_seg expects `channels` input channels"
    x = jnp.transpose(x_nchw, (0, 2, 3, 1))                # NHWC
    for i in range(num_convs):
        ln_g = params["ln_gamma"] if i == 0 else None
        ln_b = params["ln_beta"] if i == 0 else None
        if i + 1 < num_convs:
            x = conv_stage(x, params[f"conv{i}_w"], params[f"bn{i}_scale"],
                           params[f"bn{i}_shift"], ln_g, ln_b,
                           ksize=kernel_size, scale=up_scale)
        else:
            # dropout=0.0 -> self.dropout is None -> identity; cls_seg fused here
            x = conv_stage_cls(x, params[f"conv{i}_w"], params[f"bn{i}_scale"],
                               params[f"bn{i}_shift"], ln_g, ln_b,
                               params["cls_w"], params["cls_b"],
                               ksize=kernel_size, scale=up_scale)
    return jnp.transpose(x, (0, 3, 1, 2))                  # back to NCHW


# -------------------------- pure-JAX reference ------------------------------

def _interp_matrix(in_size, out_size):
    # Exact PyTorch bilinear, align_corners=False (half-pixel centers, clamped).
    i = np.arange(out_size, dtype=np.float64)
    src = np.clip((i + 0.5) * (in_size / out_size) - 0.5, 0.0, in_size - 1)
    lo = np.floor(src).astype(np.int64)
    hi = np.minimum(lo + 1, in_size - 1)
    frac = src - lo
    m = np.zeros((out_size, in_size), dtype=np.float32)
    m[np.arange(out_size), lo] += (1.0 - frac).astype(np.float32)
    m[np.arange(out_size), hi] += frac.astype(np.float32)
    return m


def reference_forward(x_nchw, params, *, channels, num_classes, num_convs,
                      up_scale, kernel_size):
    x = jnp.transpose(x_nchw, (0, 2, 3, 1)).astype(jnp.float32)
    mu = jnp.mean(x, axis=-1, keepdims=True)
    var = jnp.mean(jnp.square(x - mu), axis=-1, keepdims=True)
    x = (x - mu) * jax.lax.rsqrt(var + LN_EPS) * params["ln_gamma"] + params["ln_beta"]
    for i in range(num_convs):
        cin = x.shape[-1]
        w = params[f"conv{i}_w"].reshape(kernel_size, kernel_size, cin, channels)
        y = jax.lax.conv_general_dilated(
            x, w, (1, 1), "SAME", dimension_numbers=("NHWC", "HWIO", "NHWC"))
        x = jnp.maximum(y * params[f"bn{i}_scale"] + params[f"bn{i}_shift"], 0.0)
        _, H, W, _ = x.shape
        mh = jnp.asarray(_interp_matrix(H, H * up_scale))
        mw = jnp.asarray(_interp_matrix(W, W * up_scale))
        x = jnp.einsum("oh,nhwc->nowc", mh, x)
        x = jnp.einsum("pw,nowc->nopc", mw, x)
    out = jnp.einsum("nhwc,cf->nhwf", x, params["cls_w"]) + params["cls_b"]
    return jnp.transpose(out, (0, 3, 1, 2))


if __name__ == "__main__":
    # module config (kernel_size in {1,3}; interpolate_mode='bilinear',
    # align_corners=False, conv_norm=BatchNorm2d(eval), conv_act=ReLU,
    # norm_layer=LayerNorm(in_channels), dropout=0.0)
    in_channels, channels, num_classes = 32, 16, 4
    num_convs, up_scale, kernel_size = 2, 2, 3
    N, H, W = 2, 8, 8

    key = jax.random.PRNGKey(0)
    kx, kp = jax.random.split(key)
    x = jax.random.normal(kx, (N, in_channels, H, W), jnp.float32)
    params = init_params(kp, in_channels, channels, num_classes, num_convs, kernel_size)

    fwd = jax.jit(functools.partial(
        setr_up_head_forward, channels=channels, num_classes=num_classes,
        num_convs=num_convs, up_scale=up_scale, kernel_size=kernel_size))
    out = fwd(x, params)
    jax.block_until_ready(out)

    expect = (N, num_classes, H * up_scale ** num_convs, W * up_scale ** num_convs)
    assert out.shape == expect, (out.shape, expect)
    assert bool(jnp.all(jnp.isfinite(out)))

    ref = reference_forward(x, params, channels=channels, num_classes=num_classes,
                            num_convs=num_convs, up_scale=up_scale,
                            kernel_size=kernel_size)
    max_err = float(jnp.max(jnp.abs(out - ref)))
    assert bool(jnp.allclose(out, ref, rtol=5e-2, atol=2e-2)), max_err
    print("KERNEL_OK")
</pallas_src>

<mosaic_0001>
module attributes {stable_mosaic.version = 11 : i64} {
  func.func @_stage_kernel(%arg0: i32, %arg1: memref<1x8x8x32xf32, #tpu.memory_space<vmem>>, %arg2: memref<9x32x16xbf16, #tpu.memory_space<vmem>>, %arg3: memref<1x32xf32, #tpu.memory_space<vmem>>, %arg4: memref<1x32xf32, #tpu.memory_space<vmem>>, %arg5: memref<1x16xf32, #tpu.memory_space<vmem>>, %arg6: memref<1x16xf32, #tpu.memory_space<vmem>>, %arg7: memref<1x8x2x8x32xbf16, #tpu.memory_space<vmem>>) attributes {dimension_semantics = [#tpu.dimension_semantics<parallel>], iteration_bounds = array<i64: 2>, scalar_prefetch = 0 : i64, scratch_operands = 0 : i64, tpu.core_type = #tpu.core_type<tc>, window_params = [{transform_indices = @transform_0, window_bounds = array<i64: 1, 8, 8, 32>}, {pipeline_mode = #tpu.pipeline_mode<synchronous>, transform_indices = @transform_1, window_bounds = array<i64: 9, 32, 16>}, {pipeline_mode = #tpu.pipeline_mode<synchronous>, transform_indices = @transform_2, window_bounds = array<i64: 1, 32>}, {pipeline_mode = #tpu.pipeline_mode<synchronous>, transform_indices = @transform_3, window_bounds = array<i64: 1, 32>}, {pipeline_mode = #tpu.pipeline_mode<synchronous>, transform_indices = @transform_4, window_bounds = array<i64: 1, 16>}, {pipeline_mode = #tpu.pipeline_mode<synchronous>, transform_indices = @transform_5, window_bounds = array<i64: 1, 16>}, {transform_indices = @transform_6, window_bounds = array<i64: 1, 8, 2, 8, 32>}]} {
    %c0 = arith.constant 0 : index
    %c0_0 = arith.constant 0 : index
    %c0_1 = arith.constant 0 : index
    %c0_2 = arith.constant 0 : index
    %0 = vector.load %arg1[%c0, %c0_0, %c0_1, %c0_2] : memref<1x8x8x32xf32, #tpu.memory_space<vmem>>, vector<1x8x8x32xf32>
    %1 = vector.shape_cast %0 : vector<1x8x8x32xf32> to vector<8x8x32xf32>
    %cst = arith.constant dense<0.000000e+00> : vector<8x8xf32>
    %2 = vector.multi_reduction <add>, %1, %cst [2] : vector<8x8x32xf32> to vector<8x8xf32>
    %3 = vector.shape_cast %2 : vector<8x8xf32> to vector<8x8x1xf32>
    %cst_3 = arith.constant 3.200000e+01 : f32
    %4 = vector.broadcast %cst_3 : f32 to vector<8x8x1xf32>
    %5 = arith.divf %3, %4 : vector<8x8x1xf32>
    %6 = vector.broadcast %5 : vector<8x8x1xf32> to vector<8x8x32xf32>
    %7 = arith.subf %1, %6 : vector<8x8x32xf32>
    %8 = arith.mulf %7, %7 : vector<8x8x32xf32>
    %cst_4 = arith.constant dense<0.000000e+00> : vector<8x8xf32>
    %9 = vector.multi_reduction <add>, %8, %cst_4 [2] : vector<8x8x32xf32> to vector<8x8xf32>
    %10 = vector.shape_cast %9 : vector<8x8xf32> to vector<8x8x1xf32>
    %cst_5 = arith.constant 3.200000e+01 : f32
    %11 = vector.broadcast %cst_5 : f32 to vector<8x8x1xf32>
    %12 = arith.divf %10, %11 : vector<8x8x1xf32>
    %13 = vector.broadcast %5 : vector<8x8x1xf32> to vector<8x8x32xf32>
    %14 = arith.subf %1, %13 : vector<8x8x32xf32>
    %cst_6 = arith.constant 9.99999974E-6 : f32
    %15 = vector.broadcast %cst_6 : f32 to vector<8x8x1xf32>
    %16 = arith.addf %12, %15 : vector<8x8x1xf32>
    %17 = math.rsqrt %16 : vector<8x8x1xf32>
    %18 = vector.broadcast %17 : vector<8x8x1xf32> to vector<8x8x32xf32>
    %19 = arith.mulf %14, %18 : vector<8x8x32xf32>
    %c0_7 = arith.constant 0 : index
    %c0_8 = arith.constant 0 : index
    %20 = vector.load %arg3[%c0_7, %c0_8] : memref<1x32xf32, #tpu.memory_space<vmem>>, vector<1x32xf32>
    %21 = vector.shape_cast %20 : vector<1x32xf32> to vector<1x1x32xf32>
    %22 = vector.broadcast %21 : vector<1x1x32xf32> to vector<8x8x32xf32>
    %23 = arith.mulf %19, %22 : vector<8x8x32xf32>
    %c0_9 = arith.constant 0 : index
    %c0_10 = arith.constant 0 : index
    %24 = vector.load %arg4[%c0_9, %c0_10] : memref<1x32xf32, #tpu.memory_space<vmem>>, vector<1x32xf32>
    %25 = vector.shape_cast %24 : vector<1x32xf32> to vector<1x1x32xf32>
    %26 = vector.broadcast %25 : vector<1x1x32xf32> to vector<8x8x32xf32>
    %27 = arith.addf %23, %26 : vector<8x8x32xf32>
    %28 = arith.truncf %27 : vector<8x8x32xf32> to vector<8x8x32xbf16>
    %cst_11 = arith.constant 0.000000e+00 : f32
    %29 = vector.broadcast %cst_11 : f32 to vector<64x16xf32>
    %cst_12 = arith.constant 0.000000e+00 : bf16
    %30 = vector.broadcast %cst_12 : bf16 to vector<1x8x32xbf16>
    %31 = vector.extract_strided_slice %28 {offsets = [0, 0, 0], sizes = [7, 8, 32], strides = [1, 1, 1]} : vector<8x8x32xbf16> to vector<7x8x32xbf16>
    %32 = tpu.concatenate %30, %31 in 0 : vector<1x8x32xbf16>, vector<7x8x32xbf16> -> vector<8x8x32xbf16>
    %cst_13 = arith.constant 0.000000e+00 : bf16
    %33 = vector.broadcast %cst_13 : bf16 to vector<8x1x32xbf16>
    %34 = vector.extract_strided_slice %32 {offsets = [0, 0, 0], sizes = [8, 7, 32], strides = [1, 1, 1]} : vector<8x8x32xbf16> to vector<8x7x32xbf16>
    %35 = tpu.concatenate %33, %34 in 1 : vector<8x1x32xbf16>, vector<8x7x32xbf16> -> vector<8x8x32xbf16>
    %36 = vector.shape_cast %35 : vector<8x8x32xbf16> to vector<64x32xbf16>
    %c0_14 = arith.constant 0 : index
    %c0_15 = arith.constant 0 : index
    %c0_16 = arith.constant 0 : index
    %37 = vector.load %arg2[%c0_14, %c0_15, %c0_16] : memref<9x32x16xbf16, #tpu.memory_space<vmem>>, vector<1x32x16xbf16>
    %38 = vector.shape_cast %37 : vector<1x32x16xbf16> to vector<32x16xbf16>
    %cst_17 = arith.constant dense<0.000000e+00> : vector<64x16xf32>
    %39 = tpu.matmul %36, %38, %cst_17 {dimension_numbers = #tpu.dot_dimension_numbers<[1], [0], [0], [1], [0, 0, 1, 1], [], []>} : vector<64x32xbf16>, vector<32x16xbf16>, vector<64x16xf32> -> vector<64x16xf32>
    %40 = arith.addf %29, %39 : vector<64x16xf32>
    %41 = vector.shape_cast %32 : vector<8x8x32xbf16> to vector<64x32xbf16>
    %c1 = arith.constant 1 : index
    %c0_18 = arith.constant 0 : index
    %c0_19 = arith.constant 0 : index
    %42 = vector.load %arg2[%c1, %c0_18, %c0_19] : memref<9x32x16xbf16, #tpu.memory_space<vmem>>, vector<1x32x16xbf16>
    %43 = vector.shape_cast %42 : vector<1x32x16xbf16> to vector<32x16xbf16>
    %cst_20 = arith.constant dense<0.000000e+00> : vector<64x16xf32>
    %44 = tpu.matmul %41, %43, %cst_20 {dimension_numbers = #tpu.dot_dimension_numbers<[1], [0], [0], [1], [0, 0, 1, 1], [], []>} : vector<64x32xbf16>, vector<32x16xbf16>, vector<64x16xf32> -> vector<64x16xf32>
    %45 = arith.addf %40, %44 : vector<64x16xf32>
    %cst_21 = arith.constant 0.000000e+00 : bf16
    %46 = vector.broadcast %cst_21 : bf16 to vector<8x1x32xbf16>
    %47 = vector.extract_strided_slice %32 {offsets = [0, 1, 0], sizes = [8, 7, 32], strides = [1, 1, 1]} : vector<8x8x32xbf16> to vector<8x7x32xbf16>
    %48 = tpu.concatenate %47, %46 in 1 : vector<8x7x32xbf16>, vector<8x1x32xbf16> -> vector<8x8x32xbf16>
    %49 = vector.shape_cast %48 : vector<8x8x32xbf16> to vector<64x32xbf16>
    %c2 = arith.constant 2 : index
    %c0_22 = arith.constant 0 : index
    %c0_23 = arith.constant 0 : index
    %50 = vector.load %arg2[%c2, %c0_22, %c0_23] : memref<9x32x16xbf16, #tpu.memory_space<vmem>>, vector<1x32x16xbf16>
    %51 = vector.shape_cast %50 : vector<1x32x16xbf16> to vector<32x16xbf16>
    %cst_24 = arith.constant dense<0.000000e+00> : vector<64x16xf32>
    %52 = tpu.matmul %49, %51, %cst_24 {dimension_numbers = #tpu.dot_dimension_numbers<[1], [0], [0], [1], [0, 0, 1, 1], [], []>} : vector<64x32xbf16>, vector<32x16xbf16>, vector<64x16xf32> -> vector<64x16xf32>
    %53 = arith.addf %45, %52 : vector<64x16xf32>
    %cst_25 = arith.constant 0.000000e+00 : bf16
    %54 = vector.broadcast %cst_25 : bf16 to vector<8x1x32xbf16>
    %55 = vector.extract_strided_slice %28 {offsets = [0, 0, 0], sizes = [8, 7, 32], strides = [1, 1, 1]} : vector<8x8x32xbf16> to vector<8x7x32xbf16>
    %56 = tpu.concatenate %54, %55 in 1 : vector<8x1x32xbf16>, vector<8x7x32xbf16> -> vector<8x8x32xbf16>
    %57 = vector.shape_cast %56 : vector<8x8x32xbf16> to vector<64x32xbf16>
    %c3 = arith.constant 3 : index
    %c0_26 = arith.constant 0 : index
    %c0_27 = arith.constant 0 : index
    %58 = vector.load %arg2[%c3, %c0_26, %c0_27] : memref<9x32x16xbf16, #tpu.memory_space<vmem>>, vector<1x32x16xbf16>
    %59 = vector.shape_cast %58 : vector<1x32x16xbf16> to vector<32x16xbf16>
    %cst_28 = arith.constant dense<0.000000e+00> : vector<64x16xf32>
    %60 = tpu.matmul %57, %59, %cst_28 {dimension_numbers = #tpu.dot_dimension_numbers<[1], [0], [0], [1], [0, 0, 1, 1], [], []>} : vector<64x32xbf16>, vector<32x16xbf16>, vector<64x16xf32> -> vector<64x16xf32>
    %61 = arith.addf %53, %60 : vector<64x16xf32>
    %62 = vector.shape_cast %28 : vector<8x8x32xbf16> to vector<64x32xbf16>
    %c4 = arith.constant 4 : index
    %c0_29 = arith.constant 0 : index
    %c0_30 = arith.constant 0 : index
    %63 = vector.load %arg2[%c4, %c0_29, %c0_30] : memref<9x32x16xbf16, #tpu.memory_space<vmem>>, vector<1x32x16xbf16>
    %64 = vector.shape_cast %63 : vector<1x32x16xbf16> to vector<32x16xbf16>
    %cst_31 = arith.constant dense<0.000000e+00> : vector<64x16xf32>
    %65 = tpu.matmul %62, %64, %cst_31 {dimension_numbers = #tpu.dot_dimension_numbers<[1], [0], [0], [1], [0, 0, 1, 1], [], []>} : vector<64x32xbf16>, vector<32x16xbf16>, vector<64x16xf32> -> vector<64x16xf32>
    %66 = arith.addf %61, %65 : vector<64x16xf32>
    %cst_32 = arith.constant 0.000000e+00 : bf16
    %67 = vector.broadcast %cst_32 : bf16 to vector<8x1x32xbf16>
    %68 = vector.extract_strided_slice %28 {offsets = [0, 1, 0], sizes = [8, 7, 32], strides = [1, 1, 1]} : vector<8x8x32xbf16> to vector<8x7x32xbf16>
    %69 = tpu.concatenate %68, %67 in 1 : vector<8x7x32xbf16>, vector<8x1x32xbf16> -> vector<8x8x32xbf16>
    %70 = vector.shape_cast %69 : vector<8x8x32xbf16> to vector<64x32xbf16>
    %c5 = arith.constant 5 : index
    %c0_33 = arith.constant 0 : index
    %c0_34 = arith.constant 0 : index
    %71 = vector.load %arg2[%c5, %c0_33, %c0_34] : memref<9x32x16xbf16, #tpu.memory_space<vmem>>, vector<1x32x16xbf16>
    %72 = vector.shape_cast %71 : vector<1x32x16xbf16> to vector<32x16xbf16>
    %cst_35 = arith.constant dense<0.000000e+00> : vector<64x16xf32>
    %73 = tpu.matmul %70, %72, %cst_35 {dimension_numbers = #tpu.dot_dimension_numbers<[1], [0], [0], [1], [0, 0, 1, 1], [], []>} : vector<64x32xbf16>, vector<32x16xbf16>, vector<64x16xf32> -> vector<64x16xf32>
    %74 = arith.addf %66, %73 : vector<64x16xf32>
    %cst_36 = arith.constant 0.000000e+00 : bf16
    %75 = vector.broadcast %cst_36 : bf16 to vector<1x8x32xbf16>
    %76 = vector.extract_strided_slice %28 {offsets = [1, 0, 0], sizes = [7, 8, 32], strides = [1, 1, 1]} : vector<8x8x32xbf16> to vector<7x8x32xbf16>
    %77 = tpu.concatenate %76, %75 in 0 : vector<7x8x32xbf16>, vector<1x8x32xbf16> -> vector<8x8x32xbf16>
    %cst_37 = arith.constant 0.000000e+00 : bf16
    %78 = vector.broadcast %cst_37 : bf16 to vector<8x1x32xbf16>
    %79 = vector.extract_strided_slice %77 {offsets = [0, 0, 0], sizes = [8, 7, 32], strides = [1, 1, 1]} : vector<8x8x32xbf16> to vector<8x7x32xbf16>
    %80 = tpu.concatenate %78, %79 in 1 : vector<8x1x32xbf16>, vector<8x7x32xbf16> -> vector<8x8x32xbf16>
    %81 = vector.shape_cast %80 : vector<8x8x32xbf16> to vector<64x32xbf16>
    %c6 = arith.constant 6 : index
    %c0_38 = arith.constant 0 : index
    %c0_39 = arith.constant 0 : index
    %82 = vector.load %arg2[%c6, %c0_38, %c0_39] : memref<9x32x16xbf16, #tpu.memory_space<vmem>>, vector<1x32x16xbf16>
    %83 = vector.shape_cast %82 : vector<1x32x16xbf16> to vector<32x16xbf16>
    %cst_40 = arith.constant dense<0.000000e+00> : vector<64x16xf32>
    %84 = tpu.matmul %81, %83, %cst_40 {dimension_numbers = #tpu.dot_dimension_numbers<[1], [0], [0], [1], [0, 0, 1, 1], [], []>} : vector<64x32xbf16>, vector<32x16xbf16>, vector<64x16xf32> -> vector<64x16xf32>
    %85 = arith.addf %74, %84 : vector<64x16xf32>
    %86 = vector.shape_cast %77 : vector<8x8x32xbf16> to vector<64x32xbf16>
    %c7 = arith.constant 7 : index
    %c0_41 = arith.constant 0 : index
    %c0_42 = arith.constant 0 : index
    %87 = vector.load %arg2[%c7, %c0_41, %c0_42] : memref<9x32x16xbf16, #tpu.memory_space<vmem>>, vector<1x32x16xbf16>
    %88 = vector.shape_cast %87 : vector<1x32x16xbf16> to vector<32x16xbf16>
    %cst_43 = arith.constant dense<0.000000e+00> : vector<64x16xf32>
    %89 = tpu.matmul %86, %88, %cst_43 {dimension_numbers = #tpu.dot_dimension_numbers<[1], [0], [0], [1], [0, 0, 1, 1], [], []>} : vector<64x32xbf16>, vector<32x16xbf16>, vector<64x16xf32> -> vector<64x16xf32>
    %90 = arith.addf %85, %89 : vector<64x16xf32>
    %cst_44 = arith.constant 0.000000e+00 : bf16
    %91 = vector.broadcast %cst_44 : bf16 to vector<8x1x32xbf16>
    %92 = vector.extract_strided_slice %77 {offsets = [0, 1, 0], sizes = [8, 7, 32], strides = [1, 1, 1]} : vector<8x8x32xbf16> to vector<8x7x32xbf16>
    %93 = tpu.concatenate %92, %91 in 1 : vector<8x7x32xbf16>, vector<8x1x32xbf16> -> vector<8x8x32xbf16>
    %94 = vector.shape_cast %93 : vector<8x8x32xbf16> to vector<64x32xbf16>
    %c8 = arith.constant 8 : index
    %c0_45 = arith.constant 0 : index
    %c0_46 = arith.constant 0 : index
    %95 = vector.load %arg2[%c8, %c0_45, %c0_46] : memref<9x32x16xbf16, #tpu.memory_space<vmem>>, vector<1x32x16xbf16>
    %96 = vector.shape_cast %95 : vector<1x32x16xbf16> to vector<32x16xbf16>
    %cst_47 = arith.constant dense<0.000000e+00> : vector<64x16xf32>
    %97 = tpu.matmul %94, %96, %cst_47 {dimension_numbers = #tpu.dot_dimension_numbers<[1], [0], [0], [1], [0, 0, 1, 1], [], []>} : vector<64x32xbf16>, vector<32x16xbf16>, vector<64x16xf32> -> vector<64x16xf32>
    %98 = arith.addf %90, %97 : vector<64x16xf32>
    %c0_48 = arith.constant 0 : index
    %c0_49 = arith.constant 0 : index
    %99 = vector.load %arg5[%c0_48, %c0_49] : memref<1x16xf32, #tpu.memory_space<vmem>>, vector<1x16xf32>
    %100 = vector.broadcast %99 : vector<1x16xf32> to vector<64x16xf32>
    %101 = arith.mulf %98, %100 : vector<64x16xf32>
    %c0_50 = arith.constant 0 : index
    %c0_51 = arith.constant 0 : index
    %102 = vector.load %arg6[%c0_50, %c0_51] : memref<1x16xf32, #tpu.memory_space<vmem>>, vector<1x16xf32>
    %103 = vector.broadcast %102 : vector<1x16xf32> to vector<64x16xf32>
    %104 = arith.addf %101, %103 : vector<64x16xf32>
    %cst_52 = arith.constant 0.000000e+00 : f32
    %105 = vector.broadcast %cst_52 : f32 to vector<64x16xf32>
    %106 = arith.maximumf %104, %105 : vector<64x16xf32>
    %107 = vector.shape_cast %106 : vector<64x16xf32> to vector<8x8x16xf32>
    %108 = vector.extract_strided_slice %107 {offsets = [0, 0, 0], sizes = [1, 8, 16], strides = [1, 1, 1]} : vector<8x8x16xf32> to vector<1x8x16xf32>
    %109 = vector.extract_strided_slice %107 {offsets = [0, 0, 0], sizes = [7, 8, 16], strides = [1, 1, 1]} : vector<8x8x16xf32> to vector<7x8x16xf32>
    %110 = tpu.concatenate %108, %109 in 0 : vector<1x8x16xf32>, vector<7x8x16xf32> -> vector<8x8x16xf32>
    %111 = vector.extract_strided_slice %107 {offsets = [1, 0, 0], sizes = [7, 8, 16], strides = [1, 1, 1]} : vector<8x8x16xf32> to vector<7x8x16xf32>
    %112 = vector.extract_strided_slice %107 {offsets = [7, 0, 0], sizes = [1, 8, 16], strides = [1, 1, 1]} : vector<8x8x16xf32> to vector<1x8x16xf32>
    %113 = tpu.concatenate %111, %112 in 0 : vector<7x8x16xf32>, vector<1x8x16xf32> -> vector<8x8x16xf32>
    %cst_53 = arith.constant 2.500000e-01 : f32
    %114 = vector.broadcast %cst_53 : f32 to vector<8x8x16xf32>
    %115 = arith.mulf %114, %110 : vector<8x8x16xf32>
    %cst_54 = arith.constant 7.500000e-01 : f32
    %116 = vector.broadcast %cst_54 : f32 to vector<8x8x16xf32>
    %117 = arith.mulf %116, %107 : vector<8x8x16xf32>
    %118 = arith.addf %115, %117 : vector<8x8x16xf32>
    %cst_55 = arith.constant 7.500000e-01 : f32
    %119 = vector.broadcast %cst_55 : f32 to vector<8x8x16xf32>
    %120 = arith.mulf %119, %107 : vector<8x8x16xf32>
    %cst_56 = arith.constant 2.500000e-01 : f32
    %121 = vector.broadcast %cst_56 : f32 to vector<8x8x16xf32>
    %122 = arith.mulf %121, %113 : vector<8x8x16xf32>
    %123 = arith.addf %120, %122 : vector<8x8x16xf32>
    %124 = vector.extract_strided_slice %118 {offsets = [0, 0, 0], sizes = [8, 1, 16], strides = [1, 1, 1]} : vector<8x8x16xf32> to vector<8x1x16xf32>
    %125 = vector.extract_strided_slice %118 {offsets = [0, 0, 0], sizes = [8, 7, 16], strides = [1, 1, 1]} : vector<8x8x16xf32> to vector<8x7x16xf32>
    %126 = tpu.concatenate %124, %125 in 1 : vector<8x1x16xf32>, vector<8x7x16xf32> -> vector<8x8x16xf32>
    %127 = vector.extract_strided_slice %118 {offsets = [0, 1, 0], sizes = [8, 7, 16], strides = [1, 1, 1]} : vector<8x8x16xf32> to vector<8x7x16xf32>
    %128 = vector.extract_strided_slice %118 {offsets = [0, 7, 0], sizes = [8, 1, 16], strides = [1, 1, 1]} : vector<8x8x16xf32> to vector<8x1x16xf32>
    %129 = tpu.concatenate %127, %128 in 1 : vector<8x7x16xf32>, vector<8x1x16xf32> -> vector<8x8x16xf32>
    %cst_57 = arith.constant 2.500000e-01 : f32
    %130 = vector.broadcast %cst_57 : f32 to vector<8x8x16xf32>
    %131 = arith.mulf %130, %126 : vector<8x8x16xf32>
    %cst_58 = arith.constant 7.500000e-01 : f32
    %132 = vector.broadcast %cst_58 : f32 to vector<8x8x16xf32>
    %133 = arith.mulf %132, %118 : vector<8x8x16xf32>
    %134 = arith.addf %131, %133 : vector<8x8x16xf32>
    %cst_59 = arith.constant 7.500000e-01 : f32
    %135 = vector.broadcast %cst_59 : f32 to vector<8x8x16xf32>
    %136 = arith.mulf %135, %118 : vector<8x8x16xf32>
    %cst_60 = arith.constant 2.500000e-01 : f32
    %137 = vector.broadcast %cst_60 : f32 to vector<8x8x16xf32>
    %138 = arith.mulf %137, %129 : vector<8x8x16xf32>
    %139 = arith.addf %136, %138 : vector<8x8x16xf32>
    %140 = tpu.concatenate %134, %139 in 2 : vector<8x8x16xf32>, vector<8x8x16xf32> -> vector<8x8x32xf32>
    %141 = vector.extract_strided_slice %123 {offsets = [0, 0, 0], sizes = [8, 1, 16], strides = [1, 1, 1]} : vector<8x8x16xf32> to vector<8x1x16xf32>
    %142 = vector.extract_strided_slice %123 {offsets = [0, 0, 0], sizes = [8, 7, 16], strides = [1, 1, 1]} : vector<8x8x16xf32> to vector<8x7x16xf32>
    %143 = tpu.concatenate %141, %142 in 1 : vector<8x1x16xf32>, vector<8x7x16xf32> -> vector<8x8x16xf32>
    %144 = vector.extract_strided_slice %123 {offsets = [0, 1, 0], sizes = [8, 7, 16], strides = [1, 1, 1]} : vector<8x8x16xf32> to vector<8x7x16xf32>
    %145 = vector.extract_strided_slice %123 {offsets = [0, 7, 0], sizes = [8, 1, 16], strides = [1, 1, 1]} : vector<8x8x16xf32> to vector<8x1x16xf32>
    %146 = tpu.concatenate %144, %145 in 1 : vector<8x7x16xf32>, vector<8x1x16xf32> -> vector<8x8x16xf32>
    %cst_61 = arith.constant 2.500000e-01 : f32
    %147 = vector.broadcast %cst_61 : f32 to vector<8x8x16xf32>
    %148 = arith.mulf %147, %143 : vector<8x8x16xf32>
    %cst_62 = arith.constant 7.500000e-01 : f32
    %149 = vector.broadcast %cst_62 : f32 to vector<8x8x16xf32>
    %150 = arith.mulf %149, %123 : vector<8x8x16xf32>
    %151 = arith.addf %148, %150 : vector<8x8x16xf32>
    %cst_63 = arith.constant 7.500000e-01 : f32
    %152 = vector.broadcast %cst_63 : f32 to vector<8x8x16xf32>
    %153 = arith.mulf %152, %123 : vector<8x8x16xf32>
    %cst_64 = arith.constant 2.500000e-01 : f32
    %154 = vector.broadcast %cst_64 : f32 to vector<8x8x16xf32>
    %155 = arith.mulf %154, %146 : vector<8x8x16xf32>
    %156 = arith.addf %153, %155 : vector<8x8x16xf32>
    %157 = tpu.concatenate %151, %156 in 2 : vector<8x8x16xf32>, vector<8x8x16xf32> -> vector<8x8x32xf32>
    %158 = vector.shape_cast %140 : vector<8x8x32xf32> to vector<8x1x8x32xf32>
    %159 = vector.shape_cast %157 : vector<8x8x32xf32> to vector<8x1x8x32xf32>
    %160 = tpu.concatenate %158, %159 in 1 : vector<8x1x8x32xf32>, vector<8x1x8x32xf32> -> vector<8x2x8x32xf32>
    %161 = arith.truncf %160 : vector<8x2x8x32xf32> to vector<8x2x8x32xbf16>
    %c0_65 = arith.constant 0 : index
    %c0_66 = arith.constant 0 : index
    %c0_67 = arith.constant 0 : index
    %c0_68 = arith.constant 0 : index
    %c0_69 = arith.constant 0 : index
    %162 = vector.load %arg7[%c0_65, %c0_66, %c0_67, %c0_68, %c0_69] : memref<1x8x2x8x32xbf16, #tpu.memory_space<vmem>>, vector<1x8x2x8x32xbf16>
    %163 = vector.shape_cast %162 : vector<1x8x2x8x32xbf16> to vector<8x2x8x32xbf16>
    %164 = vector.shape_cast %161 : vector<8x2x8x32xbf16> to vector<1x8x2x8x32xbf16>
    tpu.vector_store %arg7[%c0_65, %c0_66, %c0_67, %c0_68, %c0_69], %164 {strides = array<i32>} : memref<1x8x2x8x32xbf16, #tpu.memory_space<vmem>>, vector<1x8x2x8x32xbf16>,
    return
  }
  func.func @transform_0(%arg0: i32) -> (i32, i32, i32, i32) {
    %c0_i32 = arith.constant 0 : i32
    %c0_i32_0 = arith.constant 0 : i32
    %c0_i32_1 = arith.constant 0 : i32
    %c0_i32_2 = arith.constant 0 : i32
    return %arg0, %c0_i32, %c0_i32_0, %c0_i32_1 : i32, i32, i32, i32
  }
  func.func @transform_1(%arg0: i32) -> (i32, i32, i32) {
    %c0_i32 = arith.constant 0 : i32
    %c0_i32_0 = arith.constant 0 : i32
    %c0_i32_1 = arith.constant 0 : i32
    %c0_i32_2 = arith.constant 0 : i32
    return %c0_i32, %c0_i32_0, %c0_i32_1 : i32, i32, i32
  }
  func.func @transform_2(%arg0: i32) -> (i32, i32) {
    %c0_i32 = arith.constant 0 : i32
    %c0_i32_0 = arith.constant 0 : i32
    %c0_i32_1 = arith.constant 0 : i32
    return %c0_i32, %c0_i32_0 : i32, i32
  }
  func.func @transform_3(%arg0: i32) -> (i32, i32) {
    %c0_i32 = arith.constant 0 : i32
    %c0_i32_0 = arith.constant 0 : i32
    %c0_i32_1 = arith.constant 0 : i32
    return %c0_i32, %c0_i32_0 : i32, i32
  }
  func.func @transform_4(%arg0: i32) -> (i32, i32) {
    %c0_i32 = arith.constant 0 : i32
    %c0_i32_0 = arith.constant 0 : i32
    %c0_i32_1 = arith.constant 0 : i32
    return %c0_i32, %c0_i32_0 : i32, i32
  }
  func.func @transform_5(%arg0: i32) -> (i32, i32) {
    %c0_i32 = arith.constant 0 : i32
    %c0_i32_0 = arith.constant 0 : i32
    %c0_i32_1 = arith.constant 0 : i32
    return %c0_i32, %c0_i32_0 : i32, i32
  }
  func.func @transform_6(%arg0: i32) -> (i32, i32, i32, i32, i32) {
    %c0_i32 = arith.constant 0 : i32
    %c0_i32_0 = arith.constant 0 : i32
    %c0_i32_1 = arith.constant 0 : i32
    %c0_i32_2 = arith.constant 0 : i32
    %c0_i32_3 = arith.constant 0 : i32
    return %arg0, %c0_i32, %c0_i32_0, %c0_i32_1, %c0_i32_2 : i32, i32, i32, i32, i32
  }
}

module attributes {stable_mosaic.version = 11 : i64} {
  func.func @_stage_cls_kernel(%arg0: i32, %arg1: memref<1x16x16x16xbf16, #tpu.memory_space<vmem>>, %arg2: memref<9x16x16xbf16, #tpu.memory_space<vmem>>, %arg3: memref<1x16xf32, #tpu.memory_space<vmem>>, %arg4: memref<1x16xf32, #tpu.memory_space<vmem>>, %arg5: memref<1x16xf32, #tpu.memory_space<vmem>>, %arg6: memref<1x16xf32, #tpu.memory_space<vmem>>, %arg7: memref<16x4xbf16, #tpu.memory_space<vmem>>, %arg8: memref<1x4xf32, #tpu.memory_space<vmem>>, %arg9: memref<1x16x2x16x8xf32, #tpu.memory_space<vmem>>) attributes {dimension_semantics = [#tpu.dimension_semantics<parallel>], iteration_bounds = array<i64: 2>, scalar_prefetch = 0 : i64, scratch_operands = 0 : i64, tpu.core_type = #tpu.core_type<tc>, window_params = [{transform_indices = @transform_0, window_bounds = array<i64: 1, 16, 16, 16>}, {pipeline_mode = #tpu.pipeline_mode<synchronous>, transform_indices = @transform_1, window_bounds = array<i64: 9, 16, 16>}, {pipeline_mode = #tpu.pipeline_mode<synchronous>, transform_indices = @transform_2, window_bounds = array<i64: 1, 16>}, {pipeline_mode = #tpu.pipeline_mode<synchronous>, transform_indices = @transform_3, window_bounds = array<i64: 1, 16>}, {pipeline_mode = #tpu.pipeline_mode<synchronous>, transform_indices = @transform_4, window_bounds = array<i64: 1, 16>}, {pipeline_mode = #tpu.pipeline_mode<synchronous>, transform_indices = @transform_5, window_bounds = array<i64: 1, 16>}, {pipeline_mode = #tpu.pipeline_mode<synchronous>, transform_indices = @transform_6, window_bounds = array<i64: 16, 4>}, {pipeline_mode = #tpu.pipeline_mode<synchronous>, transform_indices = @transform_7, window_bounds = array<i64: 1, 4>}, {transform_indices = @transform_8, window_bounds = array<i64: 1, 16, 2, 16, 8>}]} {
    %c0 = arith.constant 0 : index
    %c0_0 = arith.constant 0 : index
    %c0_1 = arith.constant 0 : index
    %c0_2 = arith.constant 0 : index
    %0 = vector.load %arg1[%c0, %c0_0, %c0_1, %c0_2] : memref<1x16x16x16xbf16, #tpu.memory_space<vmem>>, vector<1x16x16x16xbf16>
    %1 = vector.shape_cast %0 : vector<1x16x16x16xbf16> to vector<16x16x16xbf16>
    %2 = arith.extf %1 : vector<16x16x16xbf16> to vector<16x16x16xf32>
    %3 = arith.truncf %2 : vector<16x16x16xf32> to vector<16x16x16xbf16>
    %cst = arith.constant 0.000000e+00 : f32
    %4 = vector.broadcast %cst : f32 to vector<256x16xf32>
    %cst_3 = arith.constant 0.000000e+00 : bf16
    %5 = vector.broadcast %cst_3 : bf16 to vector<1x16x16xbf16>
    %6 = vector.extract_strided_slice %3 {offsets = [0, 0, 0], sizes = [15, 16, 16], strides = [1, 1, 1]} : vector<16x16x16xbf16> to vector<15x16x16xbf16>
    %7 = tpu.concatenate %5, %6 in 0 : vector<1x16x16xbf16>, vector<15x16x16xbf16> -> vector<16x16x16xbf16>
    %cst_4 = arith.constant 0.000000e+00 : bf16
    %8 = vector.broadcast %cst_4 : bf16 to vector<16x1x16xbf16>
    %9 = vector.extract_strided_slice %7 {offsets = [0, 0, 0], sizes = [16, 15, 16], strides = [1, 1, 1]} : vector<16x16x16xbf16> to vector<16x15x16xbf16>
    %10 = tpu.concatenate %8, %9 in 1 : vector<16x1x16xbf16>, vector<16x15x16xbf16> -> vector<16x16x16xbf16>
    %11 = vector.shape_cast %10 : vector<16x16x16xbf16> to vector<256x16xbf16>
    %c0_5 = arith.constant 0 : index
    %c0_6 = arith.constant 0 : index
    %c0_7 = arith.constant 0 : index
    %12 = vector.load %arg2[%c0_5, %c0_6, %c0_7] : memref<9x16x16xbf16, #tpu.memory_space<vmem>>, vector<1x16x16xbf16>
    %13 = vector.shape_cast %12 : vector<1x16x16xbf16> to vector<16x16xbf16>
    %cst_8 = arith.constant dense<0.000000e+00> : vector<256x16xf32>
    %14 = tpu.matmul %11, %13, %cst_8 {dimension_numbers = #tpu.dot_dimension_numbers<[1], [0], [0], [1], [0, 0, 1, 1], [], []>} : vector<256x16xbf16>, vector<16x16xbf16>, vector<256x16xf32> -> vector<256x16xf32>
    %15 = arith.addf %4, %14 : vector<256x16xf32>
    %16 = vector.shape_cast %7 : vector<16x16x16xbf16> to vector<256x16xbf16>
    %c1 = arith.constant 1 : index
    %c0_9 = arith.constant 0 : index
    %c0_10 = arith.constant 0 : index
    %17 = vector.load %arg2[%c1, %c0_9, %c0_10] : memref<9x16x16xbf16, #tpu.memory_space<vmem>>, vector<1x16x16xbf16>
    %18 = vector.shape_cast %17 : vector<1x16x16xbf16> to vector<16x16xbf16>
    %cst_11 = arith.constant dense<0.000000e+00> : vector<256x16xf32>
    %19 = tpu.matmul %16, %18, %cst_11 {dimension_numbers = #tpu.dot_dimension_numbers<[1], [0], [0], [1], [0, 0, 1, 1], [], []>} : vector<256x16xbf16>, vector<16x16xbf16>, vector<256x16xf32> -> vector<256x16xf32>
    %20 = arith.addf %15, %19 : vector<256x16xf32>
    %cst_12 = arith.constant 0.000000e+00 : bf16
    %21 = vector.broadcast %cst_12 : bf16 to vector<16x1x16xbf16>
    %22 = vector.extract_strided_slice %7 {offsets = [0, 1, 0], sizes = [16, 15, 16], strides = [1, 1, 1]} : vector<16x16x16xbf16> to vector<16x15x16xbf16>
    %23 = tpu.concatenate %22, %21 in 1 : vector<16x15x16xbf16>, vector<16x1x16xbf16> -> vector<16x16x16xbf16>
    %24 = vector.shape_cast %23 : vector<16x16x16xbf16> to vector<256x16xbf16>
    %c2 = arith.constant 2 : index
    %c0_13 = arith.constant 0 : index
    %c0_14 = arith.constant 0 : index
    %25 = vector.load %arg2[%c2, %c0_13, %c0_14] : memref<9x16x16xbf16, #tpu.memory_space<vmem>>, vector<1x16x16xbf16>
    %26 = vector.shape_cast %25 : vector<1x16x16xbf16> to vector<16x16xbf16>
    %cst_15 = arith.constant dense<0.000000e+00> : vector<256x16xf32>
    %27 = tpu.matmul %24, %26, %cst_15 {dimension_numbers = #tpu.dot_dimension_numbers<[1], [0], [0], [1], [0, 0, 1, 1], [], []>} : vector<256x16xbf16>, vector<16x16xbf16>, vector<256x16xf32> -> vector<256x16xf32>
    %28 = arith.addf %20, %27 : vector<256x16xf32>
    %cst_16 = arith.constant 0.000000e+00 : bf16
    %29 = vector.broadcast %cst_16 : bf16 to vector<16x1x16xbf16>
    %30 = vector.extract_strided_slice %3 {offsets = [0, 0, 0], sizes = [16, 15, 16], strides = [1, 1, 1]} : vector<16x16x16xbf16> to vector<16x15x16xbf16>
    %31 = tpu.concatenate %29, %30 in 1 : vector<16x1x16xbf16>, vector<16x15x16xbf16> -> vector<16x16x16xbf16>
    %32 = vector.shape_cast %31 : vector<16x16x16xbf16> to vector<256x16xbf16>
    %c3 = arith.constant 3 : index
    %c0_17 = arith.constant 0 : index
    %c0_18 = arith.constant 0 : index
    %33 = vector.load %arg2[%c3, %c0_17, %c0_18] : memref<9x16x16xbf16, #tpu.memory_space<vmem>>, vector<1x16x16xbf16>
    %34 = vector.shape_cast %33 : vector<1x16x16xbf16> to vector<16x16xbf16>
    %cst_19 = arith.constant dense<0.000000e+00> : vector<256x16xf32>
    %35 = tpu.matmul %32, %34, %cst_19 {dimension_numbers = #tpu.dot_dimension_numbers<[1], [0], [0], [1], [0, 0, 1, 1], [], []>} : vector<256x16xbf16>, vector<16x16xbf16>, vector<256x16xf32> -> vector<256x16xf32>
    %36 = arith.addf %28, %35 : vector<256x16xf32>
    %37 = vector.shape_cast %3 : vector<16x16x16xbf16> to vector<256x16xbf16>
    %c4 = arith.constant 4 : index
    %c0_20 = arith.constant 0 : index
    %c0_21 = arith.constant 0 : index
    %38 = vector.load %arg2[%c4, %c0_20, %c0_21] : memref<9x16x16xbf16, #tpu.memory_space<vmem>>, vector<1x16x16xbf16>
    %39 = vector.shape_cast %38 : vector<1x16x16xbf16> to vector<16x16xbf16>
    %cst_22 = arith.constant dense<0.000000e+00> : vector<256x16xf32>
    %40 = tpu.matmul %37, %39, %cst_22 {dimension_numbers = #tpu.dot_dimension_numbers<[1], [0], [0], [1], [0, 0, 1, 1], [], []>} : vector<256x16xbf16>, vector<16x16xbf16>, vector<256x16xf32> -> vector<256x16xf32>
    %41 = arith.addf %36, %40 : vector<256x16xf32>
    %cst_23 = arith.constant 0.000000e+00 : bf16
    %42 = vector.broadcast %cst_23 : bf16 to vector<16x1x16xbf16>
    %43 = vector.extract_strided_slice %3 {offsets = [0, 1, 0], sizes = [16, 15, 16], strides = [1, 1, 1]} : vector<16x16x16xbf16> to vector<16x15x16xbf16>
    %44 = tpu.concatenate %43, %42 in 1 : vector<16x15x16xbf16>, vector<16x1x16xbf16> -> vector<16x16x16xbf16>
    %45 = vector.shape_cast %44 : vector<16x16x16xbf16> to vector<256x16xbf16>
    %c5 = arith.constant 5 : index
    %c0_24 = arith.constant 0 : index
    %c0_25 = arith.constant 0 : index
    %46 = vector.load %arg2[%c5, %c0_24, %c0_25] : memref<9x16x16xbf16, #tpu.memory_space<vmem>>, vector<1x16x16xbf16>
    %47 = vector.shape_cast %46 : vector<1x16x16xbf16> to vector<16x16xbf16>
    %cst_26 = arith.constant dense<0.000000e+00> : vector<256x16xf32>
    %48 = tpu.matmul %45, %47, %cst_26 {dimension_numbers = #tpu.dot_dimension_numbers<[1], [0], [0], [1], [0, 0, 1, 1], [], []>} : vector<256x16xbf16>, vector<16x16xbf16>, vector<256x16xf32> -> vector<256x16xf32>
    %49 = arith.addf %41, %48 : vector<256x16xf32>
    %cst_27 = arith.constant 0.000000e+00 : bf16
    %50 = vector.broadcast %cst_27 : bf16 to vector<1x16x16xbf16>
    %51 = vector.extract_strided_slice %3 {offsets = [1, 0, 0], sizes = [15, 16, 16], strides = [1, 1, 1]} : vector<16x16x16xbf16> to vector<15x16x16xbf16>
    %52 = tpu.concatenate %51, %50 in 0 : vector<15x16x16xbf16>, vector<1x16x16xbf16> -> vector<16x16x16xbf16>
    %cst_28 = arith.constant 0.000000e+00 : bf16
    %53 = vector.broadcast %cst_28 : bf16 to vector<16x1x16xbf16>
    %54 = vector.extract_strided_slice %52 {offsets = [0, 0, 0], sizes = [16, 15, 16], strides = [1, 1, 1]} : vector<16x16x16xbf16> to vector<16x15x16xbf16>
    %55 = tpu.concatenate %53, %54 in 1 : vector<16x1x16xbf16>, vector<16x15x16xbf16> -> vector<16x16x16xbf16>
    %56 = vector.shape_cast %55 : vector<16x16x16xbf16> to vector<256x16xbf16>
    %c6 = arith.constant 6 : index
    %c0_29 = arith.constant 0 : index
    %c0_30 = arith.constant 0 : index
    %57 = vector.load %arg2[%c6, %c0_29, %c0_30] : memref<9x16x16xbf16, #tpu.memory_space<vmem>>, vector<1x16x16xbf16>
    %58 = vector.shape_cast %57 : vector<1x16x16xbf16> to vector<16x16xbf16>
    %cst_31 = arith.constant dense<0.000000e+00> : vector<256x16xf32>
    %59 = tpu.matmul %56, %58, %cst_31 {dimension_numbers = #tpu.dot_dimension_numbers<[1], [0], [0], [1], [0, 0, 1, 1], [], []>} : vector<256x16xbf16>, vector<16x16xbf16>, vector<256x16xf32> -> vector<256x16xf32>
    %60 = arith.addf %49, %59 : vector<256x16xf32>
    %61 = vector.shape_cast %52 : vector<16x16x16xbf16> to vector<256x16xbf16>
    %c7 = arith.constant 7 : index
    %c0_32 = arith.constant 0 : index
    %c0_33 = arith.constant 0 : index
    %62 = vector.load %arg2[%c7, %c0_32, %c0_33] : memref<9x16x16xbf16, #tpu.memory_space<vmem>>, vector<1x16x16xbf16>
    %63 = vector.shape_cast %62 : vector<1x16x16xbf16> to vector<16x16xbf16>
    %cst_34 = arith.constant dense<0.000000e+00> : vector<256x16xf32>
    %64 = tpu.matmul %61, %63, %cst_34 {dimension_numbers = #tpu.dot_dimension_numbers<[1], [0], [0], [1], [0, 0, 1, 1], [], []>} : vector<256x16xbf16>, vector<16x16xbf16>, vector<256x16xf32> -> vector<256x16xf32>
    %65 = arith.addf %60, %64 : vector<256x16xf32>
    %cst_35 = arith.constant 0.000000e+00 : bf16
    %66 = vector.broadcast %cst_35 : bf16 to vector<16x1x16xbf16>
    %67 = vector.extract_strided_slice %52 {offsets = [0, 1, 0], sizes = [16, 15, 16], strides = [1, 1, 1]} : vector<16x16x16xbf16> to vector<16x15x16xbf16>
    %68 = tpu.concatenate %67, %66 in 1 : vector<16x15x16xbf16>, vector<16x1x16xbf16> -> vector<16x16x16xbf16>
    %69 = vector.shape_cast %68 : vector<16x16x16xbf16> to vector<256x16xbf16>
    %c8 = arith.constant 8 : index
    %c0_36 = arith.constant 0 : index
    %c0_37 = arith.constant 0 : index
    %70 = vector.load %arg2[%c8, %c0_36, %c0_37] : memref<9x16x16xbf16, #tpu.memory_space<vmem>>, vector<1x16x16xbf16>
    %71 = vector.shape_cast %70 : vector<1x16x16xbf16> to vector<16x16xbf16>
    %cst_38 = arith.constant dense<0.000000e+00> : vector<256x16xf32>
    %72 = tpu.matmul %69, %71, %cst_38 {dimension_numbers = #tpu.dot_dimension_numbers<[1], [0], [0], [1], [0, 0, 1, 1], [], []>} : vector<256x16xbf16>, vector<16x16xbf16>, vector<256x16xf32> -> vector<256x16xf32>
    %73 = arith.addf %65, %72 : vector<256x16xf32>
    %c0_39 = arith.constant 0 : index
    %c0_40 = arith.constant 0 : index
    %74 = vector.load %arg5[%c0_39, %c0_40] : memref<1x16xf32, #tpu.memory_space<vmem>>, vector<1x16xf32>
    %75 = vector.broadcast %74 : vector<1x16xf32> to vector<256x16xf32>
    %76 = arith.mulf %73, %75 : vector<256x16xf32>
    %c0_41 = arith.constant 0 : index
    %c0_42 = arith.constant 0 : index
    %77 = vector.load %arg6[%c0_41, %c0_42] : memref<1x16xf32, #tpu.memory_space<vmem>>, vector<1x16xf32>
    %78 = vector.broadcast %77 : vector<1x16xf32> to vector<256x16xf32>
    %79 = arith.addf %76, %78 : vector<256x16xf32>
    %cst_43 = arith.constant 0.000000e+00 : f32
    %80 = vector.broadcast %cst_43 : f32 to vector<256x16xf32>
    %81 = arith.maximumf %79, %80 : vector<256x16xf32>
    %82 = vector.shape_cast %81 : vector<256x16xf32> to vector<16x16x16xf32>
    %c0_44 = arith.constant 0 : index
    %c0_45 = arith.constant 0 : index
    %83 = vector.load %arg7[%c0_44, %c0_45] : memref<16x4xbf16, #tpu.memory_space<vmem>>, vector<16x4xbf16>
    %c0_46 = arith.constant 0 : index
    %c0_47 = arith.constant 0 : index
    %84 = vector.load %arg8[%c0_46, %c0_47] : memref<1x4xf32, #tpu.memory_space<vmem>>, vector<1x4xf32>
    %85 = vector.extract_strided_slice %82 {offsets = [0, 0, 0], sizes = [1, 16, 16], strides = [1, 1, 1]} : vector<16x16x16xf32> to vector<1x16x16xf32>
    %86 = vector.extract_strided_slice %82 {offsets = [0, 0, 0], sizes = [15, 16, 16], strides = [1, 1, 1]} : vector<16x16x16xf32> to vector<15x16x16xf32>
    %87 = tpu.concatenate %85, %86 in 0 : vector<1x16x16xf32>, vector<15x16x16xf32> -> vector<16x16x16xf32>
    %88 = vector.extract_strided_slice %82 {offsets = [1, 0, 0], sizes = [15, 16, 16], strides = [1, 1, 1]} : vector<16x16x16xf32> to vector<15x16x16xf32>
    %89 = vector.extract_strided_slice %82 {offsets = [15, 0, 0], sizes = [1, 16, 16], strides = [1, 1, 1]} : vector<16x16x16xf32> to vector<1x16x16xf32>
    %90 = tpu.concatenate %88, %89 in 0 : vector<15x16x16xf32>, vector<1x16x16xf32> -> vector<16x16x16xf32>
    %cst_48 = arith.constant 2.500000e-01 : f32
    %91 = vector.broadcast %cst_48 : f32 to vector<16x16x16xf32>
    %92 = arith.mulf %91, %87 : vector<16x16x16xf32>
    %cst_49 = arith.constant 7.500000e-01 : f32
    %93 = vector.broadcast %cst_49 : f32 to vector<16x16x16xf32>
    %94 = arith.mulf %93, %82 : vector<16x16x16xf32>
    %95 = arith.addf %92, %94 : vector<16x16x16xf32>
    %cst_50 = arith.constant 7.500000e-01 : f32
    %96 = vector.broadcast %cst_50 : f32 to vector<16x16x16xf32>
    %97 = arith.mulf %96, %82 : vector<16x16x16xf32>
    %cst_51 = arith.constant 2.500000e-01 : f32
    %98 = vector.broadcast %cst_51 : f32 to vector<16x16x16xf32>
    %99 = arith.mulf %98, %90 : vector<16x16x16xf32>
    %100 = arith.addf %97, %99 : vector<16x16x16xf32>
    %101 = vector.extract_strided_slice %95 {offsets = [0, 0, 0], sizes = [16, 1, 16], strides = [1, 1, 1]} : vector<16x16x16xf32> to vector<16x1x16xf32>
    %102 = vector.extract_strided_slice %95 {offsets = [0, 0, 0], sizes = [16, 15, 16], strides = [1, 1, 1]} : vector<16x16x16xf32> to vector<16x15x16xf32>
    %103 = tpu.concatenate %101, %102 in 1 : vector<16x1x16xf32>, vector<16x15x16xf32> -> vector<16x16x16xf32>
    %104 = vector.extract_strided_slice %95 {offsets = [0, 1, 0], sizes = [16, 15, 16], strides = [1, 1, 1]} : vector<16x16x16xf32> to vector<16x15x16xf32>
    %105 = vector.extract_strided_slice %95 {offsets = [0, 15, 0], sizes = [16, 1, 16], strides = [1, 1, 1]} : vector<16x16x16xf32> to vector<16x1x16xf32>
    %106 = tpu.concatenate %104, %105 in 1 : vector<16x15x16xf32>, vector<16x1x16xf32> -> vector<16x16x16xf32>
    %cst_52 = arith.constant 2.500000e-01 : f32
    %107 = vector.broadcast %cst_52 : f32 to vector<16x16x16xf32>
    %108 = arith.mulf %107, %103 : vector<16x16x16xf32>
    %cst_53 = arith.constant 7.500000e-01 : f32
    %109 = vector.broadcast %cst_53 : f32 to vector<16x16x16xf32>
    %110 = arith.mulf %109, %95 : vector<16x16x16xf32>
    %111 = arith.addf %108, %110 : vector<16x16x16xf32>
    %cst_54 = arith.constant 7.500000e-01 : f32
    %112 = vector.broadcast %cst_54 : f32 to vector<16x16x16xf32>
    %113 = arith.mulf %112, %95 : vector<16x16x16xf32>
    %cst_55 = arith.constant 2.500000e-01 : f32
    %114 = vector.broadcast %cst_55 : f32 to vector<16x16x16xf32>
    %115 = arith.mulf %114, %106 : vector<16x16x16xf32>
    %116 = arith.addf %113, %115 : vector<16x16x16xf32>
    %117 = arith.truncf %111 : vector<16x16x16xf32> to vector<16x16x16xbf16>
    %118 = vector.shape_cast %117 : vector<16x16x16xbf16> to vector<256x16xbf16>
    %cst_56 = arith.constant dense<0.000000e+00> : vector<256x4xf32>
    %119 = tpu.matmul %118, %83, %cst_56 {dimension_numbers = #tpu.dot_dimension_numbers<[1], [0], [0], [1], [0, 0, 1, 1], [], []>} : vector<256x16xbf16>, vector<16x4xbf16>, vector<256x4xf32> -> vector<256x4xf32>
    %120 = vector.broadcast %84 : vector<1x4xf32> to vector<256x4xf32>
    %121 = arith.addf %119, %120 : vector<256x4xf32>
    %122 = vector.shape_cast %121 : vector<256x4xf32> to vector<16x16x4xf32>
    %123 = arith.truncf %116 : vector<16x16x16xf32> to vector<16x16x16xbf16>
    %124 = vector.shape_cast %123 : vector<16x16x16xbf16> to vector<256x16xbf16>
    %cst_57 = arith.constant dense<0.000000e+00> : vector<256x4xf32>
    %125 = tpu.matmul %124, %83, %cst_57 {dimension_numbers = #tpu.dot_dimension_numbers<[1], [0], [0], [1], [0, 0, 1, 1], [], []>} : vector<256x16xbf16>, vector<16x4xbf16>, vector<256x4xf32> -> vector<256x4xf32>
    %126 = vector.broadcast %84 : vector<1x4xf32> to vector<256x4xf32>
    %127 = arith.addf %125, %126 : vector<256x4xf32>
    %128 = vector.shape_cast %127 : vector<256x4xf32> to vector<16x16x4xf32>
    %129 = tpu.concatenate %122, %128 in 2 : vector<16x16x4xf32>, vector<16x16x4xf32> -> vector<16x16x8xf32>
    %130 = vector.extract_strided_slice %100 {offsets = [0, 0, 0], sizes = [16, 1, 16], strides = [1, 1, 1]} : vector<16x16x16xf32> to vector<16x1x16xf32>
    %131 = vector.extract_strided_slice %100 {offsets = [0, 0, 0], sizes = [16, 15, 16], strides = [1, 1, 1]} : vector<16x16x16xf32> to vector<16x15x16xf32>
    %132 = tpu.concatenate %130, %131 in 1 : vector<16x1x16xf32>, vector<16x15x16xf32> -> vector<16x16x16xf32>
    %133 = vector.extract_strided_slice %100 {offsets = [0, 1, 0], sizes = [16, 15, 16], strides = [1, 1, 1]} : vector<16x16x16xf32> to vector<16x15x16xf32>
    %134 = vector.extract_strided_slice %100 {offsets = [0, 15, 0], sizes = [16, 1, 16], strides = [1, 1, 1]} : vector<16x16x16xf32> to vector<16x1x16xf32>
    %135 = tpu.concatenate %133, %134 in 1 : vector<16x15x16xf32>, vector<16x1x16xf32> -> vector<16x16x16xf32>
    %cst_58 = arith.constant 2.500000e-01 : f32
    %136 = vector.broadcast %cst_58 : f32 to vector<16x16x16xf32>
    %137 = arith.mulf %136, %132 : vector<16x16x16xf32>
    %cst_59 = arith.constant 7.500000e-01 : f32
    %138 = vector.broadcast %cst_59 : f32 to vector<16x16x16xf32>
    %139 = arith.mulf %138, %100 : vector<16x16x16xf32>
    %140 = arith.addf %137, %139 : vector<16x16x16xf32>
    %cst_60 = arith.constant 7.500000e-01 : f32
    %141 = vector.broadcast %cst_60 : f32 to vector<16x16x16xf32>
    %142 = arith.mulf %141, %100 : vector<16x16x16xf32>
    %cst_61 = arith.constant 2.500000e-01 : f32
    %143 = vector.broadcast %cst_61 : f32 to vector<16x16x16xf32>
    %144 = arith.mulf %143, %135 : vector<16x16x16xf32>
    %145 = arith.addf %142, %144 : vector<16x16x16xf32>
    %146 = arith.truncf %140 : vector<16x16x16xf32> to vector<16x16x16xbf16>
    %147 = vector.shape_cast %146 : vector<16x16x16xbf16> to vector<256x16xbf16>
    %cst_62 = arith.constant dense<0.000000e+00> : vector<256x4xf32>
    %148 = tpu.matmul %147, %83, %cst_62 {dimension_numbers = #tpu.dot_dimension_numbers<[1], [0], [0], [1], [0, 0, 1, 1], [], []>} : vector<256x16xbf16>, vector<16x4xbf16>, vector<256x4xf32> -> vector<256x4xf32>
    %149 = vector.broadcast %84 : vector<1x4xf32> to vector<256x4xf32>
    %150 = arith.addf %148, %149 : vector<256x4xf32>
    %151 = vector.shape_cast %150 : vector<256x4xf32> to vector<16x16x4xf32>
    %152 = arith.truncf %145 : vector<16x16x16xf32> to vector<16x16x16xbf16>
    %153 = vector.shape_cast %152 : vector<16x16x16xbf16> to vector<256x16xbf16>
    %cst_63 = arith.constant dense<0.000000e+00> : vector<256x4xf32>
    %154 = tpu.matmul %153, %83, %cst_63 {dimension_numbers = #tpu.dot_dimension_numbers<[1], [0], [0], [1], [0, 0, 1, 1], [], []>} : vector<256x16xbf16>, vector<16x4xbf16>, vector<256x4xf32> -> vector<256x4xf32>
    %155 = vector.broadcast %84 : vector<1x4xf32> to vector<256x4xf32>
    %156 = arith.addf %154, %155 : vector<256x4xf32>
    %157 = vector.shape_cast %156 : vector<256x4xf32> to vector<16x16x4xf32>
    %158 = tpu.concatenate %151, %157 in 2 : vector<16x16x4xf32>, vector<16x16x4xf32> -> vector<16x16x8xf32>
    %159 = vector.shape_cast %129 : vector<16x16x8xf32> to vector<16x1x16x8xf32>
    %160 = vector.shape_cast %158 : vector<16x16x8xf32> to vector<16x1x16x8xf32>
    %161 = tpu.concatenate %159, %160 in 1 : vector<16x1x16x8xf32>, vector<16x1x16x8xf32> -> vector<16x2x16x8xf32>
    %c0_64 = arith.constant 0 : index
    %c0_65 = arith.constant 0 : index
    %c0_66 = arith.constant 0 : index
    %c0_67 = arith.constant 0 : index
    %c0_68 = arith.constant 0 : index
    %162 = vector.load %arg9[%c0_64, %c0_65, %c0_66, %c0_67, %c0_68] : memref<1x16x2x16x8xf32, #tpu.memory_space<vmem>>, vector<1x16x2x16x8xf32>
    %163 = vector.shape_cast %162 : vector<1x16x2x16x8xf32> to vector<16x2x16x8xf32>
    %164 = vector.shape_cast %161 : vector<16x2x16x8xf32> to vector<1x16x2x16x8xf32>
    tpu.vector_store %arg9[%c0_64, %c0_65, %c0_66, %c0_67, %c0_68], %164 {strides = array<i32>} : memref<1x16x2x16x8xf32, #tpu.memory_space<vmem>>, vector<1x16x2x16x8xf32>,
    return
  }
  func.func @transform_0(%arg0: i32) -> (i32, i32, i32, i32) {
    %c0_i32 = arith.constant 0 : i32
    %c0_i32_0 = arith.constant 0 : i32
    %c0_i32_1 = arith.constant 0 : i32
    %c0_i32_2 = arith.constant 0 : i32
    return %arg0, %c0_i32, %c0_i32_0, %c0_i32_1 : i32, i32, i32, i32
  }
  func.func @transform_1(%arg0: i32) -> (i32, i32, i32) {
    %c0_i32 = arith.constant 0 : i32
    %c0_i32_0 = arith.constant 0 : i32
    %c0_i32_1 = arith.constant 0 : i32
    %c0_i32_2 = arith.constant 0 : i32
    return %c0_i32, %c0_i32_0, %c0_i32_1 : i32, i32, i32
  }
  func.func @transform_2(%arg0: i32) -> (i32, i32) {
    %c0_i32 = arith.constant 0 : i32
    %c0_i32_0 = arith.constant 0 : i32
    %c0_i32_1 = arith.constant 0 : i32
    return %c0_i32, %c0_i32_0 : i32, i32
  }
  func.func @transform_3(%arg0: i32) -> (i32, i32) {
    %c0_i32 = arith.constant 0 : i32
    %c0_i32_0 = arith.constant 0 : i32
    %c0_i32_1 = arith.constant 0 : i32
    return %c0_i32, %c0_i32_0 : i32, i32
  }
  func.func @transform_4(%arg0: i32) -> (i32, i32) {
    %c0_i32 = arith.constant 0 : i32
    %c0_i32_0 = arith.constant 0 : i32
    %c0_i32_1 = arith.constant 0 : i32
    return %c0_i32, %c0_i32_0 : i32, i32
  }
  func.func @transform_5(%arg0: i32) -> (i32, i32) {
    %c0_i32 = arith.constant 0 : i32
    %c0_i32_0 = arith.constant 0 : i32
    %c0_i32_1 = arith.constant 0 : i32
    return %c0_i32, %c0_i32_0 : i32, i32
  }
  func.func @transform_6(%arg0: i32) -> (i32, i32) {
    %c0_i32 = arith.constant 0 : i32
    %c0_i32_0 = arith.constant 0 : i32
    %c0_i32_1 = arith.constant 0 : i32
    return %c0_i32, %c0_i32_0 : i32, i32
  }
  func.func @transform_7(%arg0: i32) -> (i32, i32) {
    %c0_i32 = arith.constant 0 : i32
    %c0_i32_0 = arith.constant 0 : i32
    %c0_i32_1 = arith.constant 0 : i32
    return %c0_i32, %c0_i32_0 : i32, i32
  }
  func.func @transform_8(%arg0: i32) -> (i32, i32, i32, i32, i32) {
    %c0_i32 = arith.constant 0 : i32
    %c0_i32_0 = arith.constant 0 : i32
    %c0_i32_1 = arith.constant 0 : i32
    %c0_i32_2 = arith.constant 0 : i32
    %c0_i32_3 = arith.constant 0 : i32
    return %arg0, %c0_i32, %c0_i32_0, %c0_i32_1, %c0_i32_2 : i32, i32, i32, i32, i32
  }
}

</mosaic_0001>

<bundles_post_ra>
// kernel: setr_up_head_forward.2
= control target key start
LH: loop header
LB: loop body
LE: loop exit
PB: predicated region body
PF: predicated region fallthrough
CT: control target
= control target key end

     0   :  { %s2412_s21 = smov 0   ;;  %s3029_s0 = inlined_call_operand.vmem [shape: f32[2,8,8,32], index: 0, kind: input, shape index: {}]   ;;  %s3030_s1 = inlined_call_operand.vmem [shape: bf16[9,32,16], index: 1, kind: input, shape index: {}]   ;;  %s3031_s2 = inlined_call_operand.vmem [shape: f32[1,32], index: 2, kind: input, shape index: {}]   ;;  %s3032_s3 = inlined_call_operand.vmem [shape: f32[1,32], index: 3, kind: input, shape index: {}]   ;;  %s3033_s4 = inlined_call_operand.vmem [shape: f32[1,16], index: 4, kind: input, shape index: {}]   ;;  %s3034_s5 = inlined_call_operand.vmem [shape: f32[1,16], index: 5, kind: input, shape index: {}]   ;;  %s3035_s6 = inlined_call_operand.vmem [shape: bf16[2,8,2,8,32], index: 6, kind: output, shape index: {}]  }
   0x1 LB: > { %s1916_s22 = sadd.s32 4294967295, %s2373_s21   ;;  %p1920_p0 = scmp.ge.s32.totalorder %s2373_s21, 1  ;;  %s2373_s21 = sphi %s2412_s21, %s16_s21  }
   0x2   : > { %p212_p1 = scmp.lt.s32.totalorder %s2373_s21, 3 }
   0x4   : > { %p213_p2 = pnand %p1920_p0, %p212_p1 }
   0x5   : > { %p242_p3 = scmp.lt.s32.totalorder (!%p213_p2), %s1916_s22, 1  ;;  %vm261_vm0 = vcmask (!%p213_p2), 261120   ;;  %v2333_v56 = vld [vmem:[%s3030_s1 + $0x10] sm:$0xff] (!%p213_p2)   ;;  %v2482_v57 = vld [vmem:[%s3030_s1 + $0x40] sm:$0xff] (!%p213_p2)   ;;  %v2335_v58 = vld [vmem:[%s3030_s1 + $0x18] sm:$0xff] (!%p213_p2)   ;;  %vm469_vm1 = vcmask (!%p213_p2), 1040384  }
   0x6   : > { %216 = sbr.rel (%p213_p2) target bundleno = 795 (0x31b), region = 44  ;;  %2107 = vmatprep.subr.bf16.mxu1 (!%p213_p2), %v2333_v56  ;;  %2155 = vmatprep.subr.bf16.mxu0 (!%p213_p2), %v2482_v57  ;;  %v2492_v59 = vld [vmem:[%s3030_s1 + $0x48] sm:$0xff] (!%p213_p2)   ;;  %v2499_v60 = vld [vmem:[%s3030_s1] sm:$0xff] (!%p213_p2)   ;;  %v2504_v61 = vld [vmem:[%s3030_s1 + $0x50] sm:$0xff] (!%p213_p2)   ;;  %vm470_vm2 = vsmask.f32 (!%p213_p2), 256 }
   0x7   : > { %2108 = vmatpush3.bf16.msra.mxu1 (!%p213_p2), %v2333_v56  ;;  %2156 = vmatpush3.bf16.msra.mxu0 (!%p213_p2), %v2482_v57  ;;  %vm2529_vm3 = vmand (!%p213_p2), %vm469_vm1, %vm470_vm2  ;;  %vm731_vm4 = vcmask (!%p213_p2), 1043456   ;;  %vm732_vm5 = vsmask.f32 (!%p213_p2), 3328  ;;  %vm1602_vm7 = vcmask (!%p213_p2), 1046528   ;;  %s2376_s29 = smov (!%p213_p2), 16   ;;  %vm1683_vm8 = vcmask (!%p213_p2), 130048  }
   0x8   : > { %2109 = vmatprep.subr.bf16.mxu1 (!%p213_p2), %v2335_v58  ;;  %2157 = vmatprep.subr.bf16.mxu0 (!%p213_p2), %v2492_v59  ;;  %vm2601_vm6 = vmand (!%p213_p2), %vm731_vm4, %vm732_vm5  ;;  %vm1844_vm9 = vcmask (!%p213_p2), 257024  }
   0xb   : > { %2110 = vmatpush3.bf16.msra.mxu1 (!%p213_p2), %v2335_v58  ;;  %2158 = vmatpush3.bf16.msra.mxu0 (!%p213_p2), %v2492_v59 }
   0xc   : > { %2119 = vmatprep.subr.bf16.mxu1 (!%p213_p2), %v2499_v60  ;;  %2167 = vmatprep.subr.bf16.mxu0 (!%p213_p2), %v2504_v61 }
   0xd   : > { %s3041_s22 = smov (!%p242_p3, %s1916_s22), 1 }
   0xe   : > { %s2044_s23 = sshll.u32 %s3041_s22, 6 }
   0xf   : > { %s246_s26 = scalar_lea.vmem %s3029_s0, %s2044_s23  ;;  %s2962_s8 = scalar_lea.vmem %s3035_s6, %s2044_s23 }
  0x10   : > { %v253_v0 = vld [vmem:[%s246_s26] sm:$0xff]  ;;  %v255_v1 = vld [vmem:[%s246_s26 + $0x10] sm:$0xff]  ;;  %v254_v2 = vld [vmem:[%s246_s26 + $0x8] sm:$0xff] }
  0x11   : > { %v262_v3 = vsel %vm261_vm0, %v253_v0, 0.0  ;;  %v268_v4 = vsel %vm261_vm0, %v255_v1, 0.0  ;;  %v256_v5 = vld [vmem:[%s246_s26 + $0x18] sm:$0xff]  ;;  %v257_v6 = vld [vmem:[%s246_s26 + $0x20] sm:$0xff]  ;;  %v258_v7 = vld [vmem:[%s246_s26 + $0x28] sm:$0xff]  ;;  %v265_v8 = vsel %vm261_vm0, %v254_v2, 0.0 }
  0x12   : > { %263 = vadd.xlane.f32.xlu0 %v262_v3  ;;  %269 = vadd.xlane.f32.xlu1 %v268_v4  ;;  %v271_v9 = vsel %vm261_vm0, %v256_v5, 0.0  ;;  %v274_v10 = vsel %vm261_vm0, %v257_v6, 0.0  ;;  %v277_v11 = vsel %vm261_vm0, %v258_v7, 0.0  ;;  %v259_v12 = vld [vmem:[%s246_s26 + $0x30] sm:$0xff]  ;;  %v260_v13 = vld [vmem:[%s246_s26 + $0x38] sm:$0xff] }
  0x13   : > { %v280_v14 = vsel %vm261_vm0, %v259_v12, 0.0  ;;  %v283_v15 = vsel %vm261_vm0, %v260_v13, 0.0 }
  0x16   : > { %266 = vadd.xlane.f32.xlu0 %v265_v8  ;;  %272 = vadd.xlane.f32.xlu1 %v271_v9 }
  0x1a   : > { %275 = vadd.xlane.f32.xlu0 %v274_v10  ;;  %278 = vadd.xlane.f32.xlu1 %v277_v11 }
  0x1e   : > { %281 = vadd.xlane.f32.xlu0 %v280_v14  ;;  %284 = vadd.xlane.f32.xlu1 %v283_v15 }
  0x9f   : > { %v264_v16 = vpop.xlane.xlu0 %263  ;;  %v270_v17 = vpop.xlane.xlu1 %269 }
  0xa0   : > { %v287_v18 = vmul.f32 0.03125, %v264_v16  ;;  %v289_v19 = vmul.f32 0.03125, %v270_v17 }
  0xa2   : > { %v2436_v20 = vsub.f32 %v253_v0, %v287_v18  ;;  %v2438_v21 = vsub.f32 %v255_v1, %v289_v19 }
  0xa3   : > { %v267_v22 = vpop.xlane.xlu0 %266  ;;  %v273_v23 = vpop.xlane.xlu1 %272 }
  0xa4   : > { %v288_v24 = vmul.f32 0.03125, %v267_v22  ;;  %v290_v25 = vmul.f32 0.03125, %v273_v23  ;;  %v303_v26 = vmul.f32 %v2436_v20, %v2436_v20  ;;  %v305_v27 = vmul.f32 %v2438_v21, %v2438_v21  ;;  %v2511_v22 = vld [vmem:[%s3031_s2] ss:$0 sm:$0xff] }
  0xa6   : > { %v2444_v28 = vsub.f32 %v254_v2, %v288_v24  ;;  %v2446_v29 = vsub.f32 %v256_v5, %v290_v25  ;;  %v311_v30 = vsel %vm261_vm0, %v303_v26, 0.0  ;;  %v317_v33 = vsel %vm261_vm0, %v305_v27, 0.0  ;;  %v2517_v25 = vld [vmem:[%s3032_s3] ss:$0 sm:$0xff] }
  0xa7   : > { %312 = vadd.xlane.f32.xlu0 %v311_v30  ;;  %v276_v31 = vpop.xlane.xlu0 %275  ;;  %v279_v32 = vpop.xlane.xlu1 %278 }
  0xa8   : > { %v291_v34 = vmul.f32 0.03125, %v276_v31  ;;  %v292_v35 = vmul.f32 0.03125, %v279_v32  ;;  %v304_v36 = vmul.f32 %v2444_v28, %v2444_v28  ;;  %v306_v37 = vmul.f32 %v2446_v29, %v2446_v29 }
  0xaa   : > { %v2454_v38 = vsub.f32 %v257_v6, %v291_v34  ;;  %v2456_v39 = vsub.f32 %v258_v7, %v292_v35  ;;  %v314_v40 = vsel %vm261_vm0, %v304_v36, 0.0  ;;  %v320_v43 = vsel %vm261_vm0, %v306_v37, 0.0 }
  0xab   : > { %318 = vadd.xlane.f32.xlu0 %v317_v33  ;;  %315 = vadd.xlane.f32.xlu1 %v314_v40  ;;  %v282_v41 = vpop.xlane.xlu0 %281  ;;  %v285_v42 = vpop.xlane.xlu1 %284  ;;  %v2375_v36 = vmov 0  }
  0xac   : > { %v293_v44 = vmul.f32 0.03125, %v282_v41  ;;  %v294_v45 = vmul.f32 0.03125, %v285_v42  ;;  %v307_v46 = vmul.f32 %v2454_v38, %v2454_v38  ;;  %v308_v47 = vmul.f32 %v2456_v39, %v2456_v39 }
  0xad   : > { %v408_v37 = vrot.slane %v2375_v36, 7 }
  0xae   : > { %v2464_v48 = vsub.f32 %v259_v12, %v293_v44  ;;  %v2466_v49 = vsub.f32 %v260_v13, %v294_v45  ;;  %v323_v50 = vsel %vm261_vm0, %v307_v46, 0.0  ;;  %v326_v51 = vsel %vm261_vm0, %v308_v47, 0.0 }
  0xaf   : > { %321 = vadd.xlane.f32.xlu1 %v320_v43  ;;  %324 = vadd.xlane.f32.xlu0 %v323_v50 }
  0xb0   : > { %v309_v52 = vmul.f32 %v2464_v48, %v2464_v48  ;;  %v310_v53 = vmul.f32 %v2466_v49, %v2466_v49 }
  0xb2   : > { %v329_v54 = vsel %vm261_vm0, %v309_v52, 0.0  ;;  %v332_v55 = vsel %vm261_vm0, %v310_v53, 0.0 }
  0xb3   : > { %327 = vadd.xlane.f32.xlu1 %v326_v51  ;;  %330 = vadd.xlane.f32.xlu0 %v329_v54 }
  0xb7   : > { %333 = vadd.xlane.f32.xlu1 %v332_v55 }
 0x134   : > { %v313_v62 = vpop.xlane.xlu0 %312 }
 0x135   : > { %v335_v63 = vmul.f32 0.03125, %v313_v62  ;;  %v2340_v62 = vld [vmem:[%s3030_s1 + $0x8] sm:$0xff]  }
 0x137   : > { %v343_v0 = vadd.f32 1e-05, %v335_v63 }
 0x138   : > { %v316_v1 = vpop.xlane.xlu1 %315  ;;  %v319_v2 = vpop.xlane.xlu0 %318 }
 0x139   : > { %2351 = vrsqrt.f32 %v343_v0  ;;  %v336_v3 = vmul.f32 0.03125, %v316_v1  ;;  %v337_v4 = vmul.f32 0.03125, %v319_v2 }
 0x13b   : > { %v344_v5 = vadd.f32 1e-05, %v336_v3  ;;  %v345_v6 = vadd.f32 1e-05, %v337_v4 }
 0x13c   : > { %v322_v7 = vpop.xlane.xlu1 %321  ;;  %v325_v8 = vpop.xlane.xlu0 %324 }
 0x13d   : > { %2353 = vrsqrt.f32 %v344_v5  ;;  %v338_v9 = vmul.f32 0.03125, %v322_v7  ;;  %v339_v10 = vmul.f32 0.03125, %v325_v8 }
 0x13e   : > { %2355 = vrsqrt.f32 %v345_v6 }
 0x13f   : > { %v346_v11 = vadd.f32 1e-05, %v338_v9  ;;  %v347_v12 = vadd.f32 1e-05, %v339_v10 }
 0x140   : > { %v328_v13 = vpop.xlane.xlu1 %327  ;;  %v331_v14 = vpop.xlane.xlu0 %330 }
 0x141   : > { %2357 = vrsqrt.f32 %v346_v11  ;;  %v340_v15 = vmul.f32 0.03125, %v328_v13  ;;  %v341_v16 = vmul.f32 0.03125, %v331_v14 }
 0x142   : > { %2359 = vrsqrt.f32 %v347_v12 }
 0x143   : > { %v2352_v17 = vpop.eup %2351  ;;  %v348_v18 = vadd.f32 1e-05, %v340_v15  ;;  %v349_v19 = vadd.f32 1e-05, %v341_v16 }
 0x144   : > { %v334_v23 = vpop.xlane.xlu1 %333  ;;  %v359_v24 = vmul.f32 %v2352_v17, %v2436_v20 }
 0x145   : > { %2361 = vrsqrt.f32 %v348_v18  ;;  %v342_v26 = vmul.f32 0.03125, %v334_v23 }
 0x146   : > { %2363 = vrsqrt.f32 %v349_v19  ;;  %v374_v27 = vmul.f32 %v2511_v22, %v359_v24 }
 0x147   : > { %v2354_v30 = vpop.eup %2353  ;;  %v350_v31 = vadd.f32 1e-05, %v342_v26 }
 0x148   : > { %v2356_v32 = vpop.eup %2355  ;;  %v360_v33 = vmul.f32 %v2354_v30, %v2444_v28  ;;  %v389_v34 = vadd.f32 %v2517_v25, %v374_v27 }
 0x149   : > { %v361_v20 = vmul.f32 %v2356_v32, %v2438_v21  ;;  %2365 = vrsqrt.f32 %v350_v31 }
 0x14a   : > { %v2523_v35 = vpack.c.bf16 %v389_v34, %v389_v34  ;;  %v375_v40 = vmul.f32 %v2511_v22, %v360_v33 }
 0x14b   : > { %v2358_v41 = vpop.eup %2357  ;;  %v376_v42 = vmul.f32 %v2511_v22, %v361_v20 }
 0x14c   : > { %v2360_v43 = vpop.eup %2359  ;;  %v362_v44 = vmul.f32 %v2358_v41, %v2446_v29  ;;  %v413_v21 = vshrl.u32 %v2523_v35, 16  ;;  %v416_v45 = vshll.u32 %v2523_v35, 16  ;;  %v1931_v46 = vcombine.low %v2375_v36, %v2523_v35 }
 0x14d   : > { %v363_v47 = vmul.f32 %v2360_v43, %v2454_v38  ;;  %v390_v50 = vadd.f32 %v2517_v25, %v375_v40  ;;  %v391_v51 = vadd.f32 %v2517_v25, %v376_v42  ;;  %v2545_v29 = vsel %vm2529_vm3, 0, %v408_v37 }
 0x14e   : > { %2111 = vmatprep.mubr.msk.bf16.mxu1 %vm261_vm0, %v1931_v46  ;;  %v377_v52 = vmul.f32 %v2511_v22, %v362_v44  ;;  %v415_v53 = vrot.slane %v413_v21, 7  ;;  %v709_v3 = vrot.slane %v416_v45, 1 }
 0x14f   : > { %v2362_v54 = vpop.eup %2361  ;;  %v2547_v55 = vpack.c.bf16 %v391_v51, %v390_v50  ;;  %v2049_v56 = vpack.c.bf16 %v390_v50, %v389_v34  ;;  %v378_v38 = vmul.f32 %v2511_v22, %v363_v47  ;;  %v398_v58 = vpack.c.bf16 %v390_v50, %v390_v50 }
 0x150   : > { %v2364_v63 = vpop.eup %2363  ;;  %v364_v0 = vmul.f32 %v2362_v54, %v2456_v39  ;;  %v392_v1 = vadd.f32 %v2517_v25, %v377_v52  ;;  %v399_v2 = vpack.c.bf16 %v391_v51, %v391_v51  ;;  %v418_v6 = vor.u32 %v416_v45, %v415_v53 }
 0x151   : > { %v365_v4 = vmul.f32 %v2364_v63, %v2464_v48  ;;  %2112 = vmatmul.mubr.msk.bf16.vlgmr.msra.gmra.mrb[0].mxu1 %vm261_vm0, %v2547_v55  ;;  %2159 = vmatprep.mubr.msk.bf16.mxu0 %vm261_vm0, %v2049_v56  ;;  %v2560_v5 = vadd.f32 %v2517_v25, %v378_v38  ;;  %v420_v7 = vshrl.u32 %v398_v58, 16  ;;  %v2339_v48 = vld [vmem:[%s3030_s1 + $0x58] sm:$0xff]   ;;  %v423_v10 = vshll.u32 %v398_v58, 16 }
 0x152   : > { %v400_v8 = vpack.c.bf16 %v392_v1, %v392_v1  ;;  %2120 = vmatpush3.bf16.msra.mxu1 %v2499_v60  ;;  %v2050_v39 = vpack.c.bf16 %v392_v1, %v391_v51  ;;  %v379_v9 = vmul.f32 %v2511_v22, %v364_v0  ;;  %v2574_v60 = vld [vmem:[%s3030_s1 + $0x20] sm:$0xff]   ;;  %v427_v17 = vshrl.u32 %v399_v2, 16 }
 0x153   : > { %v2366_v11 = vpop.eup %2365  ;;  %v2568_v12 = vpack.c.bf16 %v2560_v5, %v392_v1  ;;  %v380_v13 = vmul.f32 %v2511_v22, %v365_v4  ;;  %v422_v14 = vrot.slane %v420_v7, 7  ;;  %2121 = vmatprep.subr.bf16.mxu1 %v2340_v62  ;;  %v430_v18 = vshll.u32 %v399_v2, 16 }
 0x154   : > { %v366_v15 = vmul.f32 %v2366_v11, %v2466_v49  ;;  %2160 = vmatmul.mubr.msk.bf16.vlgmr.msra.gmra.mrb[0].mxu0 %vm261_vm0, %v2050_v39  ;;  %v2579_v16 = vadd.f32 %v2517_v25, %v379_v9  ;;  %v2589_v23 = vsel %vm2529_vm3, 0, %v418_v6  ;;  %v434_v49 = vshrl.u32 %v400_v8, 16  ;;  %v2344_v9 = vld [vmem:[%s3030_s1 + $0x28] sm:$0xff]  }
 0x155   : > { %2115 = vmatprep.mubr.msk.bf16.mxu1 %vm261_vm0, %v2568_v12  ;;  %2168 = vmatpush3.bf16.msra.mxu0 %v2504_v61  ;;  %v2585_v19 = vadd.f32 %v2517_v25, %v380_v13  ;;  %v437_v24 = vshll.u32 %v400_v8, 16  ;;  %v429_v27 = vrot.slane %v427_v17, 7  ;;  %v710_v30 = vor.u32 %v709_v3, %v413_v21  ;;  %v2341_v61 = vld [vmem:[%s3030_s1 + $0x60] sm:$0xff]   ;;  %v2343_v3 = vld [vmem:[%s3030_s1 + $0x68] sm:$0xff]  }
 0x156   : > { %v381_v26 = vmul.f32 %v2511_v22, %v366_v15  ;;  %2169 = vmatprep.subr.bf16.mxu0 %v2339_v48  ;;  %v711_v31 = vrot.slane %v423_v10, 1  ;;  %2122 = vmatpush3.bf16.msra.mxu1 %v2340_v62  ;;  %v425_v33 = vor.u32 %v423_v10, %v422_v14  ;;  %v713_v34 = vrot.slane %v430_v18, 1  ;;  %v2348_v22 = vld [vmem:[%s3030_s1 + $0x38] sm:$0xff]  }
 0x157   : > { %v2597_v32 = vpack.c.bf16 %v2585_v19, %v2579_v16  ;;  %v715_v20 = vrot.slane %v437_v24, 1  ;;  %2131 = vmatprep.subr.bf16.mxu1 %v2574_v60  ;;  %v1941_v35 = vcombine.low %v2545_v29, %v2589_v23  ;;  %v432_v37 = vor.u32 %v430_v18, %v429_v27 }
 0x158   : > { %v712_v40 = vor.u32 %v711_v31, %v420_v7  ;;  %v714_v41 = vor.u32 %v713_v34, %v427_v17  ;;  %v401_v43 = vpack.c.bf16 %v2560_v5, %v2560_v5  ;;  %v436_v44 = vrot.slane %v434_v49, 7  ;;  %v2346_v34 = vld [vmem:[%s3030_s1 + $0x30] sm:$0xff]  }
 0x159   : > { %2116 = vmatmul.mubr.msk.bf16.gmra.mrb[4].mxu1 %vm261_vm0, %v2597_v32  ;;  %v716_v42 = vor.u32 %v715_v20, %v434_v49  ;;  %2170 = vmatpush3.bf16.msra.mxu0 %v2339_v48  ;;  %v2613_v21 = vadd.f32 %v2517_v25, %v381_v26  ;;  %v2618_v45 = vsel %vm2601_vm6, %v710_v30, 0  ;;  %v402_v47 = vpack.c.bf16 %v2579_v16, %v2579_v16 }
 0x15a   : > { %2123 = vmatprep.mubr.msk.bf16.mxu1 %vm261_vm0, %v1941_v35  ;;  %v2622_v46 = vsel %vm2601_vm6, %v712_v40, 0  ;;  %2179 = vmatprep.subr.bf16.mxu0 %v2341_v61  ;;  %v2634_v51 = vsel %vm2529_vm3, 0, %v425_v33  ;;  %v2638_v52 = vsel %vm2601_vm6, %v714_v41, 0  ;;  %v2642_v53 = vsel %vm2529_vm3, 0, %v432_v37 }
 0x15b   : > { %v2628_v50 = vsel %vm2601_vm6, %v716_v42, 0  ;;  %v1997_v25 = vcombine.low %v2618_v45, %v2622_v46  ;;  %v439_v54 = vor.u32 %v437_v24, %v436_v44  ;;  %v441_v56 = vshrl.u32 %v401_v43, 16 }
 0x15c   : > { %v444_v38 = vshll.u32 %v401_v43, 16  ;;  %v448_v58 = vshrl.u32 %v402_v47, 16  ;;  %v451_v62 = vshll.u32 %v402_v47, 16  ;;  %v403_v63 = vpack.c.bf16 %v2585_v19, %v2585_v19 }
 0x15d   : > { %2171 = vmatprep.mubr.msk.bf16.mxu0 %vm261_vm0, %v1997_v25  ;;  %v707_v0 = vrot.slane %v2375_v36, 1  ;;  %v1998_v1 = vcombine.low %v2638_v52, %v2628_v50  ;;  %v443_v2 = vrot.slane %v441_v56, 7  ;;  %v2655_v4 = vpack.c.bf16 %v2613_v21, %v2613_v21 }
 0x15e   : > { %v1942_v6 = vcombine.low %v2634_v51, %v2642_v53  ;;  %v717_v7 = vrot.slane %v444_v38, 1  ;;  %v719_v8 = vrot.slane %v451_v62, 1  ;;  %v450_v39 = vrot.slane %v448_v58, 7 }
 0x15f   : > { %v446_v48 = vor.u32 %v444_v38, %v443_v2  ;;  %v2665_v10 = vsel %vm2529_vm3, 0, %v439_v54  ;;  %v455_v11 = vshrl.u32 %v403_v63, 16  ;;  %v458_v13 = vshll.u32 %v403_v63, 16 }
 0x160   : > { %2172 = vmatmul.mubr.msk.bf16.vlgmr.msra.gmra.mrb[0].mxu0 %vm261_vm0, %v1998_v1  ;;  %v718_v14 = vor.u32 %v717_v7, %v441_v56  ;;  %v720_v15 = vor.u32 %v719_v8, %v448_v58  ;;  %v453_v17 = vor.u32 %v451_v62, %v450_v39  ;;  %v868_v18 = vshll.u32 %v2655_v4, 16 }
 0x161   : > { %2124 = vmatmul.mubr.msk.bf16.vlgmr.msra.gmra.mrb[0].mxu1 %vm261_vm0, %v1942_v6  ;;  %2180 = vmatpush3.bf16.msra.mxu0 %v2341_v61  ;;  %v2671_v49 = vsel %vm2529_vm3, 0, %v446_v48  ;;  %v457_v24 = vrot.slane %v455_v11, 7  ;;  %v721_v26 = vrot.slane %v458_v13, 1  ;;  %v865_v27 = vshrl.u32 %v2655_v4, 16 }
 0x162   : > { %2132 = vmatpush3.bf16.msra.mxu1 %v2574_v60  ;;  %2181 = vmatprep.subr.bf16.mxu0 %v2343_v3  ;;  %v1943_v30 = vcombine.low %v2665_v10, %v2671_v49  ;;  %v739_v31 = vsel %vm2601_vm6, %v718_v14, 0  ;;  %v740_v61 = vsel %vm2601_vm6, %v720_v15, 0  ;;  %v478_v33 = vsel %vm2529_vm3, 0, %v453_v17  ;;  %v2345_v60 = vld [vmem:[%s3030_s1 + $0x70] sm:$0xff]  }
 0x163   : > { %2133 = vmatprep.subr.bf16.mxu1 %v2344_v9  ;;  %v1999_v20 = vcombine.low %v739_v31, %v740_v61  ;;  %v460_v35 = vor.u32 %v458_v13, %v457_v24  ;;  %v722_v37 = vor.u32 %v721_v26, %v455_v11  ;;  %v1089_v40 = vrot.slane %v868_v18, 1 }
 0x164   : > { %2127 = vmatprep.mubr.msk.bf16.mxu1 %vm261_vm0, %v1943_v30  ;;  %v2692_v41 = vsel %vm2601_vm6, %v707_v0, 0  ;;  %v867_v38 = vrot.slane %v865_v27, 7  ;;  %v1956_v58 = vcombine.low %v2622_v46, %v2638_v52  ;;  %v1957_v62 = vcombine.low %v2628_v50, %v739_v31  ;;  %v2349_v46 = vld [vmem:[%s3030_s1 + $0x80] sm:$0xff]  }
 0x165   : > { %2182 = vmatpush3.bf16.msra.mxu0 %v2343_v3  ;;  %2175 = vmatprep.mubr.msk.bf16.mxu0 %vm261_vm0, %v1999_v20  ;;  %v479_v42 = vsel %vm2529_vm3, 0, %v460_v35  ;;  %v1090_v43 = vor.u32 %v1089_v40, %v865_v27  ;;  %v741_v47 = vsel %vm2601_vm6, %v722_v37, 0  ;;  %v1955_v54 = vcombine.low %v2692_v41, %v2618_v45  ;;  %v2347_v45 = vld [vmem:[%s3030_s1 + $0x78] sm:$0xff]   ;;  %v2772_v3 = vld [vmem:[%s3034_s5] ss:$0 sm:$0xff] }
 0x166   : > { %2134 = vmatpush3.bf16.msra.mxu1 %v2344_v9  ;;  %v1944_v44 = vcombine.low %v478_v33, %v479_v42  ;;  %2191 = vmatprep.subr.bf16.mxu0 %v2345_v60  ;;  %v870_v63 = vor.u32 %v868_v18, %v867_v38  ;;  %v1958_v52 = vcombine.low %v740_v61, %v741_v47 }
 0x167   : > { %2143 = vmatprep.subr.bf16.mxu1 %v2346_v34  ;;  %v1092_v25 = vsel %vm2601_vm6, %v1090_v43, 0  ;;  %v1969_v0 = vcombine.low %v2589_v23, %v2634_v51  ;;  %v1970_v28 = vcombine.low %v2642_v53, %v2665_v10  ;;  %v1971_v2 = vcombine.low %v2671_v49, %v478_v33  ;;  %v2350_v23 = vld [vmem:[%s3030_s1 + $0x88] sm:$0xff]   ;;  %v2767_v53 = vld [vmem:[%s3033_s4] ss:$0 sm:$0xff] }
 0x168   : > { %v2000_v56 = vcombine.low %v741_v47, %v1092_v25  ;;  %v872_v50 = vsel %vm2529_vm3, 0, %v870_v63 }
 0x169   : > { %2128 = vmatmul.mubr.msk.bf16.gmra.mrb[4].mxu1 %vm261_vm0, %v1944_v44  ;;  %v2011_v1 = vcombine.low %v872_v50, %v2545_v29  ;;  %v1972_v29 = vcombine.low %v479_v42, %v872_v50 }
 0x16a   : > { %2135 = vmatprep.mubr.msk.bf16.mxu1 %vm261_vm0, %v1955_v54  ;;  %2176 = vmatmul.mubr.msk.bf16.gmra.mrb[4].mxu0 %vm261_vm0, %v2000_v56 }
 0x16b   : > { %2183 = vmatprep.mubr.msk.bf16.mxu0 %vm261_vm0, %v1942_v6 }
 0x171   : > { %2136 = vmatmul.mubr.msk.bf16.vlgmr.msra.gmra.mrb[0].mxu1 %vm261_vm0, %v1956_v58 }
 0x172   : > { %2139 = vmatprep.mubr.msk.bf16.mxu1 %vm261_vm0, %v1957_v62  ;;  %2144 = vmatpush3.bf16.msra.mxu1 %v2346_v34 }
 0x173   : > { %2184 = vmatmul.mubr.msk.bf16.vlgmr.msra.gmra.mrb[0].mxu0 %vm261_vm0, %v1943_v30  ;;  %2145 = vmatprep.subr.bf16.mxu1 %v2348_v22 }
 0x174   : > { %2192 = vmatpush3.bf16.msra.mxu0 %v2345_v60  ;;  %2187 = vmatprep.mubr.msk.bf16.mxu0 %vm261_vm0, %v1944_v44 }
 0x175   : > { %2193 = vmatprep.subr.bf16.mxu0 %v2347_v45 }
 0x176   : > { %2146 = vmatpush3.bf16.msra.mxu1 %v2348_v22 }
 0x177   : > { %2215 = vmatprep.subr.bf16.mxu1 %v2482_v57 }
 0x178   : > { %2194 = vmatpush3.bf16.msra.mxu0 %v2347_v45 }
 0x179   : > { %2140 = vmatmul.mubr.msk.bf16.gmra.mrb[4].mxu1 %vm261_vm0, %v1958_v52  ;;  %2203 = vmatprep.subr.bf16.mxu0 %v2349_v46 }
 0x17a   : > { %2147 = vmatprep.mubr.msk.bf16.mxu1 %vm261_vm0, %v1969_v0 }
 0x17b   : > { %2188 = vmatmul.mubr.msk.bf16.gmra.mrb[4].mxu0 %vm261_vm0, %v2011_v1 }
 0x17c   : > { %2195 = vmatprep.mubr.msk.bf16.mxu0 %vm261_vm0, %v2547_v55  ;;  %v2051_v55 = vpack.c.bf16 %v2579_v16, %v2560_v5 }
 0x181   : > { %2148 = vmatmul.mubr.msk.bf16.vlgmr.msra.gmra.mrb[0].mxu1 %vm261_vm0, %v1970_v28 }
 0x182   : > { %2151 = vmatprep.mubr.msk.bf16.mxu1 %vm261_vm0, %v1971_v2  ;;  %2217 = vmatpush3.bf16.msra.mxu1 %v2482_v57  ;;  %v2022_v57 = vcombine.low %v2655_v4, %v2375_v36 }
 0x183   : > { %2196 = vmatmul.mubr.msk.bf16.vlgmr.msra.gmra.mrb[0].mxu0 %vm261_vm0, %v2568_v12  ;;  %2216 = vmatprep.subr.bf16.mxu1 %v2492_v59  ;;  %v2052_v12 = vpack.c.bf16 %v2613_v21, %v2585_v19 }
 0x184   : > { %2204 = vmatpush3.bf16.msra.mxu0 %v2349_v46  ;;  %2199 = vmatprep.mubr.msk.bf16.mxu0 %vm261_vm0, %v2597_v32 }
 0x185   : > { %2205 = vmatprep.subr.bf16.mxu0 %v2350_v23 }
 0x186   : > { %2218 = vmatpush3.bf16.msra.mxu1 %v2492_v59  ;;  %v2033_v59 = vcombine.low %v1092_v25, %v2692_v41 }
 0x188   : > { %2206 = vmatpush3.bf16.msra.mxu0 %v2350_v23 }
 0x189   : > { %2152 = vmatmul.mubr.msk.bf16.gmra.mrb[4].mxu1 %vm261_vm0, %v1972_v29 }
 0x18a   : > { %2163 = vmatprep.mubr.msk.bf16.mxu1 %vm261_vm0, %v2051_v55 }
 0x18b   : > { %2200 = vmatmul.mubr.msk.bf16.gmra.mrb[4].mxu0 %vm261_vm0, %v2022_v57 }
 0x18c   : > { %2207 = vmatprep.mubr.msk.bf16.mxu0 %vm261_vm0, %v1956_v58 }
 0x193   : > { %2208 = vmatmul.mubr.msk.bf16.vlgmr.msra.gmra.mrb[0].mxu0 %vm261_vm0, %v1957_v62 }
 0x194   : > { %2211 = vmatprep.mubr.msk.bf16.mxu0 %vm261_vm0, %v1958_v52 }
 0x195   : > { %2164 = vmatmul.mubr.msk.bf16.vlgmr.msra.gmra.mrb[4].mxu1 %vm261_vm0, %v2052_v12 }
 0x19b   : > { %2212 = vmatmul.mubr.msk.bf16.gmra.mrb[4].mxu0 %vm261_vm0, %v2033_v59 }
 0x254   : > { %v2149_v36 = vpop.f32.mrb[0].mxu1 }
 0x255   : > { %v942_v5 = vpop.f32.mrb[1].mxu1 }
 0x256   : > { %v2150_v16 = vpop.f32.mrb[2].mxu1 }
 0x257   : > { %v945_v32 = vpop.f32.mrb[3].mxu1 }
 0x266   : > { %v2209_v51 = vpop.f32.mrb[0].mxu0 }
 0x267   : > { %v2219_v19 = vadd.f32 %v2209_v51, %v2149_v36  ;;  %v1444_v21 = vpop.f32.mrb[1].mxu0 }
 0x268   : > { %v2220_v4 = vadd.f32 %v1444_v21, %v942_v5  ;;  %v2210_v6 = vpop.f32.mrb[2].mxu0  ;;  %v2165_v7 = vpop.f32.mrb[4].mxu1 }
 0x269   : > { %v1492_v8 = vmul.f32 %v2219_v19, %v2767_v53  ;;  %v2221_v39 = vadd.f32 %v2210_v6, %v2150_v16  ;;  %v1447_v9 = vpop.f32.mrb[3].mxu0  ;;  %v1066_v48 = vpop.f32.mrb[5].mxu1 }
 0x26a   : > { %v1490_v10 = vmul.f32 %v2220_v4, %v2767_v53  ;;  %v2222_v11 = vadd.f32 %v1447_v9, %v945_v32  ;;  %v2166_v13 = vpop.f32.mrb[6].mxu1 }
 0x26b   : > { %v1507_v14 = vadd.f32 %v2772_v3, %v1492_v8  ;;  %v1493_v15 = vmul.f32 %v2221_v39, %v2767_v53  ;;  %v1069_v17 = vpop.f32.mrb[7].mxu1 }
 0x26c   : > { %v1505_v18 = vadd.f32 %v2772_v3, %v1490_v10  ;;  %v1491_v49 = vmul.f32 %v2222_v11, %v2767_v53 }
 0x26d   : > { %v1515_v24 = vmax.f32 %v1507_v14, 0.0  ;;  %v1508_v26 = vadd.f32 %v2772_v3, %v1493_v15 }
 0x26e   : > { %v1513_v27 = vmax.f32 %v1505_v18, 0.0  ;;  %v1506_v30 = vadd.f32 %v2772_v3, %v1491_v49  ;;  %v2213_v31 = vpop.f32.mrb[4].mxu0 }
 0x26f   : > { %v1523_v61 = vmul.f32 0.25, %v1515_v24  ;;  %v1530_v33 = vmul.f32 0.75, %v1515_v24  ;;  %v1516_v60 = vmax.f32 %v1508_v26, 0.0  ;;  %v2223_v34 = vadd.f32 %v2213_v31, %v2165_v7  ;;  %v1460_v20 = vpop.f32.mrb[5].mxu0 }
 0x270   : > { %v1521_v35 = vmul.f32 0.25, %v1513_v27  ;;  %v1528_v37 = vmul.f32 0.75, %v1513_v27  ;;  %v1514_v40 = vmax.f32 %v1506_v30, 0.0  ;;  %v2224_v41 = vadd.f32 %v1460_v20, %v1066_v48  ;;  %v2214_v42 = vpop.f32.mrb[6].mxu0 }
 0x271   : > { %v1524_v43 = vmul.f32 0.25, %v1516_v60  ;;  %v1531_v44 = vmul.f32 0.75, %v1516_v60  ;;  %v1496_v47 = vmul.f32 %v2223_v34, %v2767_v53  ;;  %v2225_v25 = vadd.f32 %v2214_v42, %v2166_v13  ;;  %v1463_v54 = vpop.f32.mrb[7].mxu0 }
 0x272   : > { %v1536_v56 = vadd.f32 %v1528_v37, %v1521_v35  ;;  %v1522_v38 = vmul.f32 0.25, %v1514_v40  ;;  %v1529_v58 = vmul.f32 0.75, %v1514_v40  ;;  %v1494_v22 = vmul.f32 %v2224_v41, %v2767_v53 }
 0x273   : > { %v1539_v62 = vadd.f32 %v1531_v44, %v1523_v61  ;;  %v2784_v45 = vadd.f32 %v1530_v33, %v1524_v43  ;;  %v1511_v63 = vadd.f32 %v2772_v3, %v1496_v47  ;;  %v1497_v46 = vmul.f32 %v2225_v25, %v2767_v53 }
 0x274   : > { %v1537_v50 = vadd.f32 %v1529_v58, %v1521_v35  ;;  %v2788_v52 = vadd.f32 %v1530_v33, %v1522_v38  ;;  %v2790_v0 = vadd.f32 %v1528_v37, %v1522_v38  ;;  %v2792_v1 = vadd.f32 %v1529_v58, %v1523_v61 }
 0x275   : > { %v1519_v28 = vmax.f32 %v1511_v63, 0.0  ;;  %v1509_v2 = vadd.f32 %v2772_v3, %v1494_v22  ;;  %v1512_v23 = vadd.f32 %v2772_v3, %v1497_v46  ;;  %v2226_v29 = vadd.f32 %v1463_v54, %v1069_v17 }
 0x276   : > { %v1561_v55 = vrot.slane %v1536_v56, 7  ;;  %v1586_v57 = vrot.slane %v1536_v56, 1  ;;  %v1587_v12 = vrot.slane %v1537_v50, 1  ;;  %v1619_v59 = vmul.f32 0.75, %v1536_v56 }
 0x277   : > { %v1527_v36 = vmul.f32 0.25, %v1519_v28  ;;  %v1534_v5 = vmul.f32 0.75, %v1519_v28  ;;  %v1517_v16 = vmax.f32 %v1509_v2, 0.0  ;;  %v1520_v32 = vmax.f32 %v1512_v23, 0.0 }
 0x278   : > { %v1495_v51 = vmul.f32 %v2226_v29, %v2767_v53  ;;  %v1578_v19 = vsel %vm469_vm1, %v1536_v56, %v1561_v55  ;;  %v1603_v21 = vsel %vm1602_vm7, %v1586_v57, %v1536_v56  ;;  %v1604_v4 = vsel %vm1602_vm7, %v1587_v12, %v1537_v50 }
 0x279   : > { %v1525_v6 = vmul.f32 0.25, %v1517_v16  ;;  %v1532_v7 = vmul.f32 0.75, %v1517_v16  ;;  %v1535_v8 = vmul.f32 0.75, %v1520_v32  ;;  %v1544_v39 = vmul.f32 0.25, %v1520_v32 }
 0x27a   : > { %v1510_v9 = vadd.f32 %v2772_v3, %v1495_v51  ;;  %v1611_v48 = vmul.f32 0.25, %v1578_v19  ;;  %v1620_v10 = vmul.f32 0.75, %v1537_v50  ;;  %v1635_v11 = vmul.f32 0.25, %v1603_v21 }
 0x27b   : > { %v2801_v13 = vadd.f32 %v1532_v7, %v1524_v43  ;;  %v2803_v14 = vadd.f32 %v1531_v44, %v1525_v6  ;;  %v2805_v53 = vadd.f32 %v1535_v8, %v1527_v36  ;;  %v2807_v15 = vadd.f32 %v1544_v39, %v1534_v5 }
 0x27c   : > { %v2809_v17 = vadd.f32 %v1544_v39, %v1535_v8  ;;  %v1518_v18 = vmax.f32 %v1510_v9, 0.0  ;;  %v2811_v49 = vadd.f32 %v1619_v59, %v1611_v48  ;;  %v1636_v24 = vmul.f32 0.25, %v1604_v4 }
 0x27d   : > { %v1643_v26 = vadd.f32 %v1635_v11, %v1619_v59  ;;  %v1562_v27 = vrot.slane %v1537_v50, 7  ;;  %v1564_v3 = vrot.slane %v1539_v62, 7  ;;  %v1588_v30 = vrot.slane %v2788_v52, 1 }
 0x27e   : > { %v1526_v31 = vmul.f32 0.25, %v1518_v18  ;;  %v1533_v61 = vmul.f32 0.75, %v1518_v18  ;;  %v1644_v33 = vadd.f32 %v1636_v24, %v1620_v10  ;;  %v1589_v60 = vrot.slane %v1539_v62, 1 }
 0x27f   : > { %v1579_v34 = vsel %vm469_vm1, %v1537_v50, %v1562_v27  ;;  %v1581_v20 = vsel %vm469_vm1, %v1539_v62, %v1564_v3  ;;  %v1605_v35 = vsel %vm1602_vm7, %v1588_v30, %v2788_v52  ;;  %v1621_v37 = vmul.f32 0.75, %v2788_v52 }
 0x280   : > { %v2819_v40 = vadd.f32 %v1533_v61, %v1525_v6  ;;  %v2821_v41 = vadd.f32 %v1534_v5, %v1526_v31  ;;  %v2823_v42 = vadd.f32 %v1532_v7, %v1526_v31  ;;  %v2825_v43 = vadd.f32 %v1533_v61, %v1527_v36 }
 0x281   : > { %v2293_v44 = vpack.i.bf16 %v1644_v33, %v1643_v26  ;;  %v1612_v47 = vmul.f32 0.25, %v1579_v34  ;;  %v1606_v25 = vsel %vm1602_vm7, %v1589_v60, %v1539_v62  ;;  %v1614_v54 = vmul.f32 0.25, %v1581_v20 }
 0x282   : > { %v1622_v56 = vmul.f32 0.75, %v1539_v62  ;;  %v1637_v38 = vmul.f32 0.25, %v1605_v35  ;;  %v1638_v58 = vmul.f32 0.25, %v1606_v25  ;;  %v1563_v22 = vrot.slane %v2788_v52, 7 }
 0x283   : > { %2294 = vrot.lane.b32.xlu0 %v2293_v44, %s2376_s29  ;;  %v2830_v63 = vadd.f32 %v1620_v10, %v1612_v47  ;;  %v1701_v46 = vrot.slane %v2792_v1, 7  ;;  %v1724_v50 = vrot.slane %v2790_v0, 1  ;;  %v1725_v28 = vrot.slane %v2792_v1, 1 }
 0x284   : > { %v2835_v2 = vadd.f32 %v1622_v56, %v1614_v54  ;;  %v1645_v23 = vadd.f32 %v1637_v38, %v1621_v37  ;;  %v1646_v29 = vadd.f32 %v1638_v58, %v1622_v56  ;;  %v1580_v62 = vsel %vm469_vm1, %v2788_v52, %v1563_v22 }
 0x285   : > { %v1613_v55 = vmul.f32 0.25, %v1580_v62  ;;  %v1717_v57 = vsel %vm469_vm1, %v2792_v1, %v1701_v46  ;;  %v1740_v12 = vsel %vm1602_vm7, %v1724_v50, %v2790_v0  ;;  %v1741_v59 = vsel %vm1602_vm7, %v1725_v28, %v2792_v1 }
 0x286   : > { %v2298_v36 = vpack.i.bf16 %v1646_v29, %v1645_v23  ;;  %v1749_v5 = vmul.f32 0.25, %v1717_v57  ;;  %v1756_v16 = vmul.f32 0.75, %v2790_v0  ;;  %v1757_v32 = vmul.f32 0.75, %v2792_v1 }
 0x287   : > { %v2847_v51 = vadd.f32 %v1621_v37, %v1613_v55  ;;  %v1772_v19 = vmul.f32 0.25, %v1740_v12  ;;  %v1773_v52 = vmul.f32 0.25, %v1741_v59  ;;  %v1700_v21 = vrot.slane %v2790_v0, 7 }
 0x288   : > { %2299 = vrot.lane.b32.xlu1 %v2298_v36, %s2376_s29  ;;  %v2851_v4 = vadd.f32 %v1757_v32, %v1749_v5  ;;  %v1702_v6 = vrot.slane %v2784_v45, 7  ;;  %v1726_v7 = vrot.slane %v2784_v45, 1  ;;  %v1727_v8 = vrot.slane %v2803_v14, 1 }
 0x289   : > { %v1780_v39 = vadd.f32 %v1772_v19, %v1756_v16  ;;  %v1781_v9 = vadd.f32 %v1773_v52, %v1757_v32  ;;  %v1716_v1 = vsel %vm469_vm1, %v2790_v0, %v1700_v21  ;;  %v1758_v48 = vmul.f32 0.75, %v2784_v45 }
 0x28a   : > { %v1748_v10 = vmul.f32 0.25, %v1716_v1  ;;  %v1718_v11 = vsel %vm469_vm1, %v2784_v45, %v1702_v6  ;;  %v1742_v18 = vsel %vm1602_vm7, %v1726_v7, %v2784_v45  ;;  %v1743_v24 = vsel %vm1602_vm7, %v1727_v8, %v2803_v14 }
 0x28b   : > { %v2303_v26 = vpack.i.bf16 %v1781_v9, %v1780_v39  ;;  %v1750_v27 = vmul.f32 0.25, %v1718_v11  ;;  %v1759_v3 = vmul.f32 0.75, %v2803_v14  ;;  %v1774_v30 = vmul.f32 0.25, %v1742_v18 }
 0x28c   : > { %v2866_v31 = vadd.f32 %v1756_v16, %v1748_v10  ;;  %v1775_v0 = vmul.f32 0.25, %v1743_v24  ;;  %v1703_v61 = vrot.slane %v2803_v14, 7  ;;  %v1728_v33 = vrot.slane %v2823_v42, 1 }
 0x28d   : > { %2304 = vrot.lane.b32.xlu0 %v2303_v26, %s2376_s29  ;;  %v2871_v60 = vadd.f32 %v1758_v48, %v1750_v27  ;;  %v1782_v45 = vadd.f32 %v1774_v30, %v1758_v48  ;;  %v1729_v34 = vrot.slane %v2825_v43, 1  ;;  %v2875_v20 = vmul.f32 0.75, %v2823_v42 }
 0x28e   : > { %v1783_v35 = vadd.f32 %v1775_v0, %v1759_v3  ;;  %v1719_v37 = vsel %vm469_vm1, %v2803_v14, %v1703_v61  ;;  %v1744_v44 = vsel %vm1602_vm7, %v1728_v33, %v2823_v42  ;;  %v2882_v47 = vmul.f32 0.75, %v2825_v43 }
 0x28f   : > { %v1751_v25 = vmul.f32 0.25, %v1719_v37  ;;  %v1745_v54 = vsel %vm1602_vm7, %v1729_v34, %v2825_v43  ;;  %v1776_v56 = vmul.f32 0.25, %v1744_v44  ;;  %v1565_v38 = vrot.slane %v2801_v13, 7 }
 0x290   : > { %v2308_v58 = vpack.i.bf16 %v1783_v35, %v1782_v45  ;;  %v1777_v22 = vmul.f32 0.25, %v1745_v54  ;;  %v1590_v46 = vrot.slane %v2801_v13, 1  ;;  %v1591_v50 = vrot.slane %v2819_v40, 1 }
 0x291   : > { %v2889_v14 = vadd.f32 %v1759_v3, %v1751_v25  ;;  %v1784_v28 = vadd.f32 %v1776_v56, %v2875_v20  ;;  %v1582_v23 = vsel %vm469_vm1, %v2801_v13, %v1565_v38  ;;  %v1623_v29 = vmul.f32 0.75, %v2801_v13 }
 0x292   : > { %2309 = vrot.lane.b32.xlu1 %v2308_v58, %s2376_s29  ;;  %v1785_v62 = vadd.f32 %v1777_v22, %v2882_v47  ;;  %v1607_v55 = vsel %vm1602_vm7, %v1590_v46, %v2801_v13  ;;  %v1608_v57 = vsel %vm1602_vm7, %v1591_v50, %v2819_v40  ;;  %v1615_v12 = vmul.f32 0.25, %v1582_v23 }
 0x293   : > { %v1624_v59 = vmul.f32 0.75, %v2819_v40  ;;  %v1639_v36 = vmul.f32 0.25, %v1607_v55  ;;  %v1640_v5 = vmul.f32 0.25, %v1608_v57  ;;  %v1566_v16 = vrot.slane %v2819_v40, 7 }
 0x294   : > { %v2323_v32 = vpack.i.bf16 %v1785_v62, %v1784_v28  ;;  %v2903_v19 = vadd.f32 %v1623_v29, %v1615_v12  ;;  %v1568_v52 = vrot.slane %v2805_v53, 7  ;;  %v1592_v21 = vrot.slane %v2821_v41, 1 }
 0x295   : > { %v1647_v6 = vadd.f32 %v1639_v36, %v1623_v29  ;;  %v1648_v7 = vadd.f32 %v1640_v5, %v1624_v59  ;;  %v1583_v13 = vsel %vm469_vm1, %v2819_v40, %v1566_v16  ;;  %v1593_v8 = vrot.slane %v2805_v53, 1 }
 0x296   : > { %2324 = vrot.lane.b32.xlu0 %v2323_v32, %s2376_s29  ;;  %v1616_v39 = vmul.f32 0.25, %v1583_v13  ;;  %v1585_v9 = vsel %vm469_vm1, %v2805_v53, %v1568_v52  ;;  %v1609_v1 = vsel %vm1602_vm7, %v1592_v21, %v2821_v41  ;;  %v1625_v48 = vmul.f32 0.75, %v2821_v41 }
 0x297   : > { %v2313_v10 = vpack.i.bf16 %v1648_v7, %v1647_v6  ;;  %v1610_v11 = vsel %vm1602_vm7, %v1593_v8, %v2805_v53  ;;  %v1618_v18 = vmul.f32 0.25, %v1585_v9  ;;  %v1626_v40 = vmul.f32 0.75, %v2805_v53 }
 0x298   : > { %v2919_v24 = vadd.f32 %v1624_v59, %v1616_v39  ;;  %v1641_v26 = vmul.f32 0.25, %v1609_v1  ;;  %v1642_v27 = vmul.f32 0.25, %v1610_v11  ;;  %v1567_v3 = vrot.slane %v2821_v41, 7 }
 0x299   : > { %2314 = vrot.lane.b32.xlu1 %v2313_v10, %s2376_s29  ;;  %v2923_v30 = vadd.f32 %v1626_v40, %v1618_v18  ;;  %v1730_v0 = vrot.slane %v2807_v15, 1  ;;  %v1731_v61 = vrot.slane %v2809_v17, 1  ;;  %v1762_v33 = vmul.f32 0.75, %v2807_v15 }
 0x29a   : > { %v1649_v45 = vadd.f32 %v1641_v26, %v1625_v48  ;;  %v1650_v34 = vadd.f32 %v1642_v27, %v1626_v40  ;;  %v1584_v53 = vsel %vm469_vm1, %v2821_v41, %v1567_v3  ;;  %v1763_v35 = vmul.f32 0.75, %v2809_v17 }
 0x29b   : > { %v1617_v37 = vmul.f32 0.25, %v1584_v53  ;;  %v1746_v44 = vsel %vm1602_vm7, %v1730_v0, %v2807_v15  ;;  %v1747_v25 = vsel %vm1602_vm7, %v1731_v61, %v2809_v17  ;;  %v1705_v54 = vrot.slane %v2825_v43, 7 }
 0x29c   : > { %v2318_v56 = vpack.i.bf16 %v1650_v34, %v1649_v45  ;;  %v1778_v38 = vmul.f32 0.25, %v1746_v44  ;;  %v1779_v58 = vmul.f32 0.25, %v1747_v25  ;;  %v1704_v22 = vrot.slane %v2823_v42, 7 }
 0x29d   : > { %v2937_v46 = vadd.f32 %v1625_v48, %v1617_v37  ;;  %v1721_v41 = vsel %vm469_vm1, %v2825_v43, %v1705_v54  ;;  %v1706_v50 = vrot.slane %v2807_v15, 7  ;;  %v1707_v28 = vrot.slane %v2809_v17, 7 }
 0x29e   : > { %2319 = vrot.lane.b32.xlu1 %v2318_v56, %s2376_s29  ;;  %v1786_v23 = vadd.f32 %v1778_v38, %v1762_v33  ;;  %v1787_v29 = vadd.f32 %v1779_v58, %v1763_v35  ;;  %v1753_v62 = vmul.f32 0.25, %v1721_v41  ;;  %v1720_v55 = vsel %vm469_vm1, %v2823_v42, %v1704_v22 }
 0x29f   : > { %v1752_v57 = vmul.f32 0.25, %v1720_v55  ;;  %v1722_v12 = vsel %vm469_vm1, %v2807_v15, %v1706_v50  ;;  %v1723_v43 = vsel %vm469_vm1, %v2809_v17, %v1707_v28 }
 0x2a0   : > { %v2328_v59 = vpack.i.bf16 %v1787_v29, %v1786_v23  ;;  %v1769_v36 = vadd.f32 %v2882_v47, %v1753_v62  ;;  %v1754_v5 = vmul.f32 0.25, %v1722_v12  ;;  %v1755_v16 = vmul.f32 0.25, %v1723_v43 }
 0x2a1   : > { %v1768_v32 = vadd.f32 %v2875_v20, %v1752_v57 }
 0x2a2   : > { %2329 = vrot.lane.b32.xlu1 %v2328_v59, %s2376_s29  ;;  %v2953_v52 = vadd.f32 %v1762_v33, %v1754_v5  ;;  %v2955_v42 = vadd.f32 %v1763_v35, %v1755_v16 }
 0x2f5   : > { %v2295_v21 = vpop.permute.xlu0 %2294 }
 0x2f6   : > { %v2297_v6 = vunpack.i.h.bf16 %v2295_v21  ;;  %v2296_v15 = vunpack.i.l.bf16 %v2295_v21 }
 0x2f8   : > { %v1684_v17 = vsel %vm1683_vm8, %v2811_v49, %v2296_v15  ;;  %v1685_v20 = vsel %vm1683_vm8, %v2830_v63, %v2297_v6 }
 0x2f9   : > { %v1828_v47 = vpack.c.bf16 %v1684_v17, %v1684_v17  ;;  %v1830_v7 = vpack.c.bf16 %v1685_v20, %v1685_v20 }
 0x2fa   : > { %v2300_v13 = vpop.permute.xlu1 %2299 }
 0x2fb   : > { %1845 = vst.msk [vmem:[%s2962_s8] sm:$0xf] %vm1844_vm9, %v1828_v47  ;;  %1847 = vst.msk [vmem:[%s2962_s8 + $0x8] sm:$0xf] %vm1844_vm9, %v1830_v7  ;;  %v2302_v8 = vunpack.i.h.bf16 %v2300_v13  ;;  %v2301_v39 = vunpack.i.l.bf16 %v2300_v13 }
 0x2fd   : > { %v1687_v9 = vsel %vm1683_vm8, %v2835_v2, %v2302_v8  ;;  %v1686_v49 = vsel %vm1683_vm8, %v2847_v51, %v2301_v39 }
 0x2fe   : > { %v1834_v1 = vpack.c.bf16 %v1687_v9, %v1687_v9  ;;  %v1832_v48 = vpack.c.bf16 %v1686_v49, %v1686_v49 }
 0x2ff   : > { %v2305_v63 = vpop.permute.xlu0 %2304 }
 0x300   : > { %1851 = vst.msk [vmem:[%s2962_s8 + $0x18] sm:$0xf] %vm1844_vm9, %v1834_v1  ;;  %1849 = vst.msk [vmem:[%s2962_s8 + $0x10] sm:$0xf] %vm1844_vm9, %v1832_v48  ;;  %v2307_v10 = vunpack.i.h.bf16 %v2305_v63  ;;  %v2306_v11 = vunpack.i.l.bf16 %v2305_v63 }
 0x302   : > { %v1821_v18 = vsel %vm1683_vm8, %v2851_v4, %v2307_v10  ;;  %v1820_v40 = vsel %vm1683_vm8, %v2866_v31, %v2306_v11 }
 0x303   : > { %v1831_v2 = vpack.c.bf16 %v1821_v18, %v1821_v18  ;;  %v1829_v26 = vpack.c.bf16 %v1820_v40, %v1820_v40 }
 0x304   : > { %v2310_v51 = vpop.permute.xlu1 %2309 }
 0x305   : > { %1848 = vst.msk [vmem:[%s2962_s8 + $0xc] sm:$0xf] %vm1844_vm9, %v1831_v2  ;;  %1846 = vst.msk [vmem:[%s2962_s8 + $0x4] sm:$0xf] %vm1844_vm9, %v1829_v26  ;;  %v2312_v27 = vunpack.i.h.bf16 %v2310_v51  ;;  %v2311_v3 = vunpack.i.l.bf16 %v2310_v51 }
 0x307   : > { %v1822_v0 = vsel %vm1683_vm8, %v2871_v60, %v2311_v3  ;;  %v1823_v4 = vsel %vm1683_vm8, %v2889_v14, %v2312_v27 }
 0x308   : > { %v1833_v61 = vpack.c.bf16 %v1822_v0, %v1822_v0  ;;  %v1835_v31 = vpack.c.bf16 %v1823_v4, %v1823_v4  ;;  %v2325_v33 = vpop.permute.xlu0 %2324 }
 0x309   : > { %v2327_v45 = vunpack.i.h.bf16 %v2325_v33  ;;  %v2326_v34 = vunpack.i.l.bf16 %v2325_v33 }
 0x30a   : > { %1850 = vst.msk [vmem:[%s2962_s8 + $0x14] sm:$0xf] %vm1844_vm9, %v1833_v61  ;;  %1852 = vst.msk [vmem:[%s2962_s8 + $0x1c] sm:$0xf] %vm1844_vm9, %v1835_v31 }
 0x30b   : > { %v1825_v53 = vsel %vm1683_vm8, %v1769_v36, %v2327_v45  ;;  %v1824_v60 = vsel %vm1683_vm8, %v1768_v32, %v2326_v34  ;;  %v2315_v35 = vpop.permute.xlu1 %2314 }
 0x30c   : > { %v1839_v37 = vpack.c.bf16 %v1825_v53, %v1825_v53  ;;  %v1837_v44 = vpack.c.bf16 %v1824_v60, %v1824_v60  ;;  %v2317_v14 = vunpack.i.h.bf16 %v2315_v35  ;;  %v2316_v25 = vunpack.i.l.bf16 %v2315_v35 }
 0x30e   : > { %1856 = vst.msk [vmem:[%s2962_s8 + $0x2c] sm:$0xf] %vm1844_vm9, %v1839_v37  ;;  %1854 = vst.msk [vmem:[%s2962_s8 + $0x24] sm:$0xf] %vm1844_vm9, %v1837_v44  ;;  %v1688_v54 = vsel %vm1683_vm8, %v2903_v19, %v2316_v25  ;;  %v1689_v56 = vsel %vm1683_vm8, %v2919_v24, %v2317_v14 }
 0x30f   : > { %v1836_v38 = vpack.c.bf16 %v1688_v54, %v1688_v54  ;;  %v1838_v58 = vpack.c.bf16 %v1689_v56, %v1689_v56 }
 0x310   : > { %v2320_v22 = vpop.permute.xlu1 %2319 }
 0x311   : > { %1853 = vst.msk [vmem:[%s2962_s8 + $0x20] sm:$0xf] %vm1844_vm9, %v1836_v38  ;;  %1855 = vst.msk [vmem:[%s2962_s8 + $0x28] sm:$0xf] %vm1844_vm9, %v1838_v58  ;;  %v2322_v41 = vunpack.i.h.bf16 %v2320_v22  ;;  %v2321_v50 = vunpack.i.l.bf16 %v2320_v22 }
 0x313   : > { %v1691_v28 = vsel %vm1683_vm8, %v2923_v30, %v2322_v41  ;;  %v1690_v19 = vsel %vm1683_vm8, %v2937_v46, %v2321_v50 }
 0x314   : > { %v1842_v23 = vpack.c.bf16 %v1691_v28, %v1691_v28  ;;  %v1840_v24 = vpack.c.bf16 %v1690_v19, %v1690_v19  ;;  %v2330_v29 = vpop.permute.xlu1 %2329 }
 0x315   : > { %v2332_v62 = vunpack.i.h.bf16 %v2330_v29  ;;  %v2331_v55 = vunpack.i.l.bf16 %v2330_v29 }
 0x316   : > { %1859 = vst.msk [vmem:[%s2962_s8 + $0x38] sm:$0xf] %vm1844_vm9, %v1842_v23  ;;  %1857 = vst.msk [vmem:[%s2962_s8 + $0x30] sm:$0xf] %vm1844_vm9, %v1840_v24 }
 0x317   : > { %v1827_v57 = vsel %vm1683_vm8, %v2955_v42, %v2332_v62  ;;  %v1826_v12 = vsel %vm1683_vm8, %v2953_v52, %v2331_v55 }
 0x318   : > { %v1843_v43 = vpack.c.bf16 %v1827_v57, %v1827_v57  ;;  %v1841_v30 = vpack.c.bf16 %v1826_v12, %v1826_v12 }
 0x31a   : > { %1860 = vst.msk [vmem:[%s2962_s8 + $0x3c] sm:$0xf] %vm1844_vm9, %v1843_v43  ;;  %1858 = vst.msk [vmem:[%s2962_s8 + $0x34] sm:$0xf] %vm1844_vm9, %v1841_v30 }
 0x31b PF: > { %s16_s21 = sadd.s32 1, %s2373_s21  }
 0x31c   : > { %p13_p4 = scmp.ge.s32.totalorder %s16_s21, 4  }
 0x31e   :  { %15 = sbr.rel (!%p13_p4) target bundleno = 1 (0x1), region = 82 }

// kernel: setr_up_head_forward.3
= control target key start
LH: loop header
LB: loop body
LE: loop exit
PB: predicated region body
PF: predicated region fallthrough
CT: control target
= control target key end

     0   :  { %s6203_s27 = smov 0   ;;  %s8940_s0 = inlined_call_operand.vmem [shape: bf16[2,16,16,16], index: 0, kind: input, shape index: {}]   ;;  %s8941_s1 = inlined_call_operand.vmem [shape: bf16[9,16,16], index: 1, kind: input, shape index: {}]   ;;  %s8942_s2 = inlined_call_operand.vmem [shape: f32[1,16], index: 2, kind: input, shape index: {}]   ;;  %s8943_s3 = inlined_call_operand.vmem [shape: f32[1,16], index: 3, kind: input, shape index: {}]   ;;  %s8944_s4 = inlined_call_operand.vmem [shape: f32[1,16], index: 4, kind: input, shape index: {}]   ;;  %s8945_s5 = inlined_call_operand.vmem [shape: f32[1,16], index: 5, kind: input, shape index: {}]   ;;  %s8946_s6 = inlined_call_operand.vmem [shape: bf16[16,4], index: 6, kind: input, shape index: {}]   ;;  %s8947_s7 = inlined_call_operand.vmem [shape: f32[1,4], index: 7, kind: input, shape index: {}]   ;;  %s8948_s8 = inlined_call_operand.vmem [shape: f32[2,16,2,16,8], index: 8, kind: output, shape index: {}]  }
   0x1 LB: > { %s4924_s2 = sadd.s32 4294967295, %s6154_s27   ;;  %p4928_p0 = scmp.ge.s32.totalorder %s6154_s27, 1  ;;  %s6154_s27 = sphi %s6203_s27, %s18_s27  }
   0x2   : > { %p262_p1 = scmp.lt.s32.totalorder %s6154_s27, 3 }
   0x4   : > { %p263_p2 = pnand %p4928_p0, %p262_p1 }
   0x6   : > { %266 = sbr.rel (%p263_p2) target bundleno = 1250 (0x4e2), region = 52 }
   0xd   : > { %v6214_v0 = vld [vmem:[%s8941_s1 + $0x10] sm:$0xff]   ;;  %vm572_vm0 = vcmask 130048   ;;  %v6156_v1 = vmov 0   ;;  %vm1029_vm1 = vcmask 1047552   ;;  %vm1030_vm2 = vsmask.f32 7424 }
   0xe   : > { %v981_v2 = vrot.slane %v6156_v1, 1  ;;  %v6122_v3 = vld [vmem:[%s8941_s1 + $0x18] sm:$0xff]   ;;  %5413 = vmatprep.mubr.bf16.mxu1 %v6156_v1  ;;  %5479 = vmatprep.subr.bf16.mxu0 %v6214_v0  ;;  %vm6222_vm3 = vmand %vm1029_vm1, %vm1030_vm2  ;;  %p296_p3 = scmp.lt.s32.totalorder %s4924_s2, 1  ;;  %v6258_v17 = vld [vmem:[%s8941_s1 + $0x20] sm:$0xff]   ;;  %vm542_vm4 = vcmask 1040384   ;;  %vm2930_vm7 = vcmask 1046528  }
   0xf   : > { %5480 = vmatpush3.bf16.msra.mxu0 %v6214_v0  ;;  %vm543_vm5 = vsmask.f32 256  ;;  %v6141_v55 = vld [vmem:[%s8941_s1 + $0x8] sm:$0xff]   ;;  %s6157_s15 = smov 4   ;;  %vm3777_vm8 = vcmask 31744   ;;  %vm4804_vm9 = vcmask 64512  }
  0x10   : > { %v1032_v5 = vsel %vm6222_vm3, %v981_v2, 0  ;;  %5513 = vmatprep.subr.bf16.mxu0 %v6122_v3  ;;  %s9273_s2 = smov (!%p296_p3, %s4924_s2), 1  ;;  %vm6316_vm6 = vmand %vm542_vm4, %vm543_vm5  ;;  %5411 = vmatprep.subr.bf16.mxu1 %v6141_v55  ;;  %v6348_v62 = vld [vmem:[%s8941_s1 + $0x28] sm:$0xff]  }
  0x11   : > { %5481 = vmatprep.mubr.msk.bf16.mxu0 %vm572_vm0, %v1032_v5  ;;  %s5188_s9 = sshll.u32 %s9273_s2, 7  ;;  %5412 = vmatpush3.bf16.msra.mxu1 %v6141_v55  ;;  %s5189_s16 = sshll.u32 %s9273_s2, 9 }
  0x12   : > { %s6236_s12 = scalar_lea.vmem %s8940_s0, %s5188_s9  ;;  %s8543_s19 = scalar_lea.vmem %s8948_s8, %s5189_s16 }
  0x13   : > { %v6239_v6 = vld [vmem:[%s6236_s12] sm:$0xff]   ;;  %v6242_v7 = vld [vmem:[%s6236_s12 + $0x8] sm:$0xff]   ;;  %v6249_v12 = vld [vmem:[%s6236_s12 + $0x10] sm:$0xff]  }
  0x14   : > { %v422_v8 = vshrl.u32 %v6239_v6, 16  ;;  %v425_v9 = vshll.u32 %v6239_v6, 16  ;;  %v429_v10 = vshrl.u32 %v6242_v7, 16  ;;  %v432_v11 = vshll.u32 %v6242_v7, 16  ;;  %v6252_v13 = vld [vmem:[%s6236_s12 + $0x18] sm:$0xff]   ;;  %v6264_v22 = vld [vmem:[%s6236_s12 + $0x20] sm:$0xff]   ;;  %5414 = vmatmul.mubr.msk.bf16.vlgmr.msra.gmra.mrb[0].mxu1 %vm572_vm0, %v6239_v6 }
  0x15   : > { %v439_v16 = vshll.u32 %v6249_v12, 16  ;;  %v436_v19 = vshrl.u32 %v6249_v12, 16  ;;  %v443_v20 = vshrl.u32 %v6252_v13, 16  ;;  %v446_v21 = vshll.u32 %v6252_v13, 16  ;;  %v6267_v25 = vld [vmem:[%s6236_s12 + $0x28] sm:$0xff]   ;;  %v6291_v37 = vld [vmem:[%s6236_s12 + $0x30] sm:$0xff]   ;;  %5417 = vmatprep.mubr.msk.bf16.mxu1 %vm572_vm0, %v6242_v7 }
  0x16   : > { %v983_v14 = vrot.slane %v425_v9, 1  ;;  %v985_v15 = vrot.slane %v432_v11, 1  ;;  %v453_v30 = vshll.u32 %v6264_v22, 16  ;;  %v460_v32 = vshll.u32 %v6267_v25, 16 }
  0x17   : > { %v987_v24 = vrot.slane %v439_v16, 1  ;;  %v989_v27 = vrot.slane %v446_v21, 1  ;;  %v450_v33 = vshrl.u32 %v6264_v22, 16  ;;  %v457_v36 = vshrl.u32 %v6267_v25, 16 }
  0x18   : > { %v984_v18 = vor.u32 %v983_v14, %v422_v8  ;;  %v986_v23 = vor.u32 %v985_v15, %v429_v10  ;;  %v991_v35 = vrot.slane %v453_v30, 1  ;;  %v993_v39 = vrot.slane %v460_v32, 1 }
  0x19   : > { %v988_v29 = vor.u32 %v987_v24, %v436_v19  ;;  %v990_v31 = vor.u32 %v989_v27, %v443_v20  ;;  %v467_v41 = vshll.u32 %v6291_v37, 16  ;;  %v464_v44 = vshrl.u32 %v6291_v37, 16 }
  0x1a   : > { %v6271_v26 = vsel %vm6222_vm3, %v984_v18, 0  ;;  %v6277_v28 = vsel %vm6222_vm3, %v986_v23, 0  ;;  %v992_v40 = vor.u32 %v991_v35, %v450_v33  ;;  %v994_v42 = vor.u32 %v993_v39, %v457_v36 }
  0x1b   : > { %5482 = vmatmul.mubr.msk.bf16.vlgmr.msra.gmra.mrb[0].mxu0 %vm572_vm0, %v6271_v26  ;;  %v6287_v34 = vsel %vm6222_vm3, %v988_v29, 0  ;;  %v6295_v38 = vsel %vm6222_vm3, %v990_v31, 0  ;;  %v995_v45 = vrot.slane %v467_v41, 1  ;;  %v424_v47 = vrot.slane %v422_v8, 7  ;;  %v6363_v8 = vld [vmem:[%s6236_s12 + $0x38] sm:$0xff]   ;;  %v6398_v29 = vld [vmem:[%s6236_s12 + $0x50] sm:$0xff]  }
  0x1c   : > { %5514 = vmatpush3.bf16.msra.mxu0 %v6122_v3  ;;  %5485 = vmatprep.mubr.msk.bf16.mxu0 %vm572_vm0, %v6277_v28  ;;  %v6304_v43 = vsel %vm6222_vm3, %v992_v40, 0  ;;  %v6309_v46 = vsel %vm6222_vm3, %v994_v42, 0  ;;  %v431_v51 = vrot.slane %v429_v10, 7  ;;  %v438_v54 = vrot.slane %v436_v19, 7  ;;  %v6416_v42 = vld [vmem:[%s6236_s12 + $0x58] sm:$0xff]  }
  0x1d   : > { %5547 = vmatprep.subr.bf16.mxu0 %v6258_v17  ;;  %v996_v48 = vor.u32 %v995_v45, %v464_v44  ;;  %v427_v49 = vor.u32 %v425_v9, %v424_v47  ;;  %v445_v59 = vrot.slane %v443_v20, 7  ;;  %v452_v61 = vrot.slane %v450_v33, 7  ;;  %5418 = vmatmul.mubr.msk.bf16.gmra.mrb[4].mxu1 %vm572_vm0, %v6249_v12 }
  0x1e   : > { %v434_v56 = vor.u32 %v432_v11, %v431_v51  ;;  %v441_v57 = vor.u32 %v439_v16, %v438_v54  ;;  %v459_v5 = vrot.slane %v457_v36, 7  ;;  %v466_v10 = vrot.slane %v464_v44, 7  ;;  %v6372_v11 = vld [vmem:[%s6236_s12 + $0x40] sm:$0xff]   ;;  %5421 = vmatprep.mubr.msk.bf16.mxu1 %vm572_vm0, %v6252_v13 }
  0x1f   : > { %v6322_v52 = vsel %vm6222_vm3, %v996_v48, 0  ;;  %v6326_v53 = vsel %vm6316_vm6, 0, %v427_v49  ;;  %v448_v63 = vor.u32 %v446_v21, %v445_v59  ;;  %v455_v2 = vor.u32 %v453_v30, %v452_v61  ;;  %v6388_v21 = vld [vmem:[%s6236_s12 + $0x48] sm:$0xff]   ;;  %v6426_v48 = vld [vmem:[%s6236_s12 + $0x60] sm:$0xff]  }
  0x20   : > { %v6337_v58 = vsel %vm6316_vm6, 0, %v434_v56  ;;  %v6343_v60 = vsel %vm6316_vm6, 0, %v441_v57  ;;  %v462_v14 = vor.u32 %v460_v32, %v459_v5  ;;  %v471_v15 = vshrl.u32 %v6363_v8, 16 }
  0x21   : > { %v6360_v3 = vsel %vm6316_vm6, 0, %v448_v63  ;;  %v6369_v9 = vsel %vm6316_vm6, 0, %v455_v2  ;;  %v469_v16 = vor.u32 %v467_v41, %v466_v10  ;;  %v474_v20 = vshll.u32 %v6363_v8, 16  ;;  %v6446_v10 = vld [vmem:[%s6236_s12 + $0x68] sm:$0xff]  }
  0x22   : > { %v6384_v18 = vsel %vm6316_vm6, 0, %v462_v14  ;;  %v473_v19 = vrot.slane %v471_v15, 7  ;;  %v481_v27 = vshll.u32 %v6372_v11, 16  ;;  %v485_v31 = vshrl.u32 %v6388_v21, 16 }
  0x23   : > { %5486 = vmatmul.mubr.msk.bf16.gmra.mrb[4].mxu0 %vm572_vm0, %v6287_v34  ;;  %v6394_v23 = vsel %vm6316_vm6, 0, %v469_v16  ;;  %v997_v32 = vrot.slane %v474_v20, 1  ;;  %v492_v35 = vshrl.u32 %v6398_v29, 16  ;;  %v488_v41 = vshll.u32 %v6388_v21, 16 }
  0x24   : > { %5489 = vmatprep.mubr.msk.bf16.mxu0 %vm572_vm0, %v6295_v38  ;;  %v476_v30 = vor.u32 %v474_v20, %v473_v19  ;;  %v487_v40 = vrot.slane %v485_v31, 7  ;;  %v495_v47 = vshll.u32 %v6398_v29, 16  ;;  %v999_v49 = vrot.slane %v481_v27, 1 }
  0x25   : > { %5422 = vmatmul.mubr.msk.bf16.gmra.mrb[8].mxu1 %vm572_vm0, %v6264_v22  ;;  %v6408_v36 = vor.u32 %v997_v32, %v471_v15  ;;  %v494_v45 = vrot.slane %v492_v35, 7  ;;  %v499_v54 = vshrl.u32 %v6416_v42, 16  ;;  %v1001_v55 = vrot.slane %v488_v41, 1 }
  0x26   : > { %5425 = vmatprep.mubr.msk.bf16.mxu1 %vm572_vm0, %v6267_v25  ;;  %v6412_v39 = vsel %vm6316_vm6, 0, %v476_v30  ;;  %v490_v51 = vor.u32 %v488_v41, %v487_v40  ;;  %v506_v57 = vshrl.u32 %v6426_v48, 16  ;;  %v502_v5 = vshll.u32 %v6416_v42, 16 }
  0x27   : > { %v497_v56 = vor.u32 %v495_v47, %v494_v45  ;;  %v6438_v61 = vor.u32 %v1001_v55, %v485_v31  ;;  %v501_v2 = vrot.slane %v499_v54, 7  ;;  %v509_v16 = vshll.u32 %v6426_v48, 16 }
  0x28   : > { %v6442_v63 = vsel %vm6316_vm6, 0, %v490_v51  ;;  %v508_v15 = vrot.slane %v506_v57, 7  ;;  %v1003_v19 = vrot.slane %v495_v47, 1  ;;  %v516_v45 = vshll.u32 %v6446_v10, 16  ;;  %v6476_v47 = vld [vmem:[%s6236_s12 + $0x78] sm:$0xff]  }
  0x29   : > { %v6452_v14 = vsel %vm6316_vm6, 0, %v497_v56  ;;  %v504_v20 = vor.u32 %v502_v5, %v501_v2  ;;  %v1304_v56 = vshrl.u32 %v6476_v47, 16 }
  0x2a   : > { %v511_v30 = vor.u32 %v509_v16, %v508_v15  ;;  %v6466_v32 = vor.u32 %v1003_v19, %v492_v35  ;;  %v1009_v2 = vrot.slane %v516_v45, 1 }
  0x2b   : > { %5490 = vmatmul.mubr.msk.bf16.gmra.mrb[8].mxu0 %vm572_vm0, %v6304_v43  ;;  %v6472_v40 = vsel %vm6316_vm6, 0, %v504_v20 }
  0x2c   : > { %5493 = vmatprep.mubr.msk.bf16.mxu0 %vm572_vm0, %v6309_v46 }
  0x2d   : > { %5426 = vmatmul.mubr.msk.bf16.gmra.mrb[12].mxu1 %vm572_vm0, %v6291_v37 }
  0x2e   : > { %5429 = vmatprep.mubr.msk.bf16.mxu1 %vm572_vm0, %v6363_v8 }
  0x33   : > { %5494 = vmatmul.mubr.msk.bf16.gmra.mrb[12].mxu0 %vm572_vm0, %v6322_v52 }
  0x34   : > { %5515 = vmatprep.mubr.msk.bf16.mxu0 %vm572_vm0, %v6326_v53 }
  0x35   : > { %5430 = vmatmul.mubr.msk.bf16.gmra.mrb[16].mxu1 %vm572_vm0, %v6372_v11 }
  0x36   : > { %5433 = vmatprep.mubr.msk.bf16.mxu1 %vm572_vm0, %v6388_v21 }
  0x3b   : > { %5516 = vmatmul.mubr.msk.bf16.vlgmr.msra.gmra.mrb[0].mxu0 %vm572_vm0, %v6337_v58 }
  0x3c   : > { %5548 = vmatpush3.bf16.msra.mxu0 %v6258_v17  ;;  %5519 = vmatprep.mubr.msk.bf16.mxu0 %vm572_vm0, %v6343_v60  ;;  %v478_v17 = vshrl.u32 %v6372_v11, 16 }
  0x3d   : > { %5581 = vmatprep.subr.bf16.mxu0 %v6348_v62  ;;  %5434 = vmatmul.mubr.msk.bf16.gmra.mrb[20].mxu1 %vm572_vm0, %v6398_v29 }
  0x3e   : > { %v480_v24 = vrot.slane %v478_v17, 7  ;;  %v6436_v59 = vor.u32 %v999_v49, %v478_v17  ;;  %v6456_v17 = vld [vmem:[%s6236_s12 + $0x70] sm:$0xff]   ;;  %v6482_v49 = vsel %vm6316_vm6, 0, %v511_v30  ;;  %5437 = vmatprep.mubr.msk.bf16.mxu1 %vm572_vm0, %v6416_v42 }
  0x3f   : > { %v520_v31 = vshrl.u32 %v6456_v17, 16  ;;  %v523_v51 = vshll.u32 %v6456_v17, 16 }
  0x40   : > { %v483_v33 = vor.u32 %v481_v27, %v480_v24  ;;  %v513_v24 = vshrl.u32 %v6446_v10, 16  ;;  %v1005_v27 = vrot.slane %v502_v5, 1 }
  0x41   : > { %v522_v35 = vrot.slane %v520_v31, 7 }
  0x42   : > { %v6422_v44 = vsel %vm6316_vm6, 0, %v483_v33  ;;  %v6468_v33 = vor.u32 %v1005_v27, %v499_v54  ;;  %v515_v41 = vrot.slane %v513_v24, 7  ;;  %v1007_v54 = vrot.slane %v509_v16, 1 }
  0x43   : > { %5520 = vmatmul.mubr.msk.bf16.gmra.mrb[4].mxu0 %vm572_vm0, %v6360_v3  ;;  %v525_v5 = vor.u32 %v523_v51, %v522_v35  ;;  %v6498_v19 = vor.u32 %v1009_v2, %v513_v24  ;;  %v1306_v27 = vrot.slane %v1304_v56, 7  ;;  %v1307_v16 = vshll.u32 %v6476_v47, 16  ;;  %v6143_v35 = vld [vmem:[%s8941_s1] sm:$0xff]  }
  0x44   : > { %5523 = vmatprep.mubr.msk.bf16.mxu0 %vm572_vm0, %v6369_v9  ;;  %v518_v55 = vor.u32 %v516_v45, %v515_v41  ;;  %v6496_v15 = vor.u32 %v1007_v54, %v506_v57  ;;  %v417_v54 = vrot.slane %v6156_v1, 7  ;;  %5445 = vmatprep.subr.bf16.mxu1 %v6143_v35  ;;  %v6145_v2 = vld [vmem:[%s8941_s1 + $0x40] sm:$0xff]  }
  0x45   : > { %5438 = vmatmul.mubr.msk.bf16.gmra.mrb[24].mxu1 %vm572_vm0, %v6426_v48  ;;  %v6509_v30 = vsel %vm6316_vm6, 0, %v525_v5  ;;  %v1309_v57 = vor.u32 %v1307_v16, %v1306_v27  ;;  %v1721_v24 = vrot.slane %v1307_v16, 1 }
  0x46   : > { %v6502_v20 = vsel %vm6316_vm6, 0, %v518_v55  ;;  %5441 = vmatprep.mubr.msk.bf16.mxu1 %vm572_vm0, %v6446_v10  ;;  %5446 = vmatpush3.bf16.msra.mxu1 %v6143_v35  ;;  %v545_v55 = vsel %vm6316_vm6, 0, %v417_v54  ;;  %v6897_v35 = vld [vmem:[%s8945_s5] ss:$0 sm:$0xff] }
  0x47   : > { %v6517_v41 = vor.u32 %v1721_v24, %v1304_v56  ;;  %v6521_v45 = vsel %vm6316_vm6, 0, %v1309_v57  ;;  %5853 = vmatprep.subr.bf16.mxu1 %v6214_v0  ;;  %v6142_v56 = vld [vmem:[%s8941_s1 + $0x30] sm:$0xff]   ;;  %v6891_v24 = vld [vmem:[%s8944_s4] ss:$0 sm:$0xff] }
  0x4b   : > { %5524 = vmatmul.mubr.msk.bf16.gmra.mrb[8].mxu0 %vm572_vm0, %v6384_v18 }
  0x4c   : > { %5527 = vmatprep.mubr.msk.bf16.mxu0 %vm572_vm0, %v6394_v23 }
  0x4d   : > { %5442 = vmatmul.mubr.msk.bf16.gmra.mrb[28].mxu1 %vm572_vm0, %v6456_v17 }
  0x4e   : > { %5447 = vmatprep.mubr.msk.bf16.mxu1 %vm572_vm0, %v545_v55 }
  0x53   : > { %5528 = vmatmul.mubr.msk.bf16.gmra.mrb[12].mxu0 %vm572_vm0, %v6412_v39 }
  0x54   : > { %5531 = vmatprep.mubr.msk.bf16.mxu0 %vm572_vm0, %v6422_v44 }
  0x55   : > { %5448 = vmatmul.mubr.msk.bf16.vlgmr.msra.gmra.mrb[0].mxu1 %vm572_vm0, %v6326_v53  ;;  %v6619_v53 = vsel %vm6222_vm3, %v6438_v61, 0  ;;  %v1011_v61 = vrot.slane %v523_v51, 1 }
  0x56   : > { %5451 = vmatprep.mubr.msk.bf16.mxu1 %vm572_vm0, %v6337_v58  ;;  %5854 = vmatpush3.bf16.msra.mxu1 %v6214_v0  ;;  %v6601_v0 = vsel %vm6222_vm3, %v6408_v36, 0  ;;  %v6640_v36 = vsel %vm6222_vm3, %v6468_v33, 0 }
  0x57   : > { %v1012_v33 = vor.u32 %v1011_v61, %v520_v31  ;;  %v6697_v31 = vsel %vm6222_vm3, %v6517_v41, 0 }
  0x59   : > { %v6674_v51 = vsel %vm6222_vm3, %v1012_v33, 0 }
  0x5b   : > { %5532 = vmatmul.mubr.msk.bf16.gmra.mrb[16].mxu0 %vm572_vm0, %v6442_v63 }
  0x5c   : > { %5535 = vmatprep.mubr.msk.bf16.mxu0 %vm572_vm0, %v6452_v14 }
  0x5d   : > { %5452 = vmatmul.mubr.msk.bf16.gmra.mrb[4].mxu1 %vm572_vm0, %v6343_v60 }
  0x5e   : > { %5455 = vmatprep.mubr.msk.bf16.mxu1 %vm572_vm0, %v6360_v3 }
  0x63   : > { %5536 = vmatmul.mubr.msk.bf16.gmra.mrb[20].mxu0 %vm572_vm0, %v6472_v40 }
  0x64   : > { %5539 = vmatprep.mubr.msk.bf16.mxu0 %vm572_vm0, %v6482_v49 }
  0x65   : > { %5456 = vmatmul.mubr.msk.bf16.gmra.mrb[8].mxu1 %vm572_vm0, %v6369_v9 }
  0x66   : > { %5459 = vmatprep.mubr.msk.bf16.mxu1 %vm572_vm0, %v6384_v18 }
  0x6b   : > { %5540 = vmatmul.mubr.msk.bf16.gmra.mrb[24].mxu0 %vm572_vm0, %v6502_v20 }
  0x6c   : > { %5543 = vmatprep.mubr.msk.bf16.mxu0 %vm572_vm0, %v6509_v30 }
  0x6d   : > { %5460 = vmatmul.mubr.msk.bf16.gmra.mrb[12].mxu1 %vm572_vm0, %v6394_v23 }
  0x6e   : > { %5463 = vmatprep.mubr.msk.bf16.mxu1 %vm572_vm0, %v6412_v39 }
  0x73   : > { %5544 = vmatmul.mubr.msk.bf16.gmra.mrb[28].mxu0 %vm572_vm0, %v6521_v45 }
  0x74   : > { %5549 = vmatprep.mubr.msk.bf16.mxu0 %vm572_vm0, %v6239_v6  ;;  %v6614_v6 = vsel %vm6222_vm3, %v6436_v59, 0  ;;  %v6653_v59 = vsel %vm6222_vm3, %v6496_v15, 0 }
  0x75   : > { %5464 = vmatmul.mubr.msk.bf16.gmra.mrb[16].mxu1 %vm572_vm0, %v6422_v44 }
  0x76   : > { %5467 = vmatprep.mubr.msk.bf16.mxu1 %vm572_vm0, %v6442_v63 }
  0x7b   : > { %5550 = vmatmul.mubr.msk.bf16.vlgmr.msra.gmra.mrb[0].mxu0 %vm572_vm0, %v6242_v7 }
  0x7c   : > { %5582 = vmatpush3.bf16.msra.mxu0 %v6348_v62  ;;  %5553 = vmatprep.mubr.msk.bf16.mxu0 %vm572_vm0, %v6249_v12  ;;  %v6144_v62 = vld [vmem:[%s8941_s1 + $0x38] sm:$0xff]  }
  0x7d   : > { %5615 = vmatprep.subr.bf16.mxu0 %v6142_v56  ;;  %5468 = vmatmul.mubr.msk.bf16.gmra.mrb[20].mxu1 %vm572_vm0, %v6452_v14 }
  0x7e   : > { %5471 = vmatprep.mubr.msk.bf16.mxu1 %vm572_vm0, %v6472_v40 }
  0x83   : > { %5554 = vmatmul.mubr.msk.bf16.gmra.mrb[4].mxu0 %vm572_vm0, %v6252_v13 }
  0x84   : > { %5557 = vmatprep.mubr.msk.bf16.mxu0 %vm572_vm0, %v6264_v22 }
  0x85   : > { %5472 = vmatmul.mubr.msk.bf16.gmra.mrb[24].mxu1 %vm572_vm0, %v6482_v49 }
  0x86   : > { %5475 = vmatprep.mubr.msk.bf16.mxu1 %vm572_vm0, %v6502_v20 }
  0x8b   : > { %5558 = vmatmul.mubr.msk.bf16.gmra.mrb[8].mxu0 %vm572_vm0, %v6267_v25 }
  0x8c   : > { %5561 = vmatprep.mubr.msk.bf16.mxu0 %vm572_vm0, %v6291_v37 }
  0x8d   : > { %5476 = vmatmul.mubr.msk.bf16.gmra.mrb[28].mxu1 %vm572_vm0, %v6509_v30 }
  0x8e   : > { %5497 = vmatprep.mubr.msk.bf16.mxu1 %vm572_vm0, %v6601_v0 }
  0x93   : > { %5562 = vmatmul.mubr.msk.bf16.gmra.mrb[12].mxu0 %vm572_vm0, %v6363_v8 }
  0x94   : > { %5565 = vmatprep.mubr.msk.bf16.mxu0 %vm572_vm0, %v6372_v11 }
  0x95   : > { %5498 = vmatmul.mubr.msk.bf16.vlgmr.msra.gmra.mrb[16].mxu1 %vm572_vm0, %v6614_v6 }
  0x96   : > { %5501 = vmatprep.mubr.msk.bf16.mxu1 %vm572_vm0, %v6619_v53 }
  0x9b   : > { %5566 = vmatmul.mubr.msk.bf16.gmra.mrb[16].mxu0 %vm572_vm0, %v6388_v21 }
  0x9c   : > { %5569 = vmatprep.mubr.msk.bf16.mxu0 %vm572_vm0, %v6398_v29 }
  0xa3   : > { %5570 = vmatmul.mubr.msk.bf16.gmra.mrb[20].mxu0 %vm572_vm0, %v6416_v42 }
  0xa4   : > { %5573 = vmatprep.mubr.msk.bf16.mxu0 %vm572_vm0, %v6426_v48 }
  0xab   : > { %5574 = vmatmul.mubr.msk.bf16.gmra.mrb[24].mxu0 %vm572_vm0, %v6446_v10 }
  0xac   : > { %5577 = vmatprep.mubr.msk.bf16.mxu0 %vm572_vm0, %v6456_v17 }
  0xb3   : > { %5578 = vmatmul.mubr.msk.bf16.gmra.mrb[28].mxu0 %vm572_vm0, %v6476_v47 }
  0xb4   : > { %5583 = vmatprep.mubr.msk.bf16.mxu0 %vm572_vm0, %v6271_v26  ;;  %v6635_v26 = vsel %vm6222_vm3, %v6466_v32, 0  ;;  %v6660_v32 = vsel %vm6222_vm3, %v6498_v19, 0 }
  0xb5   : > { %5502 = vmatmul.mubr.msk.bf16.gmra.mrb[20].mxu1 %vm572_vm0, %v6635_v26 }
  0xb6   : > { %5505 = vmatprep.mubr.msk.bf16.mxu1 %vm572_vm0, %v6640_v36 }
  0xbb   : > { %5584 = vmatmul.mubr.msk.bf16.vlgmr.msra.gmra.mrb[0].mxu0 %vm572_vm0, %v6277_v28 }
  0xbc   : > { %5616 = vmatpush3.bf16.msra.mxu0 %v6142_v56  ;;  %5587 = vmatprep.mubr.msk.bf16.mxu0 %vm572_vm0, %v6287_v34 }
  0xbd   : > { %5649 = vmatprep.subr.bf16.mxu0 %v6144_v62  ;;  %5506 = vmatmul.mubr.msk.bf16.gmra.mrb[24].mxu1 %vm572_vm0, %v6653_v59 }
  0xbe   : > { %5509 = vmatprep.mubr.msk.bf16.mxu1 %vm572_vm0, %v6660_v32 }
  0xc3   : > { %5588 = vmatmul.mubr.msk.bf16.gmra.mrb[4].mxu0 %vm572_vm0, %v6295_v38 }
  0xc4   : > { %5591 = vmatprep.mubr.msk.bf16.mxu0 %vm572_vm0, %v6304_v43 }
  0xc5   : > { %5510 = vmatmul.mubr.msk.bf16.gmra.mrb[28].mxu1 %vm572_vm0, %v6674_v51 }
  0xcb   : > { %5592 = vmatmul.mubr.msk.bf16.gmra.mrb[8].mxu0 %vm572_vm0, %v6309_v46 }
  0xcc   : > { %5595 = vmatprep.mubr.msk.bf16.mxu0 %vm572_vm0, %v6322_v52 }
  0xd3   : > { %5596 = vmatmul.mubr.msk.bf16.gmra.mrb[12].mxu0 %vm572_vm0, %v6601_v0 }
  0xd4   : > { %5599 = vmatprep.mubr.msk.bf16.mxu0 %vm572_vm0, %v6614_v6 }
  0xdb   : > { %5600 = vmatmul.mubr.msk.bf16.gmra.mrb[16].mxu0 %vm572_vm0, %v6619_v53 }
  0xdc   : > { %5603 = vmatprep.mubr.msk.bf16.mxu0 %vm572_vm0, %v6635_v26 }
  0xe3   : > { %5604 = vmatmul.mubr.msk.bf16.gmra.mrb[20].mxu0 %vm572_vm0, %v6640_v36 }
  0xe4   : > { %5607 = vmatprep.mubr.msk.bf16.mxu0 %vm572_vm0, %v6653_v59 }
  0xeb   : > { %5608 = vmatmul.mubr.msk.bf16.gmra.mrb[24].mxu0 %vm572_vm0, %v6660_v32 }
  0xec   : > { %5611 = vmatprep.mubr.msk.bf16.mxu0 %vm572_vm0, %v6674_v51 }
  0xf3   : > { %5612 = vmatmul.mubr.msk.bf16.gmra.mrb[28].mxu0 %vm572_vm0, %v6697_v31 }
  0xf4   : > { %5617 = vmatprep.mubr.msk.bf16.mxu0 %vm572_vm0, %v6337_v58  ;;  %v6728_v58 = vcombine.low %v6156_v1, %v6156_v1 }
  0xfb   : > { %5618 = vmatmul.mubr.msk.bf16.vlgmr.msra.gmra.mrb[0].mxu0 %vm572_vm0, %v6343_v60  ;;  %v1934_v60 = vshrl.u32 %v6728_v58, 16 }
  0xfc   : > { %5650 = vmatpush3.bf16.msra.mxu0 %v6144_v62  ;;  %5621 = vmatprep.mubr.msk.bf16.mxu0 %vm572_vm0, %v6360_v3 }
  0xfd   : > { %5683 = vmatprep.subr.bf16.mxu0 %v6145_v2  ;;  %v1936_v3 = vrot.slane %v1934_v60, 7 }
 0x103   : > { %5622 = vmatmul.mubr.msk.bf16.gmra.mrb[4].mxu0 %vm572_vm0, %v6369_v9  ;;  %v1937_v9 = vshll.u32 %v6728_v58, 16 }
 0x104   : > { %5625 = vmatprep.mubr.msk.bf16.mxu0 %vm572_vm0, %v6384_v18 }
 0x105   : > { %v1939_v1 = vor.u32 %v1937_v9, %v1936_v3  ;;  %v2351_v27 = vrot.slane %v1937_v9, 1 }
 0x107   : > { %v1941_v18 = vsel %vm6316_vm6, 0, %v1939_v1  ;;  %v2352_v16 = vor.u32 %v2351_v27, %v1934_v60 }
 0x10b   : > { %5626 = vmatmul.mubr.msk.bf16.gmra.mrb[8].mxu0 %vm572_vm0, %v6394_v23  ;;  %v6750_v23 = vld [vmem:[%s8946_s6] sm:$0xff]  }
 0x10c   : > { %5629 = vmatprep.mubr.msk.bf16.mxu0 %vm572_vm0, %v6412_v39  ;;  %5717 = vmatprep.subr.bf16.mxu1 %v6750_v23 }
 0x10d   : > { %5718 = vmatpush3.bf16.msra.mxu1 %v6750_v23 }
 0x10e   : > { %5751 = vmatprep.subr.bf16.mxu1 %v6750_v23 }
 0x113   : > { %5630 = vmatmul.mubr.msk.bf16.gmra.mrb[12].mxu0 %vm572_vm0, %v6422_v44 }
 0x114   : > { %5633 = vmatprep.mubr.msk.bf16.mxu0 %vm572_vm0, %v6442_v63 }
 0x11b   : > { %5634 = vmatmul.mubr.msk.bf16.gmra.mrb[16].mxu0 %vm572_vm0, %v6452_v14 }
 0x11c   : > { %5637 = vmatprep.mubr.msk.bf16.mxu0 %vm572_vm0, %v6472_v40 }
 0x123   : > { %5638 = vmatmul.mubr.msk.bf16.gmra.mrb[20].mxu0 %vm572_vm0, %v6482_v49 }
 0x124   : > { %5641 = vmatprep.mubr.msk.bf16.mxu0 %vm572_vm0, %v6502_v20 }
 0x12b   : > { %5642 = vmatmul.mubr.msk.bf16.gmra.mrb[24].mxu0 %vm572_vm0, %v6509_v30  ;;  %v2354_v30 = vsel %vm6222_vm3, %v2352_v16, 0 }
 0x12c   : > { %5645 = vmatprep.mubr.msk.bf16.mxu0 %vm572_vm0, %v6521_v45 }
 0x133   : > { %5646 = vmatmul.mubr.msk.bf16.gmra.mrb[28].mxu0 %vm572_vm0, %v1941_v18 }
 0x134   : > { %5651 = vmatprep.mubr.msk.bf16.mxu0 %vm572_vm0, %v6242_v7  ;;  %v6767_v7 = vpop.f32.mrb[0].mxu1 }
 0x135   : > { %v6771_v50 = vpop.f32.mrb[1].mxu1 }
 0x13b   : > { %5652 = vmatmul.mubr.msk.bf16.vlgmr.msra.gmra.mrb[0].mxu0 %vm572_vm0, %v6249_v12  ;;  %v6773_v12 = vpop.f32.mrb[2].mxu1 }
 0x13c   : > { %5684 = vmatpush3.bf16.msra.mxu0 %v6145_v2  ;;  %5655 = vmatprep.mubr.msk.bf16.mxu0 %vm572_vm0, %v6252_v13  ;;  %v6775_v39 = vpop.f32.mrb[3].mxu1 }
 0x13d   : > { %v6779_v13 = vpop.f32.mrb[4].mxu1 }
 0x143   : > { %5656 = vmatmul.mubr.msk.bf16.gmra.mrb[4].mxu0 %vm572_vm0, %v6264_v22  ;;  %v6783_v22 = vpop.f32.mrb[5].mxu1 }
 0x144   : > { %5659 = vmatprep.mubr.msk.bf16.mxu0 %vm572_vm0, %v6267_v25  ;;  %v6785_v25 = vpop.f32.mrb[6].mxu1 }
 0x14b   : > { %5660 = vmatmul.mubr.msk.bf16.gmra.mrb[8].mxu0 %vm572_vm0, %v6291_v37  ;;  %v6787_v37 = vpop.f32.mrb[7].mxu1 }
 0x14c   : > { %5663 = vmatprep.mubr.msk.bf16.mxu0 %vm572_vm0, %v6363_v8  ;;  %v6791_v8 = vpop.f32.mrb[8].mxu1 }
 0x153   : > { %5664 = vmatmul.mubr.msk.bf16.gmra.mrb[12].mxu0 %vm572_vm0, %v6372_v11  ;;  %v6795_v11 = vpop.f32.mrb[9].mxu1 }
 0x154   : > { %5667 = vmatprep.mubr.msk.bf16.mxu0 %vm572_vm0, %v6388_v21  ;;  %v6797_v44 = vpop.f32.mrb[10].mxu1 }
 0x155   : > { %v6799_v63 = vpop.f32.mrb[11].mxu1 }
 0x156   : > { %v6803_v21 = vpop.f32.mrb[12].mxu1 }
 0x15b   : > { %5668 = vmatmul.mubr.msk.bf16.gmra.mrb[16].mxu0 %vm572_vm0, %v6398_v29  ;;  %v6807_v29 = vpop.f32.mrb[13].mxu1 }
 0x15c   : > { %5671 = vmatprep.mubr.msk.bf16.mxu0 %vm572_vm0, %v6416_v42  ;;  %v6809_v14 = vpop.f32.mrb[14].mxu1 }
 0x15d   : > { %v6811_v40 = vpop.f32.mrb[15].mxu1 }
 0x163   : > { %5672 = vmatmul.mubr.msk.bf16.gmra.mrb[20].mxu0 %vm572_vm0, %v6426_v48 }
 0x164   : > { %5675 = vmatprep.mubr.msk.bf16.mxu0 %vm572_vm0, %v6446_v10 }
 0x168   : > { %v6831_v42 = vpop.f32.mrb[16].mxu1 }
 0x16b   : > { %5676 = vmatmul.mubr.msk.bf16.gmra.mrb[24].mxu0 %vm572_vm0, %v6456_v17 }
 0x16c   : > { %5679 = vmatprep.mubr.msk.bf16.mxu0 %vm572_vm0, %v6476_v47 }
 0x173   : > { %5680 = vmatmul.mubr.msk.bf16.gmra.mrb[28].mxu0 %vm572_vm0, %v6728_v58 }
 0x174   : > { %5685 = vmatprep.mubr.msk.bf16.mxu0 %vm572_vm0, %v6277_v28  ;;  %v6835_v28 = vpop.f32.mrb[17].mxu1 }
 0x17b   : > { %5686 = vmatmul.mubr.msk.bf16.vlgmr.msra.gmra.mrb[0].mxu0 %vm572_vm0, %v6287_v34  ;;  %v6837_v34 = vpop.f32.mrb[18].mxu1 }
 0x17c   : > { %5689 = vmatprep.mubr.msk.bf16.mxu0 %vm572_vm0, %v6295_v38  ;;  %v6839_v48 = vpop.f32.mrb[19].mxu1 }
 0x183   : > { %5690 = vmatmul.mubr.msk.bf16.gmra.mrb[4].mxu0 %vm572_vm0, %v6304_v43 }
 0x184   : > { %5693 = vmatprep.mubr.msk.bf16.mxu0 %vm572_vm0, %v6309_v46 }
 0x188   : > { %v6843_v38 = vpop.f32.mrb[20].mxu1 }
 0x189   : > { %v6847_v43 = vpop.f32.mrb[21].mxu1 }
 0x18a   : > { %v6849_v46 = vpop.f32.mrb[22].mxu1 }
 0x18b   : > { %5694 = vmatmul.mubr.msk.bf16.gmra.mrb[8].mxu0 %vm572_vm0, %v6322_v52  ;;  %v6851_v52 = vpop.f32.mrb[23].mxu1 }
 0x18c   : > { %5697 = vmatprep.mubr.msk.bf16.mxu0 %vm572_vm0, %v6601_v0 }
 0x190   : > { %v6855_v10 = vpop.f32.mrb[24].mxu1 }
 0x191   : > { %v6859_v17 = vpop.f32.mrb[25].mxu1 }
 0x192   : > { %v6861_v47 = vpop.f32.mrb[26].mxu1 }
 0x193   : > { %5698 = vmatmul.mubr.msk.bf16.gmra.mrb[12].mxu0 %vm572_vm0, %v6614_v6  ;;  %v6863_v49 = vpop.f32.mrb[27].mxu1 }
 0x194   : > { %5701 = vmatprep.mubr.msk.bf16.mxu0 %vm572_vm0, %v6619_v53 }
 0x198   : > { %v6867_v5 = vpop.f32.mrb[28].mxu1 }
 0x199   : > { %v6871_v15 = vpop.f32.mrb[29].mxu1 }
 0x19a   : > { %v6873_v19 = vpop.f32.mrb[30].mxu1 }
 0x19b   : > { %5702 = vmatmul.mubr.msk.bf16.gmra.mrb[16].mxu0 %vm572_vm0, %v6635_v26  ;;  %v6875_v20 = vpop.f32.mrb[31].mxu1 }
 0x19c   : > { %5705 = vmatprep.mubr.msk.bf16.mxu0 %vm572_vm0, %v6640_v36 }
 0x1a3   : > { %5706 = vmatmul.mubr.msk.bf16.gmra.mrb[20].mxu0 %vm572_vm0, %v6653_v59 }
 0x1a4   : > { %5709 = vmatprep.mubr.msk.bf16.mxu0 %vm572_vm0, %v6660_v32 }
 0x1ab   : > { %5710 = vmatmul.mubr.msk.bf16.gmra.mrb[24].mxu0 %vm572_vm0, %v6674_v51 }
 0x1ac   : > { %5713 = vmatprep.mubr.msk.bf16.mxu0 %vm572_vm0, %v6697_v31 }
 0x1b3   : > { %5714 = vmatmul.mubr.msk.bf16.gmra.mrb[28].mxu0 %vm572_vm0, %v2354_v30 }
 0x24e   : > { %v5687_v57 = vpop.f32.mrb[0].mxu0 }
 0x24f   : > { %v5855_v41 = vadd.f32 %v5687_v57, %v6767_v7  ;;  %v2401_v45 = vpop.f32.mrb[1].mxu0 }
 0x250   : > { %v5856_v54 = vadd.f32 %v2401_v45, %v6771_v50  ;;  %v5688_v4 = vpop.f32.mrb[2].mxu0 }
 0x251   : > { %v2569_v55 = vmul.f32 %v5855_v41, %v6891_v24  ;;  %v5857_v56 = vadd.f32 %v5688_v4, %v6773_v12  ;;  %v2404_v0 = vpop.f32.mrb[3].mxu0 }
 0x252   : > { %v2567_v6 = vmul.f32 %v5856_v54, %v6891_v24  ;;  %v5858_v53 = vadd.f32 %v2404_v0, %v6775_v39 }
 0x253   : > { %v2608_v62 = vadd.f32 %v6897_v35, %v2569_v55  ;;  %v2570_v26 = vmul.f32 %v5857_v56, %v6891_v24 }
 0x254   : > { %v2606_v36 = vadd.f32 %v6897_v35, %v2567_v6  ;;  %v2568_v59 = vmul.f32 %v5858_v53, %v6891_v24 }
 0x255   : > { %v2640_v61 = vmax.f32 %v2608_v62, 0.0  ;;  %v2609_v32 = vadd.f32 %v6897_v35, %v2570_v26 }
 0x256   : > { %v2638_v33 = vmax.f32 %v2606_v36, 0.0  ;;  %v2607_v51 = vadd.f32 %v6897_v35, %v2568_v59  ;;  %v5691_v31 = vpop.f32.mrb[4].mxu0 }
 0x257   : > { %v2675_v2 = vmul.f32 0.25, %v2640_v61  ;;  %v2705_v58 = vmul.f32 0.75, %v2640_v61  ;;  %v2641_v60 = vmax.f32 %v2609_v32, 0.0  ;;  %v5859_v3 = vadd.f32 %v5691_v31, %v6779_v13  ;;  %v2417_v9 = vpop.f32.mrb[5].mxu0 }
 0x258   : > { %v2673_v1 = vmul.f32 0.25, %v2638_v33  ;;  %v2703_v18 = vmul.f32 0.75, %v2638_v33  ;;  %v2639_v7 = vmax.f32 %v2607_v51, 0.0  ;;  %v5860_v50 = vadd.f32 %v2417_v9, %v6783_v22  ;;  %v5692_v12 = vpop.f32.mrb[6].mxu0 }
 0x259   : > { %v6912_v39 = vmul.f32 0.25, %v2641_v60  ;;  %v6914_v27 = vmul.f32 0.75, %v2641_v60  ;;  %v2573_v16 = vmul.f32 %v5859_v3, %v6891_v24  ;;  %v5861_v30 = vadd.f32 %v5692_v12, %v6785_v25  ;;  %v2420_v57 = vpop.f32.mrb[7].mxu0 }
 0x25a   : > { %v6918_v41 = vadd.f32 %v2703_v18, %v2673_v1  ;;  %v2737_v45 = vadd.f32 %v2705_v58, %v2673_v1  ;;  %v6920_v13 = vadd.f32 %v2703_v18, %v2675_v2  ;;  %v2674_v54 = vmul.f32 0.25, %v2639_v7 }
 0x25b   : > { %v2704_v4 = vmul.f32 0.75, %v2639_v7  ;;  %v2612_v55 = vadd.f32 %v6897_v35, %v2573_v16  ;;  %v2571_v22 = vmul.f32 %v5860_v50, %v6891_v24  ;;  %v2574_v56 = vmul.f32 %v5861_v30, %v6891_v24 }
 0x25c   : > { %9050 = vst [vmem:[#allocation2_spill] sm:$0xff] %v6920_v13  ;;  %v2837_v0 = vrot.slane %v2737_v45, 7  ;;  %v2934_v6 = vrot.slane %v2737_v45, 1  ;;  %v6925_v53 = vmul.f32 0.75, %v2737_v45  ;;  %v2738_v25 = vadd.f32 %v6914_v27, %v2674_v54 }
 0x25d   : > { %v6928_v62 = vadd.f32 %v2704_v4, %v2674_v54  ;;  %v6931_v26 = vadd.f32 %v2704_v4, %v6912_v39  ;;  %v2644_v36 = vmax.f32 %v2612_v55, 0.0  ;;  %v2610_v59 = vadd.f32 %v6897_v35, %v2571_v22 }
 0x25e   : > { %9051 = vst [vmem:[#allocation3_spill] sm:$0xff] %v6925_v53  ;;  %v2915_v61 = vsel %vm542_vm4, %v2737_v45, %v2837_v0  ;;  %v2838_v32 = vrot.slane %v2738_v25, 7  ;;  %v2935_v33 = vrot.slane %v2738_v25, 1  ;;  %v3062_v51 = vmul.f32 0.75, %v2738_v25  ;;  %v5695_v31 = vpop.f32.mrb[8].mxu0 }
 0x25f   : > { %9052 = vst [vmem:[#allocation4_spill] sm:$0xff] %v6931_v26  ;;  %v3029_v60 = vmul.f32 0.25, %v2915_v61  ;;  %v6935_v3 = vmul.f32 0.25, %v2644_v36  ;;  %v6937_v9 = vmul.f32 0.75, %v2644_v36  ;;  %v2642_v1 = vmax.f32 %v2610_v59, 0.0  ;;  %v2433_v18 = vpop.f32.mrb[9].mxu0 }
 0x260   : > { %v2839_v7 = vsel %vm542_vm4, %v2837_v0, %v2838_v32  ;;  %v6941_v50 = vsel %vm2930_vm7, %v2934_v6, %v2935_v33  ;;  %v3012_v12 = vsel %vm2930_vm7, %v2935_v33, %v2738_v25  ;;  %v2613_v16 = vadd.f32 %v6897_v35, %v2574_v56  ;;  %v5696_v30 = vpop.f32.mrb[10].mxu0 }
 0x261   : > { %9053 = vst [vmem:[#allocation5_spill] sm:$0xff] %v6941_v50  ;;  %v6946_v45 = vadd.f32 %v6925_v53, %v3029_v60  ;;  %v3030_v54 = vmul.f32 0.25, %v2839_v7  ;;  %v3126_v4 = vmul.f32 0.25, %v3012_v12  ;;  %v2677_v55 = vmul.f32 0.25, %v2642_v1  ;;  %v2436_v22 = vpop.f32.mrb[11].mxu0 }
 0x262   : > { %v2707_v36 = vmul.f32 0.75, %v2642_v1  ;;  %v2645_v59 = vmax.f32 %v2613_v16, 0.0  ;;  %v5862_v61 = vadd.f32 %v2420_v57, %v6787_v37  ;;  %v5863_v0 = vadd.f32 %v5695_v31, %v6791_v8 }
 0x263   : > { %v6950_v6 = vadd.f32 %v3062_v51, %v3030_v54  ;;  %v6952_v32 = vadd.f32 %v3126_v4, %v3062_v51  ;;  %v6955_v56 = vadd.f32 %v6937_v9, %v2677_v55  ;;  %v6957_v25 = vadd.f32 %v2705_v58, %v2677_v55 }
 0x264   : > { %v6959_v33 = vadd.f32 %v2707_v36, %v2675_v2  ;;  %v6962_v60 = vadd.f32 %v2707_v36, %v6935_v3  ;;  %v6964_v1 = vmul.f32 0.25, %v2645_v59  ;;  %v6966_v7 = vmul.f32 0.75, %v2645_v59 }
 0x265   : > { %9054 = vst [vmem:[#allocation6_spill] sm:$0xff] %v6952_v32  ;;  %v3845_v37 = vrot.slane %v6957_v25, 7  ;;  %v3941_v8 = vrot.slane %v6957_v25, 1  ;;  %v6971_v57 = vmul.f32 0.75, %v6957_v25  ;;  %v2572_v51 = vmul.f32 %v5862_v61, %v6891_v24 }
 0x266   : > { %9055 = vst [vmem:[#allocation7_spill] sm:$0xff] %v6962_v60  ;;  %v2577_v58 = vmul.f32 %v5863_v0, %v6891_v24  ;;  %v5864_v2 = vadd.f32 %v2433_v18, %v6795_v11  ;;  %v5865_v31 = vadd.f32 %v5696_v30, %v6797_v44  ;;  %v5866_v12 = vadd.f32 %v2436_v22, %v6799_v63  ;;  %v5699_v16 = vpop.f32.mrb[12].mxu0 }
 0x267   : > { %9056 = vst [vmem:[#allocation8_spill] sm:$0xff] %v6971_v57  ;;  %v3923_v54 = vsel %vm542_vm4, %v6957_v25, %v3845_v37  ;;  %v2611_v4 = vadd.f32 %v6897_v35, %v2572_v51  ;;  %v5867_v55 = vadd.f32 %v5699_v16, %v6803_v21  ;;  %v2449_v36 = vpop.f32.mrb[13].mxu0 }
 0x268   : > { %v4036_v61 = vmul.f32 0.25, %v3923_v54  ;;  %v2616_v0 = vadd.f32 %v6897_v35, %v2577_v58  ;;  %v2575_v11 = vmul.f32 %v5864_v2, %v6891_v24  ;;  %v2578_v44 = vmul.f32 %v5865_v31, %v6891_v24  ;;  %v6986_v18 = vpop.f32.mrb[14].mxu0 }
 0x269   : > { %v2643_v63 = vmax.f32 %v2611_v4, 0.0  ;;  %v2576_v30 = vmul.f32 %v5866_v12, %v6891_v24  ;;  %v2581_v22 = vmul.f32 %v5867_v55, %v6891_v24  ;;  %v5868_v25 = vadd.f32 %v2449_v36, %v6807_v29  ;;  %v6991_v21 = vpop.f32.mrb[15].mxu0 }
 0x26a   : > { %v6994_v51 = vadd.f32 %v6971_v57, %v4036_v61  ;;  %v2648_v16 = vmax.f32 %v2616_v0, 0.0  ;;  %v2614_v58 = vadd.f32 %v6897_v35, %v2575_v11  ;;  %v2617_v2 = vadd.f32 %v6897_v35, %v2578_v44 }
 0x26b   : > { %v2678_v31 = vmul.f32 0.25, %v2643_v63  ;;  %v2708_v54 = vmul.f32 0.75, %v2643_v63  ;;  %v2615_v4 = vadd.f32 %v6897_v35, %v2576_v30  ;;  %v2620_v12 = vadd.f32 %v6897_v35, %v2581_v22 }
 0x26c   : > { %9057 = vst [vmem:[#allocation9_spill] sm:$0xff] %v6994_v51  ;;  %v7000_v59 = vmul.f32 0.25, %v2648_v16  ;;  %v7002_v55 = vmul.f32 0.75, %v2648_v16  ;;  %v2646_v29 = vmax.f32 %v2614_v58, 0.0  ;;  %v2649_v36 = vmax.f32 %v2617_v2, 0.0 }
 0x26d   : > { %v7005_v61 = vadd.f32 %v2708_v54, %v6912_v39  ;;  %v7008_v0 = vadd.f32 %v6966_v7, %v2678_v31  ;;  %v2772_v11 = vadd.f32 %v6914_v27, %v2678_v31  ;;  %v7012_v44 = vadd.f32 %v2708_v54, %v6964_v1 }
 0x26e   : > { %v2681_v63 = vmul.f32 0.25, %v2646_v29  ;;  %v2711_v30 = vmul.f32 0.75, %v2646_v29  ;;  %v7014_v22 = vmul.f32 0.25, %v2649_v36  ;;  %v7016_v57 = vmul.f32 0.75, %v2649_v36  ;;  %v5703_v16 = vpop.f32.mrb[16].mxu0 }
 0x26f   : > { %9058 = vst [vmem:[#allocation10_spill] sm:$0xff] %v7008_v0  ;;  %9059 = vst [vmem:[#allocation11_spill] sm:$0xff] %v7012_v44  ;;  %v3846_v58 = vrot.slane %v2772_v11, 7  ;;  %v3942_v2 = vrot.slane %v2772_v11, 1  ;;  %v4069_v60 = vmul.f32 0.75, %v2772_v11  ;;  %v2647_v39 = vmax.f32 %v2615_v4, 0.0 }
 0x270   : > { %v2465_v51 = vpop.f32.mrb[17].mxu0  ;;  %v7019_v26 = vadd.f32 %v2711_v30, %v6935_v3  ;;  %v7022_v27 = vadd.f32 %v7002_v55, %v2681_v63  ;;  %v7025_v31 = vadd.f32 %v6937_v9, %v2681_v63  ;;  %v7028_v54 = vadd.f32 %v2711_v30, %v7000_v59 }
 0x271   : > { %v7030_v29 = vpop.f32.mrb[18].mxu0  ;;  %v3847_v36 = vsel %vm542_vm4, %v3845_v37, %v3846_v58  ;;  %v7034_v44 = vsel %vm2930_vm7, %v3941_v8, %v3942_v2  ;;  %v4019_v4 = vsel %vm2930_vm7, %v3942_v2, %v2772_v11  ;;  %v2682_v3 = vmul.f32 0.25, %v2647_v39 }
 0x272   : > { %9060 = vst [vmem:[#allocation12_spill] sm:$0xff] %v7025_v31  ;;  %9061 = vst [vmem:[#allocation13_spill] sm:$0xff] %v7028_v54  ;;  %v7037_v13 = vpop.f32.mrb[19].mxu0  ;;  %v4037_v32 = vmul.f32 0.25, %v3847_v36  ;;  %v4133_v53 = vmul.f32 0.25, %v4019_v4  ;;  %v2712_v50 = vmul.f32 0.75, %v2647_v39  ;;  %v2579_v37 = vmul.f32 %v5868_v25, %v6891_v24 }
 0x273   : > { %9062 = vst [vmem:[#allocation14_spill] sm:$0xff] %v7034_v44  ;;  %v2652_v9 = vmax.f32 %v2620_v12, 0.0  ;;  %v7040_v63 = vadd.f32 %v7016_v57, %v2682_v3  ;;  %v7043_v30 = vadd.f32 %v6966_v7, %v2682_v3  ;;  %v2835_v8 = vrot.slane %v6928_v62, 7 }
 0x274   : > { %v7047_v58 = vadd.f32 %v4069_v60, %v4037_v32  ;;  %v7049_v11 = vadd.f32 %v4133_v53, %v4069_v60  ;;  %v7052_v2 = vadd.f32 %v2712_v50, %v6964_v1  ;;  %v7055_v39 = vadd.f32 %v2712_v50, %v7014_v22 }
 0x275   : > { %9063 = vst [vmem:[#allocation15_spill] sm:$0xff] %v7043_v30  ;;  %v7057_v12 = vmul.f32 0.25, %v2652_v9  ;;  %v7059_v36 = vmul.f32 0.75, %v2652_v9  ;;  %v2618_v7 = vadd.f32 %v6897_v35, %v2579_v37  ;;  %v9067_v25 = vrot.slane %v6918_v41, 7 }
 0x276   : > { %9064 = vst [vmem:[#allocation16_spill] sm:$0xff] %v7047_v58  ;;  %9065 = vst [vmem:[#allocation17_spill] sm:$0xff] %v7049_v11  ;;  %v7070_v1 = vmul.f32 0.75, %v6918_v41  ;;  %v7073_v50 = vmul.f32 0.75, %v6928_v62  ;;  %v7075_v3 = vpop.f32.mrb[20].mxu0  ;;  %v5869_v11 = vadd.f32 %v6986_v18, %v6809_v14  ;;  %v5871_v44 = vadd.f32 %v5703_v16, %v6831_v42 }
 0x277   : > { %9066 = vst [vmem:[#allocation18_spill] sm:$0xff] %v7055_v39  ;;  %v2836_v4 = vsel %vm542_vm4, %v9067_v25, %v2835_v8  ;;  %v9068_v32 = vmov %v9067_v25  ;;  %v2650_v9 = vmax.f32 %v2618_v7, 0.0  ;;  %v3188_v8 = vpack.c.bf16 %v6950_v6, %v6946_v45  ;;  %v7081_v25 = vpop.f32.mrb[21].mxu0 }
 0x278   : > { %v2914_v53 = vsel %vm542_vm4, %v6918_v41, %v9068_v32  ;;  %v3028_v60 = vmul.f32 0.25, %v2836_v4  ;;  %9069 = vst [vmem:[#allocation19_spill] sm:$0xff] %v7073_v50  ;;  %v5870_v32 = vadd.f32 %v6991_v21, %v6811_v40  ;;  %v5872_v39 = vadd.f32 %v2465_v51, %v6835_v28  ;;  %v7088_v54 = vpop.f32.mrb[22].mxu0 }
 0x279   : > { %v3027_v37 = vmul.f32 0.25, %v2914_v53  ;;  %v2685_v7 = vmul.f32 0.25, %v2650_v9  ;;  %v2715_v53 = vmul.f32 0.75, %v2650_v9  ;;  %v2582_v18 = vmul.f32 %v5869_v11, %v6891_v24  ;;  %v7092_v45 = vpop.f32.mrb[23].mxu0 }
 0x27a   : > { %v3092_v4 = vadd.f32 %v7073_v50, %v3028_v60  ;;  %v2580_v6 = vmul.f32 %v5870_v32, %v6891_v24  ;;  %v2585_v60 = vmul.f32 %v5871_v44, %v6891_v24  ;;  %v2583_v40 = vmul.f32 %v5872_v39, %v6891_v24 }
 0x27b   : > { %v3091_v14 = vadd.f32 %v7070_v1, %v3027_v37  ;;  %v2840_v42 = vrot.slane %v6959_v33, 7  ;;  %v7099_v28 = vadd.f32 %v2715_v53, %v7000_v59  ;;  %v7102_v21 = vadd.f32 %v7059_v36, %v2685_v7 }
 0x27c   : > { %v7105_v51 = vadd.f32 %v7002_v55, %v2685_v7  ;;  %v7108_v16 = vadd.f32 %v2715_v53, %v7057_v12  ;;  %v2621_v9 = vadd.f32 %v6897_v35, %v2582_v18  ;;  %v2619_v44 = vadd.f32 %v6897_v35, %v2580_v6 }
 0x27d   : > { %v3187_v11 = vpack.c.bf16 %v3092_v4, %v3091_v14  ;;  %v2624_v39 = vadd.f32 %v6897_v35, %v2585_v60  ;;  %v2622_v37 = vadd.f32 %v6897_v35, %v2583_v40  ;;  %v2841_v59 = vrot.slane %v7005_v61, 7 }
 0x27e   : > { %9070 = vst [vmem:[#allocation20_spill] sm:$0xff] %v7105_v51  ;;  %9071 = vst [vmem:[#allocation21_spill] sm:$0xff] %v7108_v16  ;;  %v2916_v32 = vsel %vm542_vm4, %v6959_v33, %v2840_v42  ;;  %v7118_v55 = vmul.f32 0.75, %v6959_v33  ;;  %v2653_v7 = vmax.f32 %v2621_v9, 0.0  ;;  %v2651_v4 = vmax.f32 %v2619_v44, 0.0  ;;  %v7121_v18 = vpop.f32.mrb[24].mxu0 }
 0x27f   : > { %5719 = vmatprep.mubr.msk.bf16.mxu1 %vm572_vm0, %v3187_v11  ;;  %v2656_v53 = vmax.f32 %v2624_v39, 0.0  ;;  %v3031_v14 = vmul.f32 0.25, %v2916_v32  ;;  %v2654_v6 = vmax.f32 %v2622_v37, 0.0  ;;  %v2842_v60 = vsel %vm542_vm4, %v2840_v42, %v2841_v59  ;;  %v7130_v51 = vpop.f32.mrb[25].mxu0 }
 0x280   : > { %9072 = vst [vmem:[#allocation22_spill] sm:$0xff] %v7118_v55  ;;  %5720 = vmatmul.mubr.msk.bf16.vlgmr.msra.gmra.mrb[32].mxu1 %vm572_vm0, %v3188_v8  ;;  %v7126_v40 = vmul.f32 0.75, %v7005_v61  ;;  %v5873_v16 = vadd.f32 %v7030_v29, %v6837_v34  ;;  %v7132_v11 = vmul.f32 0.25, %v2653_v7  ;;  %v7134_v9 = vmul.f32 0.75, %v2653_v7  ;;  %v7137_v8 = vpop.f32.mrb[26].mxu0 }
 0x281   : > { %5752 = vmatpush3.bf16.msra.mxu1 %v6750_v23  ;;  %v2686_v44 = vmul.f32 0.25, %v2651_v4  ;;  %v2716_v39 = vmul.f32 0.75, %v2651_v4  ;;  %v7139_v37 = vmul.f32 0.25, %v2656_v53  ;;  %v7141_v42 = vmul.f32 0.75, %v2656_v53  ;;  %v7143_v30 = vpop.f32.mrb[27].mxu0 }
 0x282   : > { %9073 = vst [vmem:[#allocation23_spill] sm:$0xff] %v7126_v40  ;;  %v2689_v59 = vmul.f32 0.25, %v2654_v6  ;;  %v2719_v32 = vmul.f32 0.75, %v2654_v6  ;;  %5785 = vmatprep.subr.bf16.mxu1 %v6750_v23  ;;  %v3032_v31 = vmul.f32 0.25, %v2842_v60  ;;  %v3095_v58 = vadd.f32 %v7118_v55, %v3031_v14 }
 0x283   : > { %v7147_v34 = vadd.f32 %v2716_v39, %v7014_v22  ;;  %v7150_v29 = vadd.f32 %v7134_v9, %v2686_v44  ;;  %v7153_v7 = vadd.f32 %v7016_v57, %v2686_v44  ;;  %v7156_v4 = vadd.f32 %v2716_v39, %v7132_v11 }
 0x284   : > { %v7159_v53 = vadd.f32 %v2719_v32, %v7057_v12  ;;  %v7162_v6 = vadd.f32 %v7141_v42, %v2689_v59  ;;  %v7165_v23 = vadd.f32 %v7059_v36, %v2689_v59  ;;  %v7168_v22 = vadd.f32 %v2719_v32, %v7139_v37 }
 0x285   : > { %9074 = vst [vmem:[#allocation24_spill] sm:$0xff] %v7153_v7  ;;  %9075 = vst [vmem:[#allocation25_spill] sm:$0xff] %v7156_v4  ;;  %v2586_v57 = vmul.f32 %v5873_v16, %v6891_v24  ;;  %v2843_v44 = vrot.slane %v6955_v56, 7  ;;  %v2844_v39 = vrot.slane %v7008_v0, 7  ;;  %v7175_v12 = vmul.f32 0.75, %v6955_v56 }
 0x286   : > { %9076 = vst [vmem:[#allocation26_spill] sm:$0xff] %v7165_v23  ;;  %9077 = vst [vmem:[#allocation27_spill] sm:$0xff] %v7168_v22  ;;  %v7178_v4 = vmul.f32 0.75, %v7008_v0  ;;  %v5874_v36 = vadd.f32 %v7037_v13, %v6839_v48  ;;  %v3096_v59 = vadd.f32 %v7126_v40, %v3032_v31  ;;  %v5875_v14 = vadd.f32 %v7075_v3, %v6843_v38  ;;  %v7188_v32 = vpop.f32.mrb[28].mxu0 }
 0x287   : > { %9078 = vst [vmem:[#allocation28_spill] sm:$0xff] %v7175_v12  ;;  %v2625_v60 = vadd.f32 %v6897_v35, %v2586_v57  ;;  %v2917_v16 = vsel %vm542_vm4, %v6955_v56, %v2843_v44  ;;  %v2845_v22 = vsel %vm542_vm4, %v2843_v44, %v2844_v39  ;;  %v5876_v48 = vadd.f32 %v7081_v25, %v6847_v43  ;;  %v7194_v13 = vpop.f32.mrb[29].mxu0 }
 0x288   : > { %9079 = vst [vmem:[#allocation29_spill] sm:$0xff] %v7178_v4  ;;  %v3033_v23 = vmul.f32 0.25, %v2917_v16  ;;  %v2584_v7 = vmul.f32 %v5874_v36, %v6891_v24  ;;  %v3189_v31 = vpack.c.bf16 %v3096_v59, %v3095_v58  ;;  %v3034_v40 = vmul.f32 0.25, %v2845_v22  ;;  %v7197_v0 = vpop.f32.mrb[30].mxu0 }
 0x289   : > { %v2657_v57 = vmax.f32 %v2625_v60, 0.0  ;;  %v2589_v55 = vmul.f32 %v5875_v14, %v6891_v24  ;;  %v2587_v44 = vmul.f32 %v5876_v48, %v6891_v24  ;;  %v2846_v39 = vrot.slane %v7019_v26, 7  ;;  %v7203_v36 = vpop.f32.mrb[31].mxu0 }
 0x28a   : > { %v3097_v38 = vadd.f32 %v7175_v12, %v3033_v23  ;;  %v2623_v3 = vadd.f32 %v6897_v35, %v2584_v7  ;;  %5723 = vmatprep.mubr.msk.bf16.mxu1 %vm572_vm0, %v3189_v31  ;;  %v3098_v25 = vadd.f32 %v7178_v4, %v3034_v40  ;;  %v2847_v7 = vrot.slane %v7052_v2, 7 }
 0x28b   : > { %v7206_v43 = vmul.f32 0.25, %v2657_v57  ;;  %v7208_v58 = vmul.f32 0.75, %v2657_v57  ;;  %v2628_v22 = vadd.f32 %v6897_v35, %v2589_v55  ;;  %v2626_v23 = vadd.f32 %v6897_v35, %v2587_v44 }
 0x28c   : > { %v2655_v59 = vmax.f32 %v2623_v3, 0.0  ;;  %v2918_v60 = vsel %vm542_vm4, %v7019_v26, %v2846_v39  ;;  %v3190_v16 = vpack.c.bf16 %v3098_v25, %v3097_v38  ;;  %v7217_v31 = vmul.f32 0.75, %v7019_v26 }
 0x28d   : > { %v2660_v14 = vmax.f32 %v2628_v22, 0.0  ;;  %v3035_v48 = vmul.f32 0.25, %v2918_v60  ;;  %v2658_v50 = vmax.f32 %v2626_v23, 0.0  ;;  %v2848_v40 = vsel %vm542_vm4, %v2846_v39, %v2847_v7 }
 0x28e   : > { %v2690_v57 = vmul.f32 0.25, %v2655_v59  ;;  %v2720_v12 = vmul.f32 0.75, %v2655_v59  ;;  %5724 = vmatmul.mubr.msk.bf16.gmra.mrb[36].mxu1 %vm572_vm0, %v3190_v16  ;;  %v3036_v44 = vmul.f32 0.25, %v2848_v40  ;;  %v7226_v4 = vmul.f32 0.75, %v7052_v2 }
 0x28f   : > { %v7221_v55 = vmul.f32 0.25, %v2660_v14  ;;  %v7223_v3 = vmul.f32 0.75, %v2660_v14  ;;  %v2693_v59 = vmul.f32 0.25, %v2658_v50  ;;  %v2723_v23 = vmul.f32 0.75, %v2658_v50 }
 0x290   : > { %v7229_v38 = vadd.f32 %v2720_v12, %v7132_v11  ;;  %v7232_v25 = vadd.f32 %v7208_v58, %v2690_v57  ;;  %v7235_v22 = vadd.f32 %v7134_v9, %v2690_v57  ;;  %v7238_v39 = vadd.f32 %v2720_v12, %v7206_v43 }
 0x291   : > { %v3099_v7 = vadd.f32 %v7217_v31, %v3035_v48  ;;  %v3100_v60 = vadd.f32 %v7226_v4, %v3036_v44  ;;  %v5877_v16 = vadd.f32 %v7088_v54, %v6849_v46  ;;  %v2849_v11 = vrot.slane %v7022_v27, 7 }
 0x292   : > { %9080 = vst [vmem:[#allocation30_spill] sm:$0xff] %v7235_v22  ;;  %9081 = vst [vmem:[#allocation31_spill] sm:$0xff] %v7238_v39  ;;  %v2850_v14 = vrot.slane %v7040_v63, 7  ;;  %v7247_v40 = vmul.f32 0.75, %v7022_v27  ;;  %v7250_v9 = vadd.f32 %v2723_v23, %v7139_v37  ;;  %v7253_v12 = vadd.f32 %v7223_v3, %v2693_v59 }
 0x293   : > { %v7256_v50 = vadd.f32 %v7141_v42, %v2693_v59  ;;  %v7259_v48 = vadd.f32 %v2723_v23, %v7221_v55  ;;  %v3191_v46 = vpack.c.bf16 %v3100_v60, %v3099_v7  ;;  %v2590_v54 = vmul.f32 %v5877_v16, %v6891_v24 }
 0x294   : > { %v2851_v57 = vsel %vm542_vm4, %v2849_v11, %v2850_v14  ;;  %v2919_v44 = vsel %vm542_vm4, %v7022_v27, %v2849_v11  ;;  %v7266_v22 = vmul.f32 0.75, %v7040_v63  ;;  %v5878_v42 = vadd.f32 %v7092_v45, %v6851_v52 }
 0x295   : > { %9082 = vst [vmem:[#allocation32_spill] sm:$0xff] %v7256_v50  ;;  %9083 = vst [vmem:[#allocation33_spill] sm:$0xff] %v7259_v48  ;;  %v3037_v39 = vmul.f32 0.25, %v2919_v44  ;;  %v3038_v37 = vmul.f32 0.25, %v2851_v57  ;;  %5727 = vmatprep.mubr.msk.bf16.mxu1 %vm572_vm0, %v3191_v46  ;;  %v2629_v59 = vadd.f32 %v6897_v35, %v2590_v54  ;;  %v5879_v23 = vadd.f32 %v7121_v18, %v6855_v10 }
 0x296   : > { %v5880_v7 = vadd.f32 %v7130_v51, %v6859_v17  ;;  %v2852_v60 = vrot.slane %v7099_v28, 7  ;;  %v2588_v14 = vmul.f32 %v5878_v42, %v6891_v24  ;;  %v2853_v52 = vrot.slane %v7147_v34, 7 }
 0x297   : > { %v3101_v16 = vadd.f32 %v7247_v40, %v3037_v39  ;;  %v3102_v11 = vadd.f32 %v7266_v22, %v3038_v37  ;;  %v2661_v45 = vmax.f32 %v2629_v59, 0.0  ;;  %v2593_v46 = vmul.f32 %v5879_v23, %v6891_v24 }
 0x298   : > { %v2591_v54 = vmul.f32 %v5880_v7, %v6891_v24  ;;  %v2920_v10 = vsel %vm542_vm4, %v7099_v28, %v2852_v60  ;;  %v2627_v17 = vadd.f32 %v6897_v35, %v2588_v14  ;;  %v2854_v51 = vsel %vm542_vm4, %v2852_v60, %v2853_v52 }
 0x299   : > { %v3192_v18 = vpack.c.bf16 %v3102_v11, %v3101_v16  ;;  %v3039_v39 = vmul.f32 0.25, %v2920_v10  ;;  %v7287_v57 = vmul.f32 0.25, %v2661_v45  ;;  %v7289_v44 = vmul.f32 0.75, %v2661_v45 }
 0x29a   : > { %v2632_v37 = vadd.f32 %v6897_v35, %v2593_v46  ;;  %v2630_v42 = vadd.f32 %v6897_v35, %v2591_v54  ;;  %v2659_v59 = vmax.f32 %v2627_v17, 0.0  ;;  %v3040_v23 = vmul.f32 0.25, %v2854_v51 }
 0x29b   : > { %5728 = vmatmul.mubr.msk.bf16.gmra.mrb[40].mxu1 %vm572_vm0, %v3192_v18  ;;  %v7295_v7 = vmul.f32 0.75, %v7099_v28  ;;  %v7298_v16 = vmul.f32 0.75, %v7147_v34  ;;  %v5881_v14 = vadd.f32 %v7137_v8, %v6861_v47  ;;  %v2855_v52 = vrot.slane %v7102_v21, 7 }
 0x29c   : > { %v2664_v60 = vmax.f32 %v2632_v37, 0.0  ;;  %v2662_v11 = vmax.f32 %v2630_v42, 0.0  ;;  %v2694_v45 = vmul.f32 0.25, %v2659_v59  ;;  %v2724_v46 = vmul.f32 0.75, %v2659_v59 }
 0x29d   : > { %v3103_v54 = vadd.f32 %v7295_v7, %v3039_v39  ;;  %v3104_v10 = vadd.f32 %v7298_v16, %v3040_v23  ;;  %v7373_v50 = vmul.f32 0.75, %v7229_v38 }
 0x29e   : > { %v7305_v18 = vmul.f32 0.25, %v2664_v60  ;;  %v7307_v17 = vmul.f32 0.75, %v2664_v60  ;;  %v2697_v51 = vmul.f32 0.25, %v2662_v11  ;;  %v2727_v48 = vmul.f32 0.75, %v2662_v11 }
 0x29f   : > { %v7310_v37 = vadd.f32 %v2724_v46, %v7206_v43  ;;  %v7313_v42 = vadd.f32 %v7289_v44, %v2694_v45  ;;  %v7316_v47 = vadd.f32 %v7208_v58, %v2694_v45  ;;  %v7319_v8 = vadd.f32 %v2724_v46, %v7287_v57 }
 0x2a0   : > { %v7322_v39 = vadd.f32 %v2727_v48, %v7221_v55  ;;  %v7325_v59 = vadd.f32 %v7307_v17, %v2697_v51  ;;  %v7328_v23 = vadd.f32 %v7223_v3, %v2697_v51  ;;  %v7331_v43 = vadd.f32 %v2727_v48, %v7305_v18 }
 0x2a1   : > { %9084 = vst [vmem:[#allocation34_spill] sm:$0xff] %v7316_v47  ;;  %9085 = vst [vmem:[#allocation35_spill] sm:$0xff] %v7319_v8  ;;  %v3193_v60 = vpack.c.bf16 %v3104_v10, %v3103_v54  ;;  %v2594_v11 = vmul.f32 %v5881_v14, %v6891_v24  ;;  %v2856_v58 = vrot.slane %v7150_v29, 7  ;;  %v2921_v45 = vsel %vm542_vm4, %v7102_v21, %v2855_v52 }
 0x2a2   : > { %9086 = vst [vmem:[#allocation36_spill] sm:$0xff] %v7328_v23  ;;  %9087 = vst [vmem:[#allocation37_spill] sm:$0xff] %v7331_v43  ;;  %v3041_v46 = vmul.f32 0.25, %v2921_v45  ;;  %v7338_v55 = vmul.f32 0.75, %v7102_v21  ;;  %v7341_v8 = vmul.f32 0.75, %v7150_v29  ;;  %v5882_v3 = vadd.f32 %v7143_v30, %v6863_v49 }
 0x2a3   : > { %5731 = vmatprep.mubr.msk.bf16.mxu1 %vm572_vm0, %v3193_v60  ;;  %v2633_v48 = vadd.f32 %v6897_v35, %v2594_v11  ;;  %v2857_v14 = vsel %vm542_vm4, %v2855_v52, %v2856_v58  ;;  %v5883_v54 = vadd.f32 %v7188_v32, %v6867_v5  ;;  %v5884_v10 = vadd.f32 %v7194_v13, %v6871_v15 }
 0x2a4   : > { %9088 = vst [vmem:[#allocation38_spill] sm:$0xff] %v7338_v55  ;;  %9089 = vst [vmem:[#allocation39_spill] sm:$0xff] %v7341_v8  ;;  %v3042_v51 = vmul.f32 0.25, %v2857_v14  ;;  %v3105_v45 = vadd.f32 %v7338_v55, %v3041_v46  ;;  %v2592_v43 = vmul.f32 %v5882_v3, %v6891_v24  ;;  %v2858_v23 = vrot.slane %v7159_v53, 7 }
 0x2a5   : > { %v2665_v49 = vmax.f32 %v2633_v48, 0.0  ;;  %v2597_v30 = vmul.f32 %v5883_v54, %v6891_v24  ;;  %v2595_v60 = vmul.f32 %v5884_v10, %v6891_v24  ;;  %v2859_v52 = vrot.slane %v7229_v38, 7 }
 0x2a6   : > { %v3106_v11 = vadd.f32 %v7341_v8, %v3042_v51  ;;  %v2631_v5 = vadd.f32 %v6897_v35, %v2592_v43  ;;  %v2922_v15 = vsel %vm542_vm4, %v7159_v53, %v2858_v23  ;;  %v7363_v32 = vmul.f32 0.75, %v7159_v53 }
 0x2a7   : > { %v7365_v13 = vmul.f32 0.25, %v2665_v49  ;;  %v7367_v58 = vmul.f32 0.75, %v2665_v49  ;;  %v2636_v46 = vadd.f32 %v6897_v35, %v2597_v30  ;;  %v2634_v3 = vadd.f32 %v6897_v35, %v2595_v60 }
 0x2a8   : > { %v3194_v48 = vpack.c.bf16 %v3106_v11, %v3105_v45  ;;  %v2663_v14 = vmax.f32 %v2631_v5, 0.0  ;;  %v2860_v54 = vsel %vm542_vm4, %v2858_v23, %v2859_v52  ;;  %v3043_v10 = vmul.f32 0.25, %v2922_v15 }
 0x2a9   : > { %v2668_v43 = vmax.f32 %v2636_v46, 0.0  ;;  %v2666_v51 = vmax.f32 %v2634_v3, 0.0  ;;  %v3044_v47 = vmul.f32 0.25, %v2860_v54  ;;  %v5885_v30 = vadd.f32 %v7197_v0, %v6873_v19 }
 0x2aa   : > { %5732 = vmatmul.mubr.msk.bf16.gmra.mrb[44].mxu1 %vm572_vm0, %v3194_v48  ;;  %v2698_v8 = vmul.f32 0.25, %v2663_v14  ;;  %v2728_v49 = vmul.f32 0.75, %v2663_v14  ;;  %v3107_v55 = vadd.f32 %v7363_v32, %v3043_v10  ;;  %v2862_v54 = vrot.slane %v7232_v25, 7 }
 0x2ab   : > { %v2733_v45 = vmul.f32 0.75, %v2668_v43  ;;  %v2767_v60 = vmul.f32 0.25, %v2668_v43  ;;  %v2701_v11 = vmul.f32 0.25, %v2666_v51  ;;  %v2731_v23 = vmul.f32 0.75, %v2666_v51 }
 0x2ac   : > { %v7380_v52 = vadd.f32 %v2728_v49, %v7287_v57  ;;  %v7383_v5 = vadd.f32 %v7367_v58, %v2698_v8  ;;  %v7386_v15 = vadd.f32 %v7289_v44, %v2698_v8  ;;  %v7389_v46 = vadd.f32 %v2728_v49, %v7365_v13 }
 0x2ad   : > { %v7391_v3 = vadd.f32 %v2767_v60, %v2733_v45  ;;  %v7394_v19 = vadd.f32 %v2731_v23, %v7305_v18  ;;  %v7396_v0 = vadd.f32 %v2733_v45, %v2701_v11  ;;  %v7399_v48 = vadd.f32 %v7307_v17, %v2701_v11 }
 0x2ae   : > { %9090 = vst [vmem:[#allocation40_spill] sm:$0xff] %v7383_v5  ;;  %9091 = vst [vmem:[#allocation41_spill] sm:$0xff] %v7386_v15  ;;  %v7401_v57 = vadd.f32 %v2767_v60, %v2731_v23  ;;  %v3108_v14 = vadd.f32 %v7373_v50, %v3044_v47  ;;  %v2598_v44 = vmul.f32 %v5885_v30, %v6891_v24  ;;  %v2861_v8 = vrot.slane %v7162_v6, 7 }
 0x2af   : > { %9092 = vst [vmem:[#allocation42_spill] sm:$0xff] %v7389_v46  ;;  %9093 = vst [vmem:[#allocation43_spill] sm:$0xff] %v7391_v3  ;;  %v7408_v10 = vmul.f32 0.75, %v7162_v6  ;;  %v7411_v18 = vmul.f32 0.75, %v7232_v25  ;;  %v5886_v17 = vadd.f32 %v7203_v36, %v6875_v20  ;;  %v2864_v49 = vrot.slane %v7250_v9, 7 }
 0x2b0   : > { %9094 = vst [vmem:[#allocation44_spill] sm:$0xff] %v7396_v0  ;;  %9095 = vst [vmem:[#allocation45_spill] sm:$0xff] %v7399_v48  ;;  %v3195_v43 = vpack.c.bf16 %v3108_v14, %v3107_v55  ;;  %v2637_v51 = vadd.f32 %v6897_v35, %v2598_v44  ;;  %v2923_v47 = vsel %vm542_vm4, %v7162_v6, %v2861_v8  ;;  %v2865_v11 = vrot.slane %v7310_v37, 7 }
 0x2b1   : > { %9096 = vst [vmem:[#allocation46_spill] sm:$0xff] %v7401_v57  ;;  %v2863_v30 = vsel %vm542_vm4, %v2861_v8, %v2862_v54  ;;  %v3045_v45 = vmul.f32 0.25, %v2923_v47  ;;  %v2596_v60 = vmul.f32 %v5886_v17, %v6891_v24  ;;  %v2924_v20 = vsel %vm542_vm4, %v7250_v9, %v2864_v49 }
 0x2b2   : > { %5735 = vmatprep.mubr.msk.bf16.mxu1 %vm572_vm0, %v3195_v43  ;;  %v2669_v23 = vmax.f32 %v2637_v51, 0.0  ;;  %v3046_v3 = vmul.f32 0.25, %v2863_v30  ;;  %v7426_v36 = vmul.f32 0.75, %v7250_v9  ;;  %v2866_v44 = vsel %vm542_vm4, %v2864_v49, %v2865_v11 }
 0x2b3   : > { %v3109_v55 = vadd.f32 %v7408_v10, %v3045_v45  ;;  %v2635_v14 = vadd.f32 %v6897_v35, %v2596_v60  ;;  %v3047_v8 = vmul.f32 0.25, %v2924_v20  ;;  %v3048_v43 = vmul.f32 0.25, %v2866_v44 }
 0x2b4   : > { %v2734_v24 = vmul.f32 0.75, %v2669_v23  ;;  %v2768_v54 = vmul.f32 0.25, %v2669_v23  ;;  %v3110_v17 = vadd.f32 %v7411_v18, %v3046_v3  ;;  %v7433_v47 = vmul.f32 0.75, %v7310_v37 }
 0x2b5   : > { %v2667_v51 = vmax.f32 %v2635_v14, 0.0  ;;  %v3111_v30 = vadd.f32 %v7426_v36, %v3047_v8  ;;  %v2867_v57 = vrot.slane %v7253_v12, 7  ;;  %v2868_v35 = vrot.slane %v7313_v42, 7 }
 0x2b6   : > { %v7437_v48 = vadd.f32 %v2768_v54, %v2734_v24  ;;  %v3196_v45 = vpack.c.bf16 %v3110_v17, %v3109_v55  ;;  %v7441_v49 = vmul.f32 0.75, %v7253_v12  ;;  %v3112_v3 = vadd.f32 %v7433_v47, %v3048_v43 }
 0x2b7   : > { %v2702_v60 = vmul.f32 0.25, %v2667_v51  ;;  %v2732_v11 = vmul.f32 0.75, %v2667_v51  ;;  %v2925_v23 = vsel %vm542_vm4, %v7253_v12, %v2867_v57  ;;  %v2869_v20 = vsel %vm542_vm4, %v2867_v57, %v2868_v35 }
 0x2b8   : > { %9097 = vst [vmem:[#allocation47_spill] sm:$0xff] %v7437_v48  ;;  %5736 = vmatmul.mubr.msk.bf16.gmra.mrb[48].mxu1 %vm572_vm0, %v3196_v45  ;;  %v3049_v14 = vmul.f32 0.25, %v2925_v23  ;;  %v7449_v44 = vmul.f32 0.75, %v7313_v42  ;;  %v2870_v55 = vrot.slane %v7322_v39, 7  ;;  %v3197_v48 = vpack.c.bf16 %v3112_v3, %v3111_v30 }
 0x2b9   : > { %v7453_v8 = vadd.f32 %v2732_v11, %v7365_v13  ;;  %v7455_v17 = vadd.f32 %v2734_v24, %v2702_v60  ;;  %v7458_v43 = vadd.f32 %v7367_v58, %v2702_v60  ;;  %v7460_v51 = vadd.f32 %v2768_v54, %v2732_v11 }
 0x2ba   : > { %v3050_v45 = vmul.f32 0.25, %v2869_v20  ;;  %v3113_v57 = vadd.f32 %v7441_v49, %v3049_v14  ;;  %v2871_v35 = vrot.slane %v7380_v52, 7  ;;  %v2926_v23 = vsel %vm542_vm4, %v7322_v39, %v2870_v55  ;;  %5739 = vmatprep.mubr.msk.bf16.mxu1 %vm572_vm0, %v3197_v48 }
 0x2bb   : > { %9098 = vst [vmem:[#allocation48_spill] sm:$0xff] %v7453_v8  ;;  %9099 = vst [vmem:[#allocation49_spill] sm:$0xff] %v7455_v17  ;;  %v7467_v46 = vmul.f32 0.75, %v7322_v39  ;;  %v7470_v13 = vmul.f32 0.75, %v7380_v52  ;;  %v2873_v58 = vrot.slane %v7325_v59, 7  ;;  %v3051_v30 = vmul.f32 0.25, %v2926_v23 }
 0x2bc   : > { %9100 = vst [vmem:[#allocation50_spill] sm:$0xff] %v7458_v43  ;;  %9101 = vst [vmem:[#allocation51_spill] sm:$0xff] %v7460_v51  ;;  %v3114_v24 = vadd.f32 %v7449_v44, %v3050_v45  ;;  %v2872_v54 = vsel %vm542_vm4, %v2870_v55, %v2871_v35  ;;  %v2874_v60 = vrot.slane %v7383_v5, 7  ;;  %v7480_v20 = vmul.f32 0.75, %v7325_v59 }
 0x2bd   : > { %v3052_v11 = vmul.f32 0.25, %v2872_v54  ;;  %v2927_v3 = vsel %vm542_vm4, %v7325_v59, %v2873_v58  ;;  %v7483_v14 = vmul.f32 0.75, %v7383_v5  ;;  %v3115_v48 = vadd.f32 %v7467_v46, %v3051_v30 }
 0x2be   : > { %9102 = vst [vmem:[#allocation52_spill] sm:$0xff] %v7480_v20  ;;  %v3198_v51 = vpack.c.bf16 %v3114_v24, %v3113_v57  ;;  %v2875_v45 = vsel %vm542_vm4, %v2873_v58, %v2874_v60  ;;  %v3053_v43 = vmul.f32 0.25, %v2927_v3  ;;  %v2876_v23 = vrot.slane %v7394_v19, 7 }
 0x2bf   : > { %9103 = vst [vmem:[#allocation53_spill] sm:$0xff] %v7483_v14  ;;  %v3116_v55 = vadd.f32 %v7470_v13, %v3052_v11  ;;  %v3054_v35 = vmul.f32 0.25, %v2875_v45  ;;  %v2877_v54 = vrot.slane %v7453_v8, 7  ;;  %v7493_v5 = vmul.f32 0.75, %v7394_v19 }
 0x2c0   : > { %5740 = vmatmul.mubr.msk.bf16.gmra.mrb[52].mxu1 %vm572_vm0, %v3198_v51  ;;  %v3117_v15 = vadd.f32 %v7480_v20, %v3053_v43  ;;  %v7496_v57 = vmul.f32 0.75, %v7453_v8  ;;  %v2879_v58 = vrot.slane %v7396_v0, 7  ;;  %v2928_v11 = vsel %vm542_vm4, %v7394_v19, %v2876_v23 }
 0x2c1   : > { %v3199_v24 = vpack.c.bf16 %v3116_v55, %v3115_v48  ;;  %v3118_v30 = vadd.f32 %v7483_v14, %v3054_v35  ;;  %v2878_v60 = vsel %vm542_vm4, %v2876_v23, %v2877_v54  ;;  %v3055_v3 = vmul.f32 0.25, %v2928_v11 }
 0x2c2   : > { %v3056_v51 = vmul.f32 0.25, %v2878_v60  ;;  %v2880_v43 = vrot.slane %v7455_v17, 7  ;;  %v2929_v45 = vsel %vm542_vm4, %v7396_v0, %v2879_v58  ;;  %v7508_v48 = vmul.f32 0.75, %v7396_v0 }
 0x2c3   : > { %5743 = vmatprep.mubr.msk.bf16.mxu1 %vm572_vm0, %v3199_v24  ;;  %v3200_v20 = vpack.c.bf16 %v3118_v30, %v3117_v15  ;;  %v3057_v8 = vmul.f32 0.25, %v2929_v45  ;;  %v7511_v55 = vmul.f32 0.75, %v7455_v17  ;;  %v3119_v35 = vadd.f32 %v7493_v5, %v3055_v3  ;;  %v9106_v24 = vld [vmem:[#allocation5_spill] sm:$0xff] }
 0x2c4   : > { %9104 = vst [vmem:[#allocation54_spill] sm:$0xff] %v7508_v48  ;;  %v3120_v23 = vadd.f32 %v7496_v57, %v3056_v51  ;;  %v2881_v54 = vsel %vm542_vm4, %v2879_v58, %v2880_v43  ;;  %v2931_v60 = vrot.slane %v6918_v41, 1  ;;  %v2932_v15 = vrot.slane %v6928_v62, 1  ;;  %v9107_v43 = vld [vmem:[#allocation3_spill] sm:$0xff] }
 0x2c5   : > { %9105 = vst [vmem:[#allocation55_spill] sm:$0xff] %v7511_v55  ;;  %v3058_v11 = vmul.f32 0.25, %v2881_v54  ;;  %v3121_v14 = vadd.f32 %v7508_v48, %v3057_v8  ;;  %v3125_v30 = vmul.f32 0.25, %v9106_v24  ;;  %v2937_v0 = vrot.slane %v6959_v33, 1  ;;  %v9112_v48 = vld [vmem:[#allocation23_spill] sm:$0xff] }
 0x2c6   : > { %v3201_v45 = vpack.c.bf16 %v3120_v23, %v3119_v35  ;;  %v2938_v17 = vrot.slane %v7005_v61, 1  ;;  %v2940_v3 = vrot.slane %v6955_v56, 1  ;;  %v2933_v58 = vsel %vm2930_vm7, %v2931_v60, %v2932_v15  ;;  %v9108_v60 = vld [vmem:[#allocation6_spill] sm:$0xff] }
 0x2c7   : > { %v3122_v51 = vadd.f32 %v7511_v55, %v3058_v11  ;;  %v3011_v41 = vsel %vm2930_vm7, %v2932_v15, %v6928_v62  ;;  %v7528_v8 = vadd.f32 %v3125_v30, %v9107_v43  ;;  %v3123_v54 = vmul.f32 0.25, %v2933_v58  ;;  %v9109_v30 = vld [vmem:[#allocation19_spill] sm:$0xff] }
 0x2c8   : > { %5744 = vmatmul.mubr.msk.bf16.gmra.mrb[56].mxu1 %vm572_vm0, %v3200_v20  ;;  %v3124_v35 = vmul.f32 0.25, %v3011_v41  ;;  %v2939_v33 = vsel %vm2930_vm7, %v2937_v0, %v2938_v17  ;;  %v3013_v23 = vsel %vm2930_vm7, %v2938_v17, %v7005_v61  ;;  %v9110_v20 = vld [vmem:[#allocation10_spill] sm:$0xff]  ;;  %v2943_v41 = vrot.slane %v7019_v26, 1 }
 0x2c9   : > { %5747 = vmatprep.mubr.msk.bf16.mxu1 %vm572_vm0, %v3201_v45  ;;  %v3202_v56 = vpack.c.bf16 %v3122_v51, %v3121_v14  ;;  %v3425_v11 = vpack.c.bf16 %v9108_v60, %v7528_v8  ;;  %v3127_v24 = vmul.f32 0.25, %v2939_v33  ;;  %v3128_v62 = vmul.f32 0.25, %v3013_v23  ;;  %v9111_v0 = vld [vmem:[#allocation22_spill] sm:$0xff] }
 0x2ca   : > { %v3155_v15 = vadd.f32 %v3123_v54, %v7070_v1  ;;  %v3156_v43 = vadd.f32 %v3124_v35, %v9109_v30  ;;  %v2941_v58 = vrot.slane %v9110_v20, 1  ;;  %v2944_v17 = vrot.slane %v7052_v2, 1 }
 0x2cb   : > { %v3159_v55 = vadd.f32 %v3127_v24, %v9111_v0  ;;  %v3160_v61 = vadd.f32 %v3128_v62, %v9112_v48  ;;  %v2946_v14 = vrot.slane %v7022_v27, 1  ;;  %v2947_v8 = vrot.slane %v7040_v63, 1  ;;  %v9114_v62 = vld [vmem:[#allocation29_spill] sm:$0xff] }
 0x2cc   : > { %v3424_v45 = vpack.c.bf16 %v3156_v43, %v3155_v15  ;;  %v2942_v51 = vsel %vm2930_vm7, %v2940_v3, %v2941_v58  ;;  %v3014_v1 = vsel %vm2930_vm7, %v2941_v58, %v9110_v20  ;;  %v2945_v26 = vsel %vm2930_vm7, %v2943_v41, %v2944_v17  ;;  %v9113_v3 = vld [vmem:[#allocation28_spill] sm:$0xff] }
 0x2cd   : > { %v3426_v54 = vpack.c.bf16 %v3160_v61, %v3159_v55  ;;  %v3129_v35 = vmul.f32 0.25, %v2942_v51  ;;  %v3130_v33 = vmul.f32 0.25, %v3014_v1  ;;  %v3015_v48 = vsel %vm2930_vm7, %v2944_v17, %v7052_v2 }
 0x2ce   : > { %v3131_v23 = vmul.f32 0.25, %v2945_v26  ;;  %v2948_v60 = vsel %vm2930_vm7, %v2946_v14, %v2947_v8  ;;  %v3016_v27 = vsel %vm2930_vm7, %v2947_v8, %v7040_v63  ;;  %v3132_v55 = vmul.f32 0.25, %v3015_v48 }
 0x2cf   : > { %v7556_v24 = vadd.f32 %v3129_v35, %v9113_v3  ;;  %v7559_v15 = vadd.f32 %v3130_v33, %v9114_v62  ;;  %v3133_v30 = vmul.f32 0.25, %v2948_v60  ;;  %v3134_v2 = vmul.f32 0.25, %v3016_v27  ;;  %v9115_v60 = vld [vmem:[#allocation38_spill] sm:$0xff]  ;;  %v9116_v27 = vld [vmem:[#allocation39_spill] sm:$0xff] }
 0x2d0   : > { %5748 = vmatmul.mubr.msk.bf16.gmra.mrb[60].mxu1 %vm572_vm0, %v3202_v56  ;;  %v7563_v43 = vadd.f32 %v3131_v23, %v7217_v31  ;;  %v2949_v20 = vrot.slane %v7099_v28, 1  ;;  %v2950_v58 = vrot.slane %v7147_v34, 1  ;;  %v7571_v41 = vadd.f32 %v3132_v55, %v7226_v4 }
 0x2d1   : > { %5753 = vmatprep.mubr.msk.bf16.mxu1 %vm572_vm0, %v3424_v45  ;;  %v3427_v63 = vpack.c.bf16 %v7559_v15, %v7556_v24  ;;  %v7574_v0 = vadd.f32 %v3133_v30, %v7247_v40  ;;  %v2952_v56 = vrot.slane %v7102_v21, 1  ;;  %v7578_v31 = vadd.f32 %v3134_v2, %v7266_v22  ;;  %v7620_v30 = vld [vmem:[%s8946_s6] sm:$0xff]  }
 0x2d2   : > { %v2951_v28 = vsel %vm2930_vm7, %v2949_v20, %v2950_v58  ;;  %v3017_v61 = vsel %vm2930_vm7, %v2950_v58, %v7147_v34  ;;  %v2953_v17 = vrot.slane %v7150_v29, 1  ;;  %v3428_v14 = vpack.c.bf16 %v7571_v41, %v7563_v43 }
 0x2d3   : > { %v3135_v4 = vmul.f32 0.25, %v2951_v28  ;;  %v3136_v45 = vmul.f32 0.25, %v3017_v61  ;;  %v2955_v40 = vrot.slane %v7159_v53, 1  ;;  %v3429_v21 = vpack.c.bf16 %v7578_v31, %v7574_v0 }
 0x2d4   : > { %v2954_v22 = vsel %vm2930_vm7, %v2952_v56, %v2953_v17  ;;  %v3018_v51 = vsel %vm2930_vm7, %v2953_v17, %v7150_v29  ;;  %v2956_v1 = vrot.slane %v7229_v38, 1  ;;  %v2958_v48 = vrot.slane %v7162_v6, 1 }
 0x2d5   : > { %v7594_v34 = vadd.f32 %v3135_v4, %v7295_v7  ;;  %v7597_v8 = vadd.f32 %v3136_v45, %v7298_v16  ;;  %v3137_v35 = vmul.f32 0.25, %v2954_v22  ;;  %v3138_v33 = vmul.f32 0.25, %v3018_v51 }
 0x2d6   : > { %v2957_v53 = vsel %vm2930_vm7, %v2955_v40, %v2956_v1  ;;  %v3019_v26 = vsel %vm2930_vm7, %v2956_v1, %v7229_v38  ;;  %v2959_v23 = vrot.slane %v7232_v25, 1  ;;  %v2961_v38 = vrot.slane %v7250_v9, 1 }
 0x2d7   : > { %v3430_v29 = vpack.c.bf16 %v7597_v8, %v7594_v34  ;;  %v7607_v7 = vadd.f32 %v3137_v35, %v9115_v60  ;;  %v7610_v16 = vadd.f32 %v3138_v33, %v9116_v27  ;;  %v3139_v3 = vmul.f32 0.25, %v2957_v53  ;;  %v9119_v27 = vld [vmem:[#allocation44_spill] sm:$0xff]  ;;  %v9142_v8 = vld [vmem:[#allocation25_spill] sm:$0xff] }
 0x2d8   : > { %5754 = vmatmul.mubr.msk.bf16.vlgmr.msra.gmra.mrb[64].mxu1 %vm572_vm0, %v3425_v11  ;;  %v3140_v62 = vmul.f32 0.25, %v3019_v26  ;;  %v2960_v55 = vsel %vm2930_vm7, %v2958_v48, %v2959_v23  ;;  %v3020_v6 = vsel %vm2930_vm7, %v2959_v23, %v7232_v25  ;;  %v2962_v9 = vrot.slane %v7310_v37, 1  ;;  %v9128_v34 = vld [vmem:[#allocation16_spill] sm:$0xff] }
 0x2d9   : > { %5786 = vmatpush3.bf16.msra.mxu1 %v7620_v30  ;;  %5757 = vmatprep.mubr.msk.bf16.mxu1 %vm572_vm0, %v3426_v54  ;;  %v3431_v11 = vpack.c.bf16 %v7610_v16, %v7607_v7  ;;  %v7627_v43 = vadd.f32 %v3139_v3, %v7363_v32  ;;  %v3141_v2 = vmul.f32 0.25, %v2960_v55  ;;  %v3142_v20 = vmul.f32 0.25, %v3020_v6  ;;  %v9121_v6 = vld [vmem:[#allocation2_spill] sm:$0xff] }
 0x2da   : > { %v7630_v25 = vadd.f32 %v3140_v62, %v7373_v50  ;;  %v2964_v58 = vrot.slane %v7253_v12, 1  ;;  %v2965_v41 = vrot.slane %v7313_v42, 1  ;;  %5819 = vmatprep.subr.bf16.mxu1 %v7620_v30  ;;  %v2967_v32 = vrot.slane %v7322_v39, 1  ;;  %v9120_v62 = vld [vmem:[#allocation49_spill] sm:$0xff] }
 0x2db   : > { %v7637_v54 = vadd.f32 %v3141_v2, %v7408_v10  ;;  %v7640_v56 = vadd.f32 %v3142_v20, %v7411_v18  ;;  %v2968_v28 = vrot.slane %v7380_v52, 1  ;;  %v2963_v61 = vsel %vm2930_vm7, %v2961_v38, %v2962_v9  ;;  %v9122_v2 = vld [vmem:[#allocation52_spill] sm:$0xff] }
 0x2dc   : > { %v3432_v50 = vpack.c.bf16 %v7630_v25, %v7627_v43  ;;  %v3021_v12 = vsel %vm2930_vm7, %v2962_v9, %v7310_v37  ;;  %v2966_v17 = vsel %vm2930_vm7, %v2964_v58, %v2965_v41  ;;  %v3143_v4 = vmul.f32 0.25, %v2963_v61  ;;  %v9123_v9 = vld [vmem:[#allocation53_spill] sm:$0xff]  ;;  %v9138_v43 = vld [vmem:[#allocation24_spill] sm:$0xff] }
 0x2dd   : > { %v3433_v10 = vpack.c.bf16 %v7640_v56, %v7637_v54  ;;  %v3144_v18 = vmul.f32 0.25, %v3021_v12  ;;  %v3022_v39 = vsel %vm2930_vm7, %v2965_v41, %v7313_v42  ;;  %v3145_v45 = vmul.f32 0.25, %v2966_v17  ;;  %v9124_v12 = vld [vmem:[#allocation4_spill] sm:$0xff] }
 0x2de   : > { %v3146_v40 = vmul.f32 0.25, %v3022_v39  ;;  %v2969_v22 = vsel %vm2930_vm7, %v2967_v32, %v2968_v28  ;;  %v3023_v51 = vsel %vm2930_vm7, %v2968_v28, %v7380_v52  ;;  %v7658_v1 = vadd.f32 %v3143_v4, %v7426_v36  ;;  %v9117_v36 = vld [vmem:[#allocation40_spill] sm:$0xff] }
 0x2df   : > { %v7661_v37 = vadd.f32 %v3144_v18, %v7433_v47  ;;  %v3147_v35 = vmul.f32 0.25, %v2969_v22  ;;  %v3148_v33 = vmul.f32 0.25, %v3023_v51  ;;  %v7668_v42 = vadd.f32 %v3145_v45, %v7441_v49 }
 0x2e0   : > { %5758 = vmatmul.mubr.msk.bf16.gmra.mrb[68].mxu1 %vm572_vm0, %v3427_v63  ;;  %v7671_v53 = vadd.f32 %v3146_v40, %v7449_v44  ;;  %v2970_v52 = vrot.slane %v7325_v59, 1  ;;  %v2971_v26 = vrot.slane %v9117_v36, 1  ;;  %v2973_v49 = vrot.slane %v7394_v19, 1  ;;  %v9118_v63 = vld [vmem:[#allocation48_spill] sm:$0xff]  ;;  %v9148_v44 = vld [vmem:[#allocation30_spill] sm:$0xff] }
 0x2e1   : > { %5761 = vmatprep.mubr.msk.bf16.mxu1 %vm572_vm0, %v3428_v14  ;;  %v7679_v48 = vadd.f32 %v3147_v35, %v7467_v46  ;;  %v7682_v24 = vadd.f32 %v3148_v33, %v7470_v13  ;;  %v2974_v14 = vrot.slane %v9118_v63, 1  ;;  %v2976_v13 = vrot.slane %v9119_v27, 1 }
 0x2e2   : > { %v2972_v59 = vsel %vm2930_vm7, %v2970_v52, %v2971_v26  ;;  %v3024_v15 = vsel %vm2930_vm7, %v2971_v26, %v9117_v36  ;;  %v2977_v55 = vrot.slane %v9120_v62, 1  ;;  %v3842_v38 = vrot.slane %v9121_v6, 7 }
 0x2e3   : > { %v3149_v46 = vmul.f32 0.25, %v2972_v59  ;;  %v3150_v60 = vmul.f32 0.25, %v3024_v15  ;;  %v2975_v3 = vsel %vm2930_vm7, %v2973_v49, %v2974_v14  ;;  %v3025_v19 = vsel %vm2930_vm7, %v2974_v14, %v9118_v63  ;;  %v9127_v49 = vld [vmem:[#allocation9_spill] sm:$0xff]  ;;  %v9130_v63 = vld [vmem:[#allocation11_spill] sm:$0xff] }
 0x2e4   : > { %v3151_v41 = vmul.f32 0.25, %v2975_v3  ;;  %v3152_v32 = vmul.f32 0.25, %v3025_v19  ;;  %v2978_v28 = vsel %vm2930_vm7, %v2976_v13, %v2977_v55  ;;  %v3026_v61 = vsel %vm2930_vm7, %v2977_v55, %v9120_v62  ;;  %v9131_v3 = vld [vmem:[#allocation12_spill] sm:$0xff]  ;;  %v9132_v62 = vld [vmem:[#allocation15_spill] sm:$0xff] }
 0x2e5   : > { %v7700_v20 = vadd.f32 %v3149_v46, %v9122_v2  ;;  %v7703_v58 = vadd.f32 %v3150_v60, %v9123_v9  ;;  %v3843_v17 = vrot.slane %v9124_v12, 7  ;;  %v3922_v4 = vsel %vm542_vm4, %v9121_v6, %v3842_v38 }
 0x2e6   : > { %v7714_v39 = vadd.f32 %v3151_v41, %v7493_v5  ;;  %v7717_v45 = vadd.f32 %v3152_v32, %v7496_v57  ;;  %v3153_v40 = vmul.f32 0.25, %v2978_v28  ;;  %v3154_v22 = vmul.f32 0.25, %v3026_v61  ;;  %v9125_v57 = vld [vmem:[#allocation54_spill] sm:$0xff] }
 0x2e7   : > { %v3844_v51 = vsel %vm542_vm4, %v3842_v38, %v3843_v17  ;;  %v4034_v35 = vmul.f32 0.25, %v3922_v4  ;;  %v7725_v33 = vmul.f32 0.75, %v9121_v6  ;;  %v7737_v31 = vmul.f32 0.75, %v9124_v12 }
 0x2e8   : > { %5762 = vmatmul.mubr.msk.bf16.gmra.mrb[72].mxu1 %vm572_vm0, %v3429_v21  ;;  %v7734_v52 = vadd.f32 %v3153_v40, %v9125_v57  ;;  %v4035_v0 = vmul.f32 0.25, %v3844_v51  ;;  %v9126_v21 = vld [vmem:[#allocation55_spill] sm:$0xff]  ;;  %v3849_v14 = vrot.slane %v9130_v63, 7  ;;  %v7756_v60 = vmul.f32 0.75, %v9130_v63  ;;  %v9133_v51 = vld [vmem:[#allocation13_spill] sm:$0xff] }
 0x2e9   : > { %5765 = vmatprep.mubr.msk.bf16.mxu1 %vm572_vm0, %v3430_v29  ;;  %v7740_v36 = vadd.f32 %v3154_v22, %v9126_v21  ;;  %v7743_v26 = vadd.f32 %v7725_v33, %v4034_v35  ;;  %v9129_v29 = vld [vmem:[#allocation7_spill] sm:$0xff]  ;;  %v3851_v19 = vrot.slane %v9131_v3, 7  ;;  %v3852_v55 = vrot.slane %v9132_v62, 7 }
 0x2ea   : > { %v3848_v59 = vrot.slane %v9129_v29, 7  ;;  %v7749_v15 = vadd.f32 %v7737_v31, %v4035_v0  ;;  %v7753_v46 = vmul.f32 0.75, %v9129_v29  ;;  %v7768_v41 = vmul.f32 0.75, %v9131_v3  ;;  %v9134_v0 = vld [vmem:[#allocation18_spill] sm:$0xff] }
 0x2eb   : > { %v3853_v28 = vsel %vm542_vm4, %v3851_v19, %v3852_v55  ;;  %v3925_v61 = vsel %vm542_vm4, %v9131_v3, %v3851_v19  ;;  %v7774_v17 = vmul.f32 0.75, %v9132_v62  ;;  %v3854_v35 = vrot.slane %v9133_v51, 7 }
 0x2ec   : > { %v3924_v13 = vsel %vm542_vm4, %v9129_v29, %v3848_v59  ;;  %v3850_v2 = vsel %vm542_vm4, %v3848_v59, %v3849_v14  ;;  %v4040_v40 = vmul.f32 0.25, %v3925_v61  ;;  %v4041_v22 = vmul.f32 0.25, %v3853_v28 }
 0x2ed   : > { %v4038_v9 = vmul.f32 0.25, %v3924_v13  ;;  %v4039_v32 = vmul.f32 0.25, %v3850_v2  ;;  %v3855_v21 = vrot.slane %v9134_v0, 7  ;;  %v7789_v59 = vmul.f32 0.75, %v9133_v51  ;;  %v9137_v13 = vld [vmem:[#allocation20_spill] sm:$0xff] }
 0x2ee   : > { %v7792_v14 = vmul.f32 0.75, %v9134_v0  ;;  %v7799_v7 = vadd.f32 %v7768_v41, %v4040_v40  ;;  %v7802_v16 = vadd.f32 %v7774_v17, %v4041_v22  ;;  %v3857_v19 = vrot.slane %v9137_v13, 7 }
 0x2ef   : > { %v7777_v4 = vadd.f32 %v7753_v46, %v4038_v9  ;;  %v7785_v57 = vadd.f32 %v7756_v60, %v4039_v32  ;;  %v3856_v2 = vsel %vm542_vm4, %v3854_v35, %v3855_v21  ;;  %v3858_v25 = vrot.slane %v9138_v43, 7 }
 0x2f0   : > { %5766 = vmatmul.mubr.msk.bf16.gmra.mrb[76].mxu1 %vm572_vm0, %v3431_v11  ;;  %9135 = vst [vmem:[#allocation5_spill] sm:$0xff] %v7799_v7  ;;  %9136 = vst [vmem:[#allocation3_spill] sm:$0xff] %v7802_v16  ;;  %v3926_v11 = vsel %vm542_vm4, %v9133_v51, %v3854_v35  ;;  %v4043_v32 = vmul.f32 0.25, %v3856_v2  ;;  %v3927_v28 = vsel %vm542_vm4, %v9137_v13, %v3857_v19  ;;  %v7816_v61 = vmul.f32 0.75, %v9137_v13  ;;  %v9141_v2 = vld [vmem:[#allocation21_spill] sm:$0xff]  ;;  %v9165_v7 = vld [vmem:[#allocation35_spill] sm:$0xff] }
 0x2f1   : > { %5769 = vmatprep.mubr.msk.bf16.mxu1 %vm572_vm0, %v3432_v50  ;;  %v4042_v9 = vmul.f32 0.25, %v3926_v11  ;;  %v3859_v22 = vsel %vm542_vm4, %v3857_v19, %v3858_v25  ;;  %v4044_v55 = vmul.f32 0.25, %v3927_v28  ;;  %v7823_v35 = vmul.f32 0.75, %v9138_v43  ;;  %v9146_v25 = vld [vmem:[#allocation26_spill] sm:$0xff] }
 0x2f2   : > { %v7826_v21 = vadd.f32 %v7792_v14, %v4043_v32  ;;  %v4045_v11 = vmul.f32 0.25, %v3859_v22  ;;  %v3860_v50 = vrot.slane %v9141_v2, 7  ;;  %v3861_v38 = vrot.slane %v9142_v8, 7 }
 0x2f3   : > { %v7819_v40 = vadd.f32 %v7789_v59, %v4042_v9  ;;  %v7831_v27 = vadd.f32 %v7816_v61, %v4044_v55  ;;  %v7834_v9 = vmul.f32 0.75, %v9141_v2  ;;  %v7837_v19 = vmul.f32 0.75, %v9142_v8 }
 0x2f4   : > { %9140 = vst [vmem:[#allocation19_spill] sm:$0xff] %v7826_v21  ;;  %v3863_v28 = vrot.slane %v9146_v25, 7  ;;  %v7843_v22 = vadd.f32 %v7823_v35, %v4045_v11  ;;  %v3862_v5 = vsel %vm542_vm4, %v3860_v50, %v3861_v38  ;;  %v3928_v55 = vsel %vm542_vm4, %v9141_v2, %v3860_v50 }
 0x2f5   : > { %9139 = vst [vmem:[#allocation6_spill] sm:$0xff] %v7819_v40  ;;  %9143 = vst [vmem:[#allocation10_spill] sm:$0xff] %v7831_v27  ;;  %v4046_v18 = vmul.f32 0.25, %v3928_v55  ;;  %v4047_v23 = vmul.f32 0.25, %v3862_v5  ;;  %v3864_v47 = vrot.slane %v9148_v44, 7  ;;  %v9149_v11 = vpack.c.bf16 %v7661_v37, %v7658_v1  ;;  %v9154_v37 = vld [vmem:[#allocation27_spill] sm:$0xff] }
 0x2f6   : > { %9144 = vst [vmem:[#allocation22_spill] sm:$0xff] %v7834_v9  ;;  %9145 = vst [vmem:[#allocation23_spill] sm:$0xff] %v7837_v19  ;;  %v3929_v32 = vsel %vm542_vm4, %v9146_v25, %v3863_v28  ;;  %v7862_v54 = vmul.f32 0.75, %v9146_v25  ;;  %v7865_v56 = vmul.f32 0.75, %v9148_v44  ;;  %v3866_v55 = vrot.slane %v9154_v37, 7 }
 0x2f7   : > { %9147 = vst [vmem:[#allocation28_spill] sm:$0xff] %v7843_v22  ;;  %v4048_v50 = vmul.f32 0.25, %v3929_v32  ;;  %v7871_v5 = vadd.f32 %v7837_v19, %v4047_v23  ;;  %v3865_v1 = vsel %vm542_vm4, %v3863_v28, %v3864_v47  ;;  %v9156_v32 = vld [vmem:[#allocation31_spill] sm:$0xff]  ;;  %v7880_v22 = vmul.f32 0.75, %v9154_v37  ;;  %v9157_v47 = vld [vmem:[#allocation32_spill] sm:$0xff] }
 0x2f8   : > { %5770 = vmatmul.mubr.msk.bf16.gmra.mrb[80].mxu1 %vm572_vm0, %v3433_v10  ;;  %9150 = vst [vmem:[#allocation29_spill] sm:$0xff] %v7862_v54  ;;  %9151 = vst [vmem:[#allocation38_spill] sm:$0xff] %v7865_v56  ;;  %v7868_v10 = vadd.f32 %v7834_v9, %v4046_v18  ;;  %v3867_v27 = vrot.slane %v9156_v32, 7  ;;  %v3930_v23 = vsel %vm542_vm4, %v9154_v37, %v3866_v55  ;;  %v7887_v19 = vmul.f32 0.75, %v9156_v32  ;;  %v9159_v9 = vld [vmem:[#allocation34_spill] sm:$0xff] }
 0x2f9   : > { %5773 = vmatprep.mubr.msk.bf16.mxu1 %vm572_vm0, %v9149_v11  ;;  %9153 = vst [vmem:[#allocation40_spill] sm:$0xff] %v7871_v5  ;;  %v4049_v11 = vmul.f32 0.25, %v3865_v1  ;;  %v7876_v38 = vadd.f32 %v7862_v54, %v4048_v50  ;;  %v3869_v28 = vrot.slane %v9157_v47, 7  ;;  %v4050_v54 = vmul.f32 0.25, %v3930_v23 }
 0x2fa   : > { %9152 = vst [vmem:[#allocation39_spill] sm:$0xff] %v7868_v10  ;;  %v3868_v50 = vsel %vm542_vm4, %v3866_v55, %v3867_v27  ;;  %v3870_v40 = vrot.slane %v9159_v9, 7  ;;  %v7898_v10 = vmul.f32 0.75, %v9157_v47  ;;  %v7901_v5 = vmul.f32 0.75, %v9159_v9  ;;  %v9164_v9 = vld [vmem:[#allocation33_spill] sm:$0xff] }
 0x2fb   : > { %9155 = vst [vmem:[#allocation48_spill] sm:$0xff] %v7876_v38  ;;  %v7891_v1 = vadd.f32 %v7865_v56, %v4049_v11  ;;  %v4051_v21 = vmul.f32 0.25, %v3868_v50  ;;  %v3931_v18 = vsel %vm542_vm4, %v9157_v47, %v3869_v28  ;;  %v7906_v11 = vadd.f32 %v7880_v22, %v4050_v54 }
 0x2fc   : > { %9160 = vst [vmem:[#allocation49_spill] sm:$0xff] %v7898_v10  ;;  %v3871_v27 = vsel %vm542_vm4, %v3869_v28, %v3870_v40  ;;  %v4052_v55 = vmul.f32 0.25, %v3931_v18  ;;  %v9162_v23 = vpack.c.bf16 %v7671_v53, %v7668_v42  ;;  %v3872_v47 = vrot.slane %v9164_v9, 7 }
 0x2fd   : > { %9158 = vst [vmem:[#allocation44_spill] sm:$0xff] %v7891_v1  ;;  %9161 = vst [vmem:[#allocation2_spill] sm:$0xff] %v7906_v11  ;;  %v7914_v50 = vadd.f32 %v7887_v19, %v4051_v21  ;;  %v4053_v56 = vmul.f32 0.25, %v3871_v27  ;;  %v3873_v16 = vrot.slane %v9165_v7, 7  ;;  %v9166_v54 = vpack.c.bf16 %v7682_v24, %v7679_v48  ;;  %v9170_v21 = vld [vmem:[#allocation36_spill] sm:$0xff] }
 0x2fe   : > { %v7923_v40 = vadd.f32 %v7898_v10, %v4052_v55  ;;  %v7926_v42 = vmul.f32 0.75, %v9164_v9  ;;  %v7929_v53 = vmul.f32 0.75, %v9165_v7  ;;  %v3875_v18 = vrot.slane %v9170_v21, 7 }
 0x2ff   : > { %9163 = vst [vmem:[#allocation52_spill] sm:$0xff] %v7914_v50  ;;  %v7935_v27 = vadd.f32 %v7901_v5, %v4053_v56  ;;  %v3874_v48 = vsel %vm542_vm4, %v3872_v47, %v3873_v16  ;;  %v3932_v24 = vsel %vm542_vm4, %v9164_v9, %v3872_v47  ;;  %v7946_v28 = vmul.f32 0.75, %v9170_v21 }
 0x300   : > { %5774 = vmatmul.mubr.msk.bf16.gmra.mrb[84].mxu1 %vm572_vm0, %v9162_v23  ;;  %9167 = vst [vmem:[#allocation53_spill] sm:$0xff] %v7923_v40  ;;  %9168 = vst [vmem:[#allocation4_spill] sm:$0xff] %v7926_v42  ;;  %v4054_v55 = vmul.f32 0.25, %v3932_v24  ;;  %v4055_v23 = vmul.f32 0.25, %v3874_v48  ;;  %v3933_v38 = vsel %vm542_vm4, %v9170_v21, %v3875_v18  ;;  %v9177_v24 = vld [vmem:[#allocation37_spill] sm:$0xff] }
 0x301   : > { %5777 = vmatprep.mubr.msk.bf16.mxu1 %vm572_vm0, %v9166_v54  ;;  %9169 = vst [vmem:[#allocation54_spill] sm:$0xff] %v7929_v53  ;;  %9171 = vst [vmem:[#allocation55_spill] sm:$0xff] %v7935_v27  ;;  %v9172_v54 = vld [vmem:[#allocation41_spill] sm:$0xff]  ;;  %v4056_v10 = vmul.f32 0.25, %v3933_v38  ;;  %v3878_v11 = vrot.slane %v9177_v24, 7  ;;  %v9179_v38 = vld [vmem:[#allocation42_spill] sm:$0xff] }
 0x302   : > { %v3876_v32 = vrot.slane %v9172_v54, 7  ;;  %9173 = vst [vmem:[#allocation9_spill] sm:$0xff] %v7946_v28  ;;  %v7949_v56 = vmul.f32 0.75, %v9172_v54  ;;  %v7952_v16 = vadd.f32 %v7926_v42, %v4054_v55  ;;  %v7955_v47 = vadd.f32 %v7929_v53, %v4055_v23  ;;  %v9185_v55 = vld [vmem:[#allocation50_spill] sm:$0xff] }
 0x303   : > { %v7960_v1 = vadd.f32 %v7946_v28, %v4056_v10  ;;  %v3879_v40 = vrot.slane %v9179_v38, 7  ;;  %v7964_v27 = vmul.f32 0.75, %v9177_v24  ;;  %v3934_v23 = vsel %vm542_vm4, %v9177_v24, %v3878_v11 }
 0x304   : > { %9174 = vst [vmem:[#allocation16_spill] sm:$0xff] %v7949_v56  ;;  %9175 = vst [vmem:[#allocation7_spill] sm:$0xff] %v7952_v16  ;;  %v3877_v48 = vsel %vm542_vm4, %v3875_v18, %v3876_v32  ;;  %v7971_v53 = vmul.f32 0.75, %v9179_v38  ;;  %v9182_v32 = vld [vmem:[#allocation45_spill] sm:$0xff]  ;;  %v9183_v10 = vpack.c.bf16 %v7703_v58, %v7700_v20  ;;  %v4058_v42 = vmul.f32 0.25, %v3934_v23 }
 0x305   : > { %9176 = vst [vmem:[#allocation11_spill] sm:$0xff] %v7955_v47  ;;  %v4057_v50 = vmul.f32 0.25, %v3877_v48  ;;  %9178 = vst [vmem:[#allocation12_spill] sm:$0xff] %v7960_v1  ;;  %v3881_v18 = vrot.slane %v9182_v32, 7  ;;  %v3880_v28 = vsel %vm542_vm4, %v3878_v11, %v3879_v40  ;;  %v3882_v16 = vrot.slane %v9185_v55, 7  ;;  %v9191_v11 = vld [vmem:[#allocation43_spill] sm:$0xff] }
 0x306   : > { %9180 = vst [vmem:[#allocation15_spill] sm:$0xff] %v7964_v27  ;;  %9181 = vst [vmem:[#allocation13_spill] sm:$0xff] %v7971_v53  ;;  %v9186_v47 = vpack.c.bf16 %v7717_v45, %v7714_v39  ;;  %v4059_v38 = vmul.f32 0.25, %v3880_v28  ;;  %v7990_v20 = vmul.f32 0.75, %v9182_v32  ;;  %v7993_v58 = vmul.f32 0.75, %v9185_v55 }
 0x307   : > { %v7979_v48 = vadd.f32 %v7949_v56, %v4057_v50  ;;  %v3935_v24 = vsel %vm542_vm4, %v9182_v32, %v3881_v18  ;;  %v7998_v50 = vadd.f32 %v7964_v27, %v4058_v42  ;;  %v3883_v39 = vsel %vm542_vm4, %v3881_v18, %v3882_v16 }
 0x308   : > { %5778 = vmatmul.mubr.msk.bf16.gmra.mrb[88].mxu1 %vm572_vm0, %v9183_v10  ;;  %9187 = vst [vmem:[#allocation20_spill] sm:$0xff] %v7990_v20  ;;  %v4060_v45 = vmul.f32 0.25, %v3935_v24  ;;  %v8002_v40 = vadd.f32 %v7971_v53, %v4059_v38  ;;  %v4061_v28 = vmul.f32 0.25, %v3883_v39  ;;  %v9189_v10 = vld [vmem:[#allocation51_spill] sm:$0xff]  ;;  %v3887_v16 = vrot.slane %v9191_v11, 7 }
 0x309   : > { %9184 = vst [vmem:[#allocation18_spill] sm:$0xff] %v7979_v48  ;;  %5781 = vmatprep.mubr.msk.bf16.mxu1 %vm572_vm0, %v9186_v47  ;;  %v9188_v47 = vld [vmem:[#allocation46_spill] sm:$0xff]  ;;  %v3885_v32 = vrot.slane %v9189_v10, 7  ;;  %v8013_v42 = vmul.f32 0.75, %v9189_v10  ;;  %v9193_v48 = vld [vmem:[#allocation47_spill] sm:$0xff]  ;;  %v8030_v24 = vmul.f32 0.75, %v9191_v11  ;;  %v9197_v53 = vpack.c.bf16 %v7749_v15, %v7743_v26 }
 0x30a   : > { %v3884_v23 = vrot.slane %v9188_v47, 7  ;;  %v8007_v55 = vadd.f32 %v7990_v20, %v4060_v45  ;;  %v8010_v56 = vmul.f32 0.75, %v9188_v47  ;;  %v8019_v38 = vadd.f32 %v7993_v58, %v4061_v28 }
 0x30b   : > { %v3888_v20 = vrot.slane %v9193_v48, 7  ;;  %v3937_v10 = vsel %vm542_vm4, %v9191_v11, %v3887_v16  ;;  %v8033_v28 = vmul.f32 0.75, %v9193_v48 }
 0x30c   : > { %9190 = vst [vmem:[#allocation24_spill] sm:$0xff] %v8007_v55  ;;  %9192 = vst [vmem:[#allocation21_spill] sm:$0xff] %v8019_v38  ;;  %v3886_v18 = vsel %vm542_vm4, %v3884_v23, %v3885_v32  ;;  %v3936_v39 = vsel %vm542_vm4, %v9188_v47, %v3884_v23  ;;  %v4064_v27 = vmul.f32 0.25, %v3937_v10  ;;  %v9194_v32 = vpack.c.bf16 %v7740_v36, %v7734_v52 }
 0x30d   : > { %v4062_v45 = vmul.f32 0.25, %v3936_v39  ;;  %v4063_v1 = vmul.f32 0.25, %v3886_v18  ;;  %v3889_v39 = vsel %vm542_vm4, %v3887_v16, %v3888_v20  ;;  %v3938_v10 = vrot.slane %v9121_v6, 1 }
 0x30e   : > { %v4065_v55 = vmul.f32 0.25, %v3889_v39  ;;  %v8052_v52 = vadd.f32 %v8030_v24, %v4064_v27  ;;  %v3939_v36 = vrot.slane %v9124_v12, 1  ;;  %v3944_v20 = vrot.slane %v9129_v29, 1  ;;  %v9199_v27 = vld [vmem:[#allocation8_spill] sm:$0xff] }
 0x30f   : > { %v8040_v23 = vadd.f32 %v8010_v56, %v4062_v45  ;;  %v8043_v18 = vadd.f32 %v8013_v42, %v4063_v1  ;;  %v9198_v45 = vld [vmem:[#allocation14_spill] sm:$0xff]  ;;  %v3945_v6 = vrot.slane %v9130_v63, 1  ;;  %v3947_v16 = vrot.slane %v9131_v3, 1 }
 0x310   : > { %5782 = vmatmul.mubr.msk.bf16.gmra.mrb[92].mxu1 %vm572_vm0, %v9194_v32  ;;  %v4132_v32 = vmul.f32 0.25, %v9198_v45  ;;  %v8062_v26 = vadd.f32 %v8033_v28, %v4065_v55  ;;  %v3940_v15 = vsel %vm2930_vm7, %v3938_v10, %v3939_v36  ;;  %v9200_v55 = vld [vmem:[#allocation17_spill] sm:$0xff] }
 0x311   : > { %9195 = vst [vmem:[#allocation25_spill] sm:$0xff] %v8040_v23  ;;  %9196 = vst [vmem:[#allocation26_spill] sm:$0xff] %v8043_v18  ;;  %5787 = vmatprep.mubr.msk.bf16.mxu1 %vm572_vm0, %v9197_v53  ;;  %v4018_v53 = vsel %vm2930_vm7, %v3939_v36, %v9124_v12  ;;  %v4130_v45 = vmul.f32 0.25, %v3940_v15  ;;  %v3946_v1 = vsel %vm2930_vm7, %v3944_v20, %v3945_v6  ;;  %v3950_v20 = vrot.slane %v9133_v51, 1 }
 0x312   : > { %v8068_v39 = vadd.f32 %v4132_v32, %v9199_v27  ;;  %v4131_v38 = vmul.f32 0.25, %v4018_v53  ;;  %v4020_v29 = vsel %vm2930_vm7, %v3945_v6, %v9130_v63  ;;  %v4209_v3 = vpack.c.bf16 %v8062_v26, %v8052_v52 }
 0x313   : > { %v4134_v10 = vmul.f32 0.25, %v3946_v1  ;;  %v4135_v18 = vmul.f32 0.25, %v4020_v29  ;;  %v8078_v12 = vadd.f32 %v4130_v45, %v7725_v33  ;;  %v3948_v32 = vrot.slane %v9132_v62, 1 }
 0x314   : > { %v4420_v23 = vpack.c.bf16 %v9200_v55, %v8068_v39  ;;  %v8081_v36 = vadd.f32 %v4131_v38, %v7737_v31  ;;  %v3951_v15 = vrot.slane %v9134_v0, 1  ;;  %v3953_v1 = vrot.slane %v9137_v13, 1 }
 0x315   : > { %v8086_v63 = vadd.f32 %v4134_v10, %v7753_v46  ;;  %v8089_v6 = vadd.f32 %v4135_v18, %v7756_v60  ;;  %v9201_v33 = vpack.c.bf16 %v9128_v34, %v9127_v49  ;;  %v3949_v51 = vsel %vm2930_vm7, %v3947_v16, %v3948_v32 }
 0x316   : > { %v4419_v31 = vpack.c.bf16 %v8081_v36, %v8078_v12  ;;  %v4021_v46 = vsel %vm2930_vm7, %v3948_v32, %v9132_v62  ;;  %v3954_v60 = vrot.slane %v9138_v43, 1  ;;  %v9202_v13 = vpack.c.bf16 %v7785_v57, %v7777_v4 }
 0x317   : > { %v4421_v49 = vpack.c.bf16 %v8089_v6, %v8086_v63  ;;  %v4136_v34 = vmul.f32 0.25, %v3949_v51  ;;  %v4137_v38 = vmul.f32 0.25, %v4021_v46  ;;  %v3952_v18 = vsel %vm2930_vm7, %v3950_v20, %v3951_v15  ;;  %v9203_v46 = vld [vmem:[#allocation3_spill] sm:$0xff] }
 0x318   : > { %5788 = vmatmul.mubr.msk.bf16.vlgmr.msra.gmra.mrb[96].mxu1 %vm572_vm0, %v9201_v33  ;;  %v4022_v16 = vsel %vm2930_vm7, %v3951_v15, %v9134_v0  ;;  %v4138_v62 = vmul.f32 0.25, %v3952_v18  ;;  %v3955_v53 = vsel %vm2930_vm7, %v3953_v1, %v3954_v60  ;;  %v3956_v0 = vrot.slane %v9141_v2, 1  ;;  %v9207_v18 = vld [vmem:[#allocation19_spill] sm:$0xff] }
 0x319   : > { %5820 = vmatpush3.bf16.msra.mxu1 %v7620_v30  ;;  %5791 = vmatprep.mubr.msk.bf16.mxu1 %vm572_vm0, %v9202_v13  ;;  %v4023_v30 = vsel %vm2930_vm7, %v3954_v60, %v9138_v43  ;;  %v8117_v4 = vadd.f32 %v4136_v34, %v7768_v41  ;;  %v8120_v57 = vadd.f32 %v4137_v38, %v7774_v17  ;;  %v4139_v27 = vmul.f32 0.25, %v4022_v16  ;;  %v9204_v60 = vld [vmem:[#allocation5_spill] sm:$0xff]  ;;  %v9206_v34 = vld [vmem:[#allocation31_spill] sm:$0xff]  ;;  %v9208_v16 = vld [vmem:[#allocation6_spill] sm:$0xff] }
 0x31a   : > { %v4140_v45 = vmul.f32 0.25, %v3955_v53  ;;  %v8123_v29 = vadd.f32 %v4138_v62, %v7789_v59  ;;  %v4141_v10 = vmul.f32 0.25, %v4023_v30  ;;  %v3957_v32 = vrot.slane %v9142_v8, 1  ;;  %v9211_v30 = vld [vmem:[#allocation23_spill] sm:$0xff] }
 0x31b   : > { %v4422_v20 = vpack.c.bf16 %v8120_v57, %v8117_v4  ;;  %v8130_v43 = vadd.f32 %v4139_v27, %v7792_v14  ;;  %v3959_v17 = vrot.slane %v9146_v25, 1  ;;  %v3960_v1 = vrot.slane %v9148_v44, 1 }
 0x31c   : > { %v8133_v41 = vadd.f32 %v4140_v45, %v7816_v61  ;;  %v8137_v15 = vadd.f32 %v4141_v10, %v7823_v35  ;;  %v3958_v59 = vsel %vm2930_vm7, %v3956_v0, %v3957_v32  ;;  %v4024_v2 = vsel %vm2930_vm7, %v3957_v32, %v9142_v8  ;;  %v9212_v32 = vld [vmem:[#allocation32_spill] sm:$0xff] }
 0x31d   : > { %v4423_v33 = vpack.c.bf16 %v8130_v43, %v8123_v29  ;;  %v4142_v14 = vmul.f32 0.25, %v3958_v59  ;;  %v4143_v51 = vmul.f32 0.25, %v4024_v2  ;;  %v3962_v61 = vrot.slane %v9154_v37, 1  ;;  %v9210_v37 = vld [vmem:[#allocation22_spill] sm:$0xff] }
 0x31e   : > { %v9205_v25 = vpack.c.bf16 %v9203_v46, %v9204_v60  ;;  %v4424_v35 = vpack.c.bf16 %v8137_v15, %v8133_v41  ;;  %v3961_v13 = vsel %vm2930_vm7, %v3959_v17, %v3960_v1  ;;  %v4025_v8 = vsel %vm2930_vm7, %v3960_v1, %v9148_v44  ;;  %v9213_v59 = vld [vmem:[#allocation34_spill] sm:$0xff]  ;;  %v9214_v46 = vld [vmem:[#allocation29_spill] sm:$0xff] }
 0x31f   : > { %v3963_v38 = vrot.slane %v9206_v34, 1  ;;  %v9209_v62 = vpack.c.bf16 %v9207_v18, %v9208_v16  ;;  %v8161_v53 = vadd.f32 %v4142_v14, %v9210_v37  ;;  %v8164_v27 = vadd.f32 %v4143_v51, %v9211_v30  ;;  %v9215_v60 = vld [vmem:[#allocation38_spill] sm:$0xff] }
 0x320   : > { %5792 = vmatmul.mubr.msk.bf16.gmra.mrb[100].mxu1 %vm572_vm0, %v9205_v25  ;;  %v4144_v45 = vmul.f32 0.25, %v3961_v13  ;;  %v4145_v10 = vmul.f32 0.25, %v4025_v8  ;;  %v3965_v17 = vrot.slane %v9212_v32, 1  ;;  %v3966_v2 = vrot.slane %v9213_v59, 1  ;;  %v9217_v32 = vld [vmem:[#allocation37_spill] sm:$0xff] }
 0x321   : > { %5795 = vmatprep.mubr.msk.bf16.mxu1 %vm572_vm0, %v9209_v62  ;;  %v3964_v0 = vsel %vm2930_vm7, %v3962_v61, %v3963_v38  ;;  %v4026_v44 = vsel %vm2930_vm7, %v3963_v38, %v9206_v34  ;;  %v4425_v1 = vpack.c.bf16 %v8164_v27, %v8161_v53  ;;  %v3968_v34 = vrot.slane %v9164_v9, 1 }
 0x322   : > { %v8174_v14 = vadd.f32 %v4144_v45, %v9214_v46  ;;  %v8177_v51 = vadd.f32 %v4145_v10, %v9215_v60  ;;  %v4146_v25 = vmul.f32 0.25, %v3964_v0  ;;  %v4147_v13 = vmul.f32 0.25, %v4026_v44  ;;  %v9216_v0 = vld [vmem:[#allocation49_spill] sm:$0xff]  ;;  %v9220_v46 = vld [vmem:[#allocation10_spill] sm:$0xff] }
 0x323   : > { %v3967_v61 = vsel %vm2930_vm7, %v3965_v17, %v3966_v2  ;;  %v4027_v8 = vsel %vm2930_vm7, %v3966_v2, %v9213_v59  ;;  %v3969_v30 = vrot.slane %v9165_v7, 1  ;;  %v3971_v45 = vrot.slane %v9170_v21, 1  ;;  %v9218_v17 = vld [vmem:[#allocation42_spill] sm:$0xff]  ;;  %v9219_v2 = vld [vmem:[#allocation28_spill] sm:$0xff] }
 0x324   : > { %v4426_v38 = vpack.c.bf16 %v8177_v51, %v8174_v14  ;;  %v8186_v18 = vadd.f32 %v4146_v25, %v7880_v22  ;;  %v4148_v16 = vmul.f32 0.25, %v3967_v61  ;;  %v4149_v62 = vmul.f32 0.25, %v4027_v8  ;;  %v9223_v61 = vld [vmem:[#allocation39_spill] sm:$0xff] }
 0x325   : > { %v8189_v37 = vadd.f32 %v4147_v13, %v7887_v19  ;;  %v3972_v10 = vrot.slane %v9172_v54, 1  ;;  %v3974_v22 = vrot.slane %v9217_v32, 1  ;;  %v3975_v59 = vrot.slane %v9218_v17, 1  ;;  %v9222_v13 = vld [vmem:[#allocation40_spill] sm:$0xff] }
 0x326   : > { %v8195_v44 = vadd.f32 %v4148_v16, %v9216_v0  ;;  %v8198_v9 = vadd.f32 %v4149_v62, %v7901_v5  ;;  %v9221_v19 = vpack.c.bf16 %v9219_v2, %v9220_v46  ;;  %v3970_v60 = vsel %vm2930_vm7, %v3968_v34, %v3969_v30  ;;  %v9228_v16 = vld [vmem:[#allocation16_spill] sm:$0xff] }
 0x327   : > { %v4427_v21 = vpack.c.bf16 %v8189_v37, %v8186_v18  ;;  %v4028_v25 = vsel %vm2930_vm7, %v3969_v30, %v9165_v7  ;;  %v3973_v5 = vsel %vm2930_vm7, %v3971_v45, %v3972_v10  ;;  %v9224_v8 = vpack.c.bf16 %v9222_v13, %v9223_v61  ;;  %v9225_v30 = vld [vmem:[#allocation4_spill] sm:$0xff] }
 0x328   : > { %5796 = vmatmul.mubr.msk.bf16.gmra.mrb[104].mxu1 %vm572_vm0, %v9221_v19  ;;  %v4150_v62 = vmul.f32 0.25, %v3970_v60  ;;  %v4151_v0 = vmul.f32 0.25, %v4028_v25  ;;  %v4029_v32 = vsel %vm2930_vm7, %v3972_v10, %v9172_v54  ;;  %v4152_v2 = vmul.f32 0.25, %v3973_v5  ;;  %v9226_v19 = vld [vmem:[#allocation54_spill] sm:$0xff]  ;;  %v9227_v60 = vld [vmem:[#allocation9_spill] sm:$0xff] }
 0x329   : > { %5799 = vmatprep.mubr.msk.bf16.mxu1 %vm572_vm0, %v9224_v8  ;;  %v4153_v34 = vmul.f32 0.25, %v4029_v32  ;;  %v3976_v46 = vsel %vm2930_vm7, %v3974_v22, %v3975_v59  ;;  %v4030_v7 = vsel %vm2930_vm7, %v3975_v59, %v9218_v17  ;;  %v9229_v10 = vld [vmem:[#allocation45_spill] sm:$0xff]  ;;  %v9230_v22 = vld [vmem:[#allocation50_spill] sm:$0xff]  ;;  %v9231_v59 = vld [vmem:[#allocation15_spill] sm:$0xff]  ;;  %v9257_v63 = vpack.c.bf16 %v8198_v9, %v8195_v44 }
 0x32a   : > { %v8224_v45 = vadd.f32 %v4150_v62, %v9225_v30  ;;  %v8227_v13 = vadd.f32 %v4151_v0, %v9226_v19  ;;  %v4154_v61 = vmul.f32 0.25, %v3976_v46  ;;  %v4155_v8 = vmul.f32 0.25, %v4030_v7  ;;  %v9232_v0 = vld [vmem:[#allocation13_spill] sm:$0xff]  ;;  %v9233_v7 = vld [vmem:[#allocation51_spill] sm:$0xff]  ;;  %v8417_v44 = vld [vmem:[%s8947_s7] ss:$0 sm:$0xff] }
 0x32b   : > { %v8230_v25 = vadd.f32 %v4152_v2, %v9227_v60  ;;  %v8233_v54 = vadd.f32 %v4153_v34, %v9228_v16  ;;  %v3977_v5 = vrot.slane %v9229_v10, 1  ;;  %v3978_v32 = vrot.slane %v9230_v22, 1  ;;  %v9234_v60 = vld [vmem:[#allocation44_spill] sm:$0xff] }
 0x32c   : > { %v4429_v17 = vpack.c.bf16 %v8227_v13, %v8224_v45  ;;  %v8240_v62 = vadd.f32 %v4154_v61, %v9231_v59  ;;  %v8243_v30 = vadd.f32 %v4155_v8, %v9232_v0  ;;  %v3980_v46 = vrot.slane %v9188_v47, 1  ;;  %v9235_v8 = vld [vmem:[#allocation48_spill] sm:$0xff] }
 0x32d   : > { %v4430_v2 = vpack.c.bf16 %v8233_v54, %v8230_v25  ;;  %v3979_v16 = vsel %vm2930_vm7, %v3977_v5, %v3978_v32  ;;  %v4031_v34 = vsel %vm2930_vm7, %v3978_v32, %v9230_v22  ;;  %v3981_v19 = vrot.slane %v9233_v7, 1  ;;  %v9237_v22 = vld [vmem:[#allocation52_spill] sm:$0xff]  ;;  %v9238_v32 = vld [vmem:[#allocation2_spill] sm:$0xff] }
 0x32e   : > { %v4431_v45 = vpack.c.bf16 %v8243_v30, %v8240_v62  ;;  %v4156_v13 = vmul.f32 0.25, %v3979_v16  ;;  %v4157_v61 = vmul.f32 0.25, %v4031_v34  ;;  %v9236_v10 = vpack.c.bf16 %v9234_v60, %v9235_v8  ;;  %v9240_v62 = vld [vmem:[#allocation20_spill] sm:$0xff] }
 0x32f   : > { %v3982_v47 = vsel %vm2930_vm7, %v3980_v46, %v3981_v19  ;;  %v4032_v25 = vsel %vm2930_vm7, %v3981_v19, %v9233_v7  ;;  %v3983_v54 = vrot.slane %v9191_v11, 1  ;;  %v3984_v5 = vrot.slane %v9193_v48, 1 }
 0x330   : > { %5800 = vmatmul.mubr.msk.bf16.gmra.mrb[108].mxu1 %vm572_vm0, %v9236_v10  ;;  %v9239_v59 = vpack.c.bf16 %v9237_v22, %v9238_v32  ;;  %v4188_v0 = vadd.f32 %v4156_v13, %v9240_v62  ;;  %v4189_v30 = vadd.f32 %v4157_v61, %v7993_v58  ;;  %v4158_v16 = vmul.f32 0.25, %v3982_v47  ;;  %v9241_v58 = vld [vmem:[#allocation55_spill] sm:$0xff]  ;;  %v9242_v61 = vld [vmem:[#allocation53_spill] sm:$0xff]  ;;  %v9252_v62 = vld [vmem:[#allocation24_spill] sm:$0xff] }
 0x331   : > { %v4159_v34 = vmul.f32 0.25, %v4032_v25  ;;  %v3985_v46 = vsel %vm2930_vm7, %v3983_v54, %v3984_v5  ;;  %v4033_v7 = vsel %vm2930_vm7, %v3984_v5, %v9193_v48  ;;  %v9243_v47 = vpack.c.bf16 %v9241_v58, %v9242_v61  ;;  %v9244_v54 = vld [vmem:[#allocation11_spill] sm:$0xff] }
 0x332   : > { %5803 = vmatprep.mubr.msk.bf16.mxu1 %vm572_vm0, %v9239_v59  ;;  %v4432_v19 = vpack.c.bf16 %v4189_v30, %v4188_v0  ;;  %v4190_v11 = vadd.f32 %v4158_v16, %v8010_v56  ;;  %v4160_v8 = vmul.f32 0.25, %v3985_v46  ;;  %v4161_v10 = vmul.f32 0.25, %v4033_v7  ;;  %v9245_v48 = vld [vmem:[#allocation7_spill] sm:$0xff]  ;;  %v9247_v56 = vld [vmem:[#allocation18_spill] sm:$0xff]  ;;  %v9255_v16 = vld [vmem:[#allocation25_spill] sm:$0xff] }
 0x333   : > { %v4191_v60 = vadd.f32 %v4159_v34, %v8013_v42  ;;  %v9246_v5 = vpack.c.bf16 %v9244_v54, %v9245_v48  ;;  %v9248_v42 = vld [vmem:[#allocation12_spill] sm:$0xff]  ;;  %v9254_v30 = vld [vmem:[#allocation26_spill] sm:$0xff] }
 0x334   : > { %v4192_v32 = vadd.f32 %v4160_v8, %v8030_v24  ;;  %v4193_v13 = vadd.f32 %v4161_v10, %v8033_v28  ;;  %v9249_v59 = vpack.c.bf16 %v9247_v56, %v9248_v42  ;;  %v9250_v24 = vpack.c.bf16 %v8002_v40, %v7998_v50  ;;  %v9251_v28 = vld [vmem:[#allocation21_spill] sm:$0xff] }
 0x335   : > { %v4433_v22 = vpack.c.bf16 %v4191_v60, %v4190_v11  ;;  %v9253_v0 = vpack.c.bf16 %v9251_v28, %v9252_v62  ;;  %v9256_v34 = vpack.c.bf16 %v9254_v30, %v9255_v16 }
 0x336   : > { %v4434_v25 = vpack.c.bf16 %v4193_v13, %v4192_v32 }
 0x338   : > { %5804 = vmatmul.mubr.msk.bf16.gmra.mrb[112].mxu1 %vm572_vm0, %v9243_v47 }
 0x339   : > { %5807 = vmatprep.mubr.msk.bf16.mxu1 %vm572_vm0, %v9246_v5 }
 0x340   : > { %5808 = vmatmul.mubr.msk.bf16.gmra.mrb[116].mxu1 %vm572_vm0, %v9249_v59 }
 0x341   : > { %5811 = vmatprep.mubr.msk.bf16.mxu1 %vm572_vm0, %v9250_v24 }
 0x348   : > { %5812 = vmatmul.mubr.msk.bf16.gmra.mrb[120].mxu1 %vm572_vm0, %v9253_v0 }
 0x349   : > { %5815 = vmatprep.mubr.msk.bf16.mxu1 %vm572_vm0, %v9256_v34 }
 0x350   : > { %5816 = vmatmul.mubr.msk.bf16.gmra.mrb[124].mxu1 %vm572_vm0, %v4209_v3 }
 0x351   : > { %5821 = vmatprep.mubr.msk.bf16.mxu1 %vm572_vm0, %v4419_v31 }
 0x353   : > { %v8308_v50 = vpop.f32.mrb[32].mxu1 }
 0x354   : > { %v8310_v40 = vpop.f32.mrb[33].mxu1 }
 0x355   : > { %v8312_v46 = vpop.f32.mrb[34].mxu1 }
 0x356   : > { %v8314_v7 = vpop.f32.mrb[35].mxu1 }
 0x358   : > { %5822 = vmatmul.mubr.msk.bf16.vlgmr.msra.gmra.mrb[128].mxu1 %vm572_vm0, %v4420_v23 }
 0x359   : > { %5825 = vmatprep.mubr.msk.bf16.mxu1 %vm572_vm0, %v4421_v49 }
 0x360   : > { %5826 = vmatmul.mubr.msk.bf16.gmra.mrb[132].mxu1 %vm572_vm0, %v4422_v20 }
 0x361   : > { %5829 = vmatprep.mubr.msk.bf16.mxu1 %vm572_vm0, %v4423_v33  ;;  %v8332_v52 = vpop.f32.mrb[36].mxu1 }
 0x362   : > { %v8334_v26 = vpop.f32.mrb[37].mxu1 }
 0x363   : > { %v8336_v23 = vpop.f32.mrb[38].mxu1 }
 0x364   : > { %v8338_v39 = vpop.f32.mrb[39].mxu1 }
 0x368   : > { %5830 = vmatmul.mubr.msk.bf16.gmra.mrb[136].mxu1 %vm572_vm0, %v4424_v35 }
 0x369   : > { %5833 = vmatprep.mubr.msk.bf16.mxu1 %vm572_vm0, %v4425_v1 }
 0x36e   : > { %v8348_v3 = vpop.f32.mrb[40].mxu1 }
 0x36f   : > { %v8350_v55 = vpop.f32.mrb[41].mxu1 }
 0x370   : > { %5834 = vmatmul.mubr.msk.bf16.gmra.mrb[140].mxu1 %vm572_vm0, %v4426_v38  ;;  %v8356_v12 = vpop.f32.mrb[42].mxu1 }
 0x371   : > { %5837 = vmatprep.mubr.msk.bf16.mxu1 %vm572_vm0, %v4427_v21  ;;  %v8362_v36 = vpop.f32.mrb[43].mxu1 }
 0x378   : > { %5838 = vmatmul.mubr.msk.bf16.gmra.mrb[144].mxu1 %vm572_vm0, %v9257_v63 }
 0x379   : > { %5841 = vmatprep.mubr.msk.bf16.mxu1 %vm572_vm0, %v4429_v17 }
 0x37d   : > { %v8369_v6 = vpop.f32.mrb[44].mxu1 }
 0x37e   : > { %v8371_v31 = vpop.f32.mrb[45].mxu1 }
 0x37f   : > { %v8373_v49 = vpop.f32.mrb[46].mxu1 }
 0x380   : > { %5842 = vmatmul.mubr.msk.bf16.gmra.mrb[148].mxu1 %vm572_vm0, %v4430_v2  ;;  %v8376_v4 = vpop.f32.mrb[47].mxu1 }
 0x381   : > { %5845 = vmatprep.mubr.msk.bf16.mxu1 %vm572_vm0, %v4431_v45 }
 0x388   : > { %5846 = vmatmul.mubr.msk.bf16.gmra.mrb[152].mxu1 %vm572_vm0, %v4432_v19 }
 0x389   : > { %5849 = vmatprep.mubr.msk.bf16.mxu1 %vm572_vm0, %v4433_v22 }
 0x38b   : > { %v8381_v57 = vpop.f32.mrb[48].mxu1 }
 0x38c   : > { %v8383_v29 = vpop.f32.mrb[49].mxu1 }
 0x38d   : > { %v8385_v20 = vpop.f32.mrb[50].mxu1 }
 0x38e   : > { %v8387_v43 = vpop.f32.mrb[51].mxu1 }
 0x390   : > { %5850 = vmatmul.mubr.msk.bf16.gmra.mrb[156].mxu1 %vm572_vm0, %v4434_v25 }
 0x393   : > { %v8390_v41 = vpop.f32.mrb[52].mxu1 }
 0x394   : > { %v8392_v15 = vpop.f32.mrb[53].mxu1 }
 0x395   : > { %v8394_v33 = vpop.f32.mrb[54].mxu1 }
 0x396   : > { %v8396_v35 = vpop.f32.mrb[55].mxu1 }
 0x39b   : > { %v8398_v53 = vpop.f32.mrb[56].mxu1 }
 0x39c   : > { %v8400_v27 = vpop.f32.mrb[57].mxu1 }
 0x39d   : > { %v8402_v1 = vpop.f32.mrb[58].mxu1 }
 0x39e   : > { %v8404_v14 = vpop.f32.mrb[59].mxu1 }
 0x3a3   : > { %v8406_v51 = vpop.f32.mrb[60].mxu1 }
 0x3a4   : > { %v8408_v38 = vpop.f32.mrb[61].mxu1 }
 0x3a5   : > { %v8410_v18 = vpop.f32.mrb[62].mxu1 }
 0x3a6   : > { %v8412_v37 = vpop.f32.mrb[63].mxu1 }
 0x3ab   : > { %v5755_v9 = vpop.f32.mrb[64].mxu1 }
 0x3ac   : > { %v3531_v21 = vadd.f32 %v5755_v9, %v8417_v44  ;;  %v3522_v17 = vpop.f32.mrb[65].mxu1 }
 0x3ad   : > { %v3523_v2 = vadd.f32 %v8417_v44, %v3522_v17  ;;  %v5756_v45 = vpop.f32.mrb[66].mxu1 }
 0x3ae   : > { %3685 = vrot.lane.b32.xlu1 %v3531_v21, %s6157_s15  ;;  %v3525_v19 = vpop.f32.mrb[67].mxu1  ;;  %v3534_v11 = vadd.f32 %v5756_v45, %v8417_v44 }
 0x3af   : > { %3681 = vrot.lane.b32.xlu0 %v3523_v2, %s6157_s15  ;;  %v3526_v60 = vadd.f32 %v8417_v44, %v3525_v19 }
 0x3b2   : > { %3687 = vrot.lane.b32.xlu1 %v3534_v11, %s6157_s15 }
 0x3b3   : > { %v5759_v8 = vpop.f32.mrb[68].mxu1  ;;  %3683 = vrot.lane.b32.xlu0 %v3526_v60, %s6157_s15 }
 0x3b4   : > { %v3547_v10 = vadd.f32 %v5759_v8, %v8417_v44  ;;  %v3538_v22 = vpop.f32.mrb[69].mxu1 }
 0x3b5   : > { %v5760_v32 = vpop.f32.mrb[70].mxu1  ;;  %v3539_v61 = vadd.f32 %v8417_v44, %v3538_v22 }
 0x3b6   : > { %v3550_v13 = vadd.f32 %v5760_v32, %v8417_v44  ;;  %v3541_v58 = vpop.f32.mrb[71].mxu1 }
 0x3b7   : > { %3693 = vrot.lane.b32.xlu0 %v3547_v10, %s6157_s15  ;;  %v3542_v47 = vadd.f32 %v8417_v44, %v3541_v58 }
 0x3b8   : > { %3695 = vrot.lane.b32.xlu1 %v3550_v13, %s6157_s15 }
 0x3bb   : > { %v5763_v25 = vpop.f32.mrb[72].mxu1  ;;  %3689 = vrot.lane.b32.xlu0 %v3539_v61, %s6157_s15 }
 0x3bc   : > { %v3563_v54 = vadd.f32 %v5763_v25, %v8417_v44  ;;  %v3554_v48 = vpop.f32.mrb[73].mxu1  ;;  %3691 = vrot.lane.b32.xlu1 %v3542_v47, %s6157_s15 }
 0x3bd   : > { %v5764_v5 = vpop.f32.mrb[74].mxu1  ;;  %v3555_v59 = vadd.f32 %v8417_v44, %v3554_v48 }
 0x3be   : > { %v3566_v56 = vadd.f32 %v5764_v5, %v8417_v44  ;;  %v3557_v42 = vpop.f32.mrb[75].mxu1 }
 0x3bf   : > { %3701 = vrot.lane.b32.xlu0 %v3563_v54, %s6157_s15  ;;  %v3558_v24 = vadd.f32 %v8417_v44, %v3557_v42 }
 0x3c0   : > { %3703 = vrot.lane.b32.xlu1 %v3566_v56, %s6157_s15 }
 0x3c3   : > { %v5767_v28 = vpop.f32.mrb[76].mxu1  ;;  %3697 = vrot.lane.b32.xlu0 %v3555_v59, %s6157_s15 }
 0x3c4   : > { %v3579_v62 = vadd.f32 %v5767_v28, %v8417_v44  ;;  %v3570_v0 = vpop.f32.mrb[77].mxu1  ;;  %3699 = vrot.lane.b32.xlu1 %v3558_v24, %s6157_s15 }
 0x3c5   : > { %v5768_v30 = vpop.f32.mrb[78].mxu1  ;;  %v3571_v63 = vadd.f32 %v8417_v44, %v3570_v0 }
 0x3c6   : > { %v3582_v16 = vadd.f32 %v5768_v30, %v8417_v44  ;;  %v3573_v34 = vpop.f32.mrb[79].mxu1 }
 0x3c7   : > { %3709 = vrot.lane.b32.xlu0 %v3579_v62, %s6157_s15  ;;  %v3574_v9 = vadd.f32 %v8417_v44, %v3573_v34 }
 0x3c8   : > { %3711 = vrot.lane.b32.xlu1 %v3582_v16, %s6157_s15 }
 0x3cb   : > { %v5771_v21 = vpop.f32.mrb[80].mxu1  ;;  %3705 = vrot.lane.b32.xlu0 %v3571_v63, %s6157_s15 }
 0x3cc   : > { %v3595_v17 = vadd.f32 %v5771_v21, %v8417_v44  ;;  %v3586_v2 = vpop.f32.mrb[81].mxu1  ;;  %3707 = vrot.lane.b32.xlu1 %v3574_v9, %s6157_s15 }
 0x3cd   : > { %v5772_v45 = vpop.f32.mrb[82].mxu1  ;;  %v3587_v60 = vadd.f32 %v8417_v44, %v3586_v2 }
 0x3ce   : > { %v3598_v19 = vadd.f32 %v5772_v45, %v8417_v44  ;;  %v3589_v11 = vpop.f32.mrb[83].mxu1 }
 0x3cf   : > { %3717 = vrot.lane.b32.xlu0 %v3595_v17, %s6157_s15  ;;  %v3590_v8 = vadd.f32 %v8417_v44, %v3589_v11 }
 0x3d0   : > { %3719 = vrot.lane.b32.xlu1 %v3598_v19, %s6157_s15 }
 0x3d3   : > { %v5775_v10 = vpop.f32.mrb[84].mxu1  ;;  %3713 = vrot.lane.b32.xlu0 %v3587_v60, %s6157_s15 }
 0x3d4   : > { %v3611_v22 = vadd.f32 %v5775_v10, %v8417_v44  ;;  %v3602_v32 = vpop.f32.mrb[85].mxu1  ;;  %3715 = vrot.lane.b32.xlu1 %v3590_v8, %s6157_s15 }
 0x3d5   : > { %v5776_v13 = vpop.f32.mrb[86].mxu1  ;;  %v3603_v47 = vadd.f32 %v8417_v44, %v3602_v32 }
 0x3d6   : > { %v3614_v58 = vadd.f32 %v5776_v13, %v8417_v44  ;;  %v3605_v61 = vpop.f32.mrb[87].mxu1 }
 0x3d7   : > { %3725 = vrot.lane.b32.xlu0 %v3611_v22, %s6157_s15  ;;  %v3606_v25 = vadd.f32 %v8417_v44, %v3605_v61 }
 0x3d8   : > { %3727 = vrot.lane.b32.xlu1 %v3614_v58, %s6157_s15 }
 0x3db   : > { %v5779_v54 = vpop.f32.mrb[88].mxu1  ;;  %3721 = vrot.lane.b32.xlu0 %v3603_v47, %s6157_s15 }
 0x3dc   : > { %v3627_v48 = vadd.f32 %v5779_v54, %v8417_v44  ;;  %v3618_v5 = vpop.f32.mrb[89].mxu1  ;;  %3723 = vrot.lane.b32.xlu1 %v3606_v25, %s6157_s15 }
 0x3dd   : > { %v5780_v56 = vpop.f32.mrb[90].mxu1  ;;  %v3619_v24 = vadd.f32 %v8417_v44, %v3618_v5 }
 0x3de   : > { %v3630_v42 = vadd.f32 %v5780_v56, %v8417_v44  ;;  %v3621_v59 = vpop.f32.mrb[91].mxu1 }
 0x3df   : > { %3733 = vrot.lane.b32.xlu0 %v3627_v48, %s6157_s15  ;;  %v3622_v28 = vadd.f32 %v8417_v44, %v3621_v59 }
 0x3e0   : > { %3735 = vrot.lane.b32.xlu1 %v3630_v42, %s6157_s15 }
 0x3e3   : > { %v5783_v62 = vpop.f32.mrb[92].mxu1  ;;  %3729 = vrot.lane.b32.xlu0 %v3619_v24, %s6157_s15 }
 0x3e4   : > { %v3643_v0 = vadd.f32 %v5783_v62, %v8417_v44  ;;  %v3634_v30 = vpop.f32.mrb[93].mxu1  ;;  %3731 = vrot.lane.b32.xlu1 %v3622_v28, %s6157_s15 }
 0x3e5   : > { %v5784_v16 = vpop.f32.mrb[94].mxu1  ;;  %v3635_v9 = vadd.f32 %v8417_v44, %v3634_v30 }
 0x3e6   : > { %v3646_v34 = vadd.f32 %v5784_v16, %v8417_v44  ;;  %v3637_v63 = vpop.f32.mrb[95].mxu1 }
 0x3e7   : > { %3741 = vrot.lane.b32.xlu0 %v3643_v0, %s6157_s15  ;;  %v3638_v21 = vadd.f32 %v8417_v44, %v3637_v63  ;;  %v3306_v63 = vadd.f32 %v8308_v50, %v8417_v44 }
 0x3e8   : > { %3743 = vrot.lane.b32.xlu1 %v3646_v34, %s6157_s15 }
 0x3eb   : > { %v8481_v17 = vpop.f32.mrb[96].mxu1  ;;  %3737 = vrot.lane.b32.xlu0 %v3635_v9, %s6157_s15  ;;  %v3298_v9 = vadd.f32 %v8417_v44, %v8310_v40  ;;  %v3301_v40 = vadd.f32 %v8417_v44, %v8314_v7  ;;  %v3322_v7 = vadd.f32 %v8332_v52, %v8417_v44 }
 0x3ec   : > { %v8484_v2 = vpop.f32.mrb[97].mxu1  ;;  %3739 = vrot.lane.b32.xlu1 %v3638_v21, %s6157_s15 }
 0x3ed   : > { %v8487_v45 = vpop.f32.mrb[98].mxu1 }
 0x3ee   : > { %v8489_v19 = vpop.f32.mrb[99].mxu1 }
 0x3f3   : > { %v8491_v11 = vpop.f32.mrb[100].mxu1 }
 0x3f4   : > { %v8493_v60 = vpop.f32.mrb[101].mxu1 }
 0x3f5   : > { %v8495_v8 = vpop.f32.mrb[102].mxu1 }
 0x3f6   : > { %v8497_v10 = vpop.f32.mrb[103].mxu1 }
 0x3fb   : > { %v8499_v22 = vpop.f32.mrb[104].mxu1 }
 0x3fc   : > { %v8501_v32 = vpop.f32.mrb[105].mxu1 }
 0x3fd   : > { %v8503_v13 = vpop.f32.mrb[106].mxu1 }
 0x3fe   : > { %v8505_v58 = vpop.f32.mrb[107].mxu1 }
 0x403   : > { %v8507_v61 = vpop.f32.mrb[108].mxu1 }
 0x404   : > { %v8509_v47 = vpop.f32.mrb[109].mxu1 }
 0x405   : > { %v8511_v25 = vpop.f32.mrb[110].mxu1 }
 0x406   : > { %v8513_v54 = vpop.f32.mrb[111].mxu1 }
 0x40b   : > { %v8515_v48 = vpop.f32.mrb[112].mxu1 }
 0x40c   : > { %v8517_v5 = vpop.f32.mrb[113].mxu1 }
 0x40d   : > { %v8519_v56 = vpop.f32.mrb[114].mxu1 }
 0x40e   : > { %v8521_v42 = vpop.f32.mrb[115].mxu1 }
 0x413   : > { %v8523_v59 = vpop.f32.mrb[116].mxu1 }
 0x414   : > { %v8525_v24 = vpop.f32.mrb[117].mxu1 }
 0x415   : > { %9258 = vst [vmem:[#allocation30_spill] sm:$0xff] %v8525_v24  ;;  %v8527_v28 = vpop.f32.mrb[118].mxu1 }
 0x416   : > { %v8529_v62 = vpop.f32.mrb[119].mxu1 }
 0x417   : > { %9259 = vst [vmem:[#allocation27_spill] sm:$0xff] %v8529_v62 }
 0x41b   : > { %v8531_v0 = vpop.f32.mrb[120].mxu1 }
 0x41c   : > { %9260 = vst [vmem:[#allocation33_spill] sm:$0xff] %v8531_v0  ;;  %v8534_v30 = vpop.f32.mrb[121].mxu1  ;;  %v3309_v0 = vadd.f32 %v8312_v46, %v8417_v44 }
 0x41d   : > { %9261 = vst [vmem:[#allocation35_spill] sm:$0xff] %v8534_v30  ;;  %v8536_v16 = vpop.f32.mrb[122].mxu1 }
 0x41e   : > { %9262 = vst [vmem:[#allocation36_spill] sm:$0xff] %v8536_v16  ;;  %v8538_v34 = vpop.f32.mrb[123].mxu1 }
 0x41f   : > { %9263 = vst [vmem:[#allocation41_spill] sm:$0xff] %v8538_v34 }
 0x420   : > { %v3686_v21 = vpop.permute.xlu1 %3685 }
 0x421   : > { %v3780_v30 = vsel %vm3777_vm8, %v3306_v63, %v3686_v21  ;;  %v3682_v34 = vpop.permute.xlu0 %3681 }
 0x422   : > { %4809 = vst.msk [vmem:[%s8543_s19 + $0x20] sm:$0xff] %vm4804_vm9, %v3780_v30  ;;  %v3778_v16 = vsel %vm3777_vm8, %v3298_v9, %v3682_v34  ;;  %v3325_v9 = vadd.f32 %v8336_v23, %v8417_v44  ;;  %v3317_v23 = vadd.f32 %v8417_v44, %v8338_v39 }
 0x423   : > { %4805 = vst.msk [vmem:[%s8543_s19] sm:$0xff] %vm4804_vm9, %v3778_v16  ;;  %v8557_v50 = vpop.f32.mrb[124].mxu1 }
 0x424   : > { %v3688_v62 = vpop.permute.xlu1 %3687  ;;  %v8561_v24 = vpop.f32.mrb[125].mxu1 }
 0x425   : > { %v3781_v63 = vsel %vm3777_vm8, %v3309_v0, %v3688_v62  ;;  %v8564_v30 = vpop.f32.mrb[126].mxu1  ;;  %v3684_v34 = vpop.permute.xlu0 %3683 }
 0x426   : > { %9264 = vst [vmem:[#allocation46_spill] sm:$0xff] %v8564_v30  ;;  %4810 = vst.msk [vmem:[%s8543_s19 + $0x28] sm:$0xff] %vm4804_vm9, %v3781_v63  ;;  %v3779_v46 = vsel %vm3777_vm8, %v3301_v40, %v3684_v34  ;;  %v8569_v16 = vpop.f32.mrb[127].mxu1  ;;  %v3314_v34 = vadd.f32 %v8417_v44, %v8334_v26 }
 0x427   : > { %4806 = vst.msk [vmem:[%s8543_s19 + $0x8] sm:$0xff] %vm4804_vm9, %v3779_v46 }
 0x429   : > { %v3694_v21 = vpop.permute.xlu0 %3693 }
 0x42a   : > { %v3784_v62 = vsel %vm3777_vm8, %v3322_v7, %v3694_v21  ;;  %v3696_v0 = vpop.permute.xlu1 %3695 }
 0x42b   : > { %4817 = vst.msk [vmem:[%s8543_s19 + $0x60] sm:$0xff] %vm4804_vm9, %v3784_v62  ;;  %v3785_v63 = vsel %vm3777_vm8, %v3325_v9, %v3696_v0  ;;  %v5823_v40 = vpop.f32.mrb[128].mxu1 }
 0x42c   : > { %4818 = vst.msk [vmem:[%s8543_s19 + $0x68] sm:$0xff] %vm4804_vm9, %v3785_v63  ;;  %v4526_v52 = vadd.f32 %v5823_v40, %v8417_v44  ;;  %v4517_v46 = vpop.f32.mrb[129].mxu1  ;;  %v3338_v63 = vadd.f32 %v8348_v3, %v8417_v44  ;;  %v3341_v40 = vadd.f32 %v8356_v12, %v8417_v44 }
 0x42d   : > { %v5824_v7 = vpop.f32.mrb[130].mxu1  ;;  %v3690_v21 = vpop.permute.xlu0 %3689  ;;  %v4518_v39 = vadd.f32 %v8417_v44, %v4517_v46 }
 0x42e   : > { %v4529_v30 = vadd.f32 %v5824_v7, %v8417_v44  ;;  %v3782_v62 = vsel %vm3777_vm8, %v3314_v34, %v3690_v21  ;;  %v4520_v9 = vpop.f32.mrb[131].mxu1  ;;  %v3692_v0 = vpop.permute.xlu1 %3691  ;;  %4680 = vrot.lane.b32.xlu0 %v4526_v52, %s6157_s15 }
 0x42f   : > { %4813 = vst.msk [vmem:[%s8543_s19 + $0x40] sm:$0xff] %vm4804_vm9, %v3782_v62  ;;  %v3783_v26 = vsel %vm3777_vm8, %v3317_v23, %v3692_v0  ;;  %v4521_v52 = vadd.f32 %v8417_v44, %v4520_v9  ;;  %v3333_v62 = vadd.f32 %v8417_v44, %v8362_v36 }
 0x430   : > { %4814 = vst.msk [vmem:[%s8543_s19 + $0x48] sm:$0xff] %vm4804_vm9, %v3783_v26  ;;  %4682 = vrot.lane.b32.xlu1 %v4529_v30, %s6157_s15  ;;  %v3330_v30 = vadd.f32 %v8417_v44, %v8350_v55 }
 0x431   : > { %v3702_v34 = vpop.permute.xlu0 %3701 }
 0x432   : > { %v3788_v7 = vsel %vm3777_vm8, %v3338_v63, %v3702_v34  ;;  %v3704_v21 = vpop.permute.xlu1 %3703  ;;  %4676 = vrot.lane.b32.xlu0 %v4518_v39, %s6157_s15  ;;  %v3354_v34 = vadd.f32 %v8369_v6, %v8417_v44 }
 0x433   : > { %4825 = vst.msk [vmem:[%s8543_s19 + $0xa0] sm:$0xff] %vm4804_vm9, %v3788_v7  ;;  %v3789_v3 = vsel %vm3777_vm8, %v3341_v40, %v3704_v21  ;;  %v5827_v46 = vpop.f32.mrb[132].mxu1 }
 0x434   : > { %4826 = vst.msk [vmem:[%s8543_s19 + $0xa8] sm:$0xff] %vm4804_vm9, %v3789_v3  ;;  %v4542_v12 = vadd.f32 %v5827_v46, %v8417_v44  ;;  %v4533_v23 = vpop.f32.mrb[133].mxu1  ;;  %4678 = vrot.lane.b32.xlu1 %v4521_v52, %s6157_s15  ;;  %v3357_v52 = vadd.f32 %v8373_v49, %v8417_v44 }
 0x435   : > { %v5828_v9 = vpop.f32.mrb[134].mxu1  ;;  %v3698_v0 = vpop.permute.xlu0 %3697  ;;  %v4534_v36 = vadd.f32 %v8417_v44, %v4533_v23 }
 0x436   : > { %v4545_v26 = vadd.f32 %v5828_v9, %v8417_v44  ;;  %v3786_v63 = vsel %vm3777_vm8, %v3330_v30, %v3698_v0  ;;  %v4536_v39 = vpop.f32.mrb[135].mxu1  ;;  %v3700_v55 = vpop.permute.xlu1 %3699  ;;  %4688 = vrot.lane.b32.xlu0 %v4542_v12, %s6157_s15  ;;  %v3346_v12 = vadd.f32 %v8417_v44, %v8371_v31 }
 0x437   : > { %4821 = vst.msk [vmem:[%s8543_s19 + $0x80] sm:$0xff] %vm4804_vm9, %v3786_v63  ;;  %v3787_v40 = vsel %vm3777_vm8, %v3333_v62, %v3700_v55  ;;  %v4537_v21 = vadd.f32 %v8417_v44, %v4536_v39  ;;  %v3349_v62 = vadd.f32 %v8417_v44, %v8376_v4 }
 0x438   : > { %4822 = vst.msk [vmem:[%s8543_s19 + $0x88] sm:$0xff] %vm4804_vm9, %v3787_v40  ;;  %4690 = vrot.lane.b32.xlu1 %v4545_v26, %s6157_s15  ;;  %v3370_v40 = vadd.f32 %v8381_v57, %v8417_v44 }
 0x439   : > { %v3710_v7 = vpop.permute.xlu0 %3709 }
 0x43a   : > { %v3792_v3 = vsel %vm3777_vm8, %v3354_v34, %v3710_v7  ;;  %v3712_v46 = vpop.permute.xlu1 %3711  ;;  %4684 = vrot.lane.b32.xlu0 %v4534_v36, %s6157_s15  ;;  %v3373_v34 = vadd.f32 %v8385_v20, %v8417_v44 }
 0x43b   : > { %4833 = vst.msk [vmem:[%s8543_s19 + $0xe0] sm:$0xff] %vm4804_vm9, %v3792_v3  ;;  %v3793_v6 = vsel %vm3777_vm8, %v3357_v52, %v3712_v46  ;;  %v5831_v30 = vpop.f32.mrb[136].mxu1  ;;  %v3362_v46 = vadd.f32 %v8417_v44, %v8383_v29 }
 0x43c   : > { %4834 = vst.msk [vmem:[%s8543_s19 + $0xe8] sm:$0xff] %vm4804_vm9, %v3793_v6  ;;  %v4558_v49 = vadd.f32 %v5831_v30, %v8417_v44  ;;  %v4549_v23 = vpop.f32.mrb[137].mxu1  ;;  %4686 = vrot.lane.b32.xlu1 %v4537_v21, %s6157_s15  ;;  %v3365_v30 = vadd.f32 %v8417_v44, %v8387_v43 }
 0x43d   : > { %v5832_v9 = vpop.f32.mrb[138].mxu1  ;;  %v3706_v0 = vpop.permute.xlu0 %3705  ;;  %v4550_v4 = vadd.f32 %v8417_v44, %v4549_v23 }
 0x43e   : > { %v4561_v26 = vadd.f32 %v5832_v9, %v8417_v44  ;;  %v3790_v63 = vsel %vm3777_vm8, %v3346_v12, %v3706_v0  ;;  %v4552_v39 = vpop.f32.mrb[139].mxu1  ;;  %v3708_v31 = vpop.permute.xlu1 %3707  ;;  %4696 = vrot.lane.b32.xlu0 %v4558_v49, %s6157_s15 }
 0x43f   : > { %4829 = vst.msk [vmem:[%s8543_s19 + $0xc0] sm:$0xff] %vm4804_vm9, %v3790_v63  ;;  %v3791_v55 = vsel %vm3777_vm8, %v3349_v62, %v3708_v31  ;;  %v4553_v52 = vadd.f32 %v8417_v44, %v4552_v39  ;;  %v3389_v63 = vadd.f32 %v8394_v33, %v8417_v44 }
 0x440   : > { %4830 = vst.msk [vmem:[%s8543_s19 + $0xc8] sm:$0xff] %vm4804_vm9, %v3791_v55  ;;  %4698 = vrot.lane.b32.xlu1 %v4561_v26, %s6157_s15  ;;  %v3386_v26 = vadd.f32 %v8390_v41, %v8417_v44 }
 0x441   : > { %v3718_v36 = vpop.permute.xlu0 %3717 }
 0x442   : > { %v3796_v7 = vsel %vm3777_vm8, %v3370_v40, %v3718_v36  ;;  %v3720_v21 = vpop.permute.xlu1 %3719  ;;  %4692 = vrot.lane.b32.xlu0 %v4550_v4, %s6157_s15 }
 0x443   : > { %4841 = vst.msk [vmem:[%s8543_s19 + $0x120] sm:$0xff] %vm4804_vm9, %v3796_v7  ;;  %v3797_v57 = vsel %vm3777_vm8, %v3373_v34, %v3720_v21  ;;  %v5835_v3 = vpop.f32.mrb[140].mxu1  ;;  %v3378_v34 = vadd.f32 %v8417_v44, %v8392_v15 }
 0x444   : > { %4842 = vst.msk [vmem:[%s8543_s19 + $0x128] sm:$0xff] %vm4804_vm9, %v3797_v57  ;;  %v4574_v20 = vadd.f32 %v5835_v3, %v8417_v44  ;;  %v4565_v6 = vpop.f32.mrb[141].mxu1  ;;  %4694 = vrot.lane.b32.xlu1 %v4553_v52, %s6157_s15  ;;  %v3381_v52 = vadd.f32 %v8417_v44, %v8396_v35 }
 0x445   : > { %v5836_v12 = vpop.f32.mrb[142].mxu1  ;;  %v3714_v49 = vpop.permute.xlu0 %3713  ;;  %v4566_v43 = vadd.f32 %v8417_v44, %v4565_v6  ;;  %v3402_v6 = vadd.f32 %v8398_v53, %v8417_v44 }
 0x446   : > { %v4577_v23 = vadd.f32 %v5836_v12, %v8417_v44  ;;  %v3794_v62 = vsel %vm3777_vm8, %v3362_v46, %v3714_v49  ;;  %v4568_v9 = vpop.f32.mrb[143].mxu1  ;;  %v3716_v29 = vpop.permute.xlu1 %3715  ;;  %4704 = vrot.lane.b32.xlu0 %v4574_v20, %s6157_s15 }
 0x447   : > { %4837 = vst.msk [vmem:[%s8543_s19 + $0x100] sm:$0xff] %vm4804_vm9, %v3794_v62  ;;  %v3795_v0 = vsel %vm3777_vm8, %v3365_v30, %v3716_v29  ;;  %v4569_v31 = vadd.f32 %v8417_v44, %v4568_v9  ;;  %v3405_v30 = vadd.f32 %v8402_v1, %v8417_v44  ;;  %v3394_v29 = vadd.f32 %v8417_v44, %v8400_v27 }
 0x448   : > { %4838 = vst.msk [vmem:[%s8543_s19 + $0x108] sm:$0xff] %vm4804_vm9, %v3795_v0  ;;  %4706 = vrot.lane.b32.xlu1 %v4577_v23, %s6157_s15 }
 0x449   : > { %v3726_v39 = vpop.permute.xlu0 %3725 }
 0x44a   : > { %v3800_v55 = vsel %vm3777_vm8, %v3386_v26, %v3726_v39  ;;  %v3728_v40 = vpop.permute.xlu1 %3727  ;;  %4700 = vrot.lane.b32.xlu0 %v4566_v43, %s6157_s15  ;;  %v3397_v26 = vadd.f32 %v8417_v44, %v8404_v14 }
 0x44b   : > { %4849 = vst.msk [vmem:[%s8543_s19 + $0x160] sm:$0xff] %vm4804_vm9, %v3800_v55  ;;  %v3801_v41 = vsel %vm3777_vm8, %v3389_v63, %v3728_v40  ;;  %v5839_v4 = vpop.f32.mrb[144].mxu1 }
 0x44c   : > { %4850 = vst.msk [vmem:[%s8543_s19 + $0x168] sm:$0xff] %vm4804_vm9, %v3801_v41  ;;  %v4590_v33 = vadd.f32 %v5839_v4, %v8417_v44  ;;  %v4581_v36 = vpop.f32.mrb[145].mxu1  ;;  %4702 = vrot.lane.b32.xlu1 %v4569_v31, %s6157_s15  ;;  %v3418_v41 = vadd.f32 %v8406_v51, %v8417_v44  ;;  %v3421_v4 = vadd.f32 %v8410_v18, %v8417_v44 }
 0x44d   : > { %v5840_v7 = vpop.f32.mrb[146].mxu1  ;;  %v3722_v21 = vpop.permute.xlu0 %3721  ;;  %v4582_v35 = vadd.f32 %v8417_v44, %v4581_v36 }
 0x44e   : > { %v4593_v57 = vadd.f32 %v5840_v7, %v8417_v44  ;;  %v3798_v3 = vsel %vm3777_vm8, %v3378_v34, %v3722_v21  ;;  %v4584_v46 = vpop.f32.mrb[147].mxu1  ;;  %v3724_v15 = vpop.permute.xlu1 %3723  ;;  %4712 = vrot.lane.b32.xlu0 %v4590_v33, %s6157_s15  ;;  %v3410_v21 = vadd.f32 %v8417_v44, %v8408_v38 }
 0x44f   : > { %4845 = vst.msk [vmem:[%s8543_s19 + $0x140] sm:$0xff] %vm4804_vm9, %v3798_v3  ;;  %v3799_v20 = vsel %vm3777_vm8, %v3381_v52, %v3724_v15  ;;  %v4585_v49 = vadd.f32 %v8417_v44, %v4584_v46  ;;  %v3413_v3 = vadd.f32 %v8417_v44, %v8412_v37 }
 0x450   : > { %4846 = vst.msk [vmem:[%s8543_s19 + $0x148] sm:$0xff] %vm4804_vm9, %v3799_v20  ;;  %4714 = vrot.lane.b32.xlu1 %v4593_v57, %s6157_s15 }
 0x451   : > { %v3734_v12 = vpop.permute.xlu0 %3733 }
 0x452   : > { %v3804_v23 = vsel %vm3777_vm8, %v3402_v6, %v3734_v12  ;;  %v3736_v62 = vpop.permute.xlu1 %3735  ;;  %4708 = vrot.lane.b32.xlu0 %v4582_v35, %s6157_s15 }
 0x453   : > { %4857 = vst.msk [vmem:[%s8543_s19 + $0x1a0] sm:$0xff] %vm4804_vm9, %v3804_v23  ;;  %v3805_v53 = vsel %vm3777_vm8, %v3405_v30, %v3736_v62  ;;  %v5843_v9 = vpop.f32.mrb[148].mxu1 }
 0x454   : > { %4858 = vst.msk [vmem:[%s8543_s19 + $0x1a8] sm:$0xff] %vm4804_vm9, %v3805_v53  ;;  %v4606_v1 = vadd.f32 %v5843_v9, %v8417_v44  ;;  %v4597_v0 = vpop.f32.mrb[149].mxu1  ;;  %4710 = vrot.lane.b32.xlu1 %v4585_v49, %s6157_s15 }
 0x455   : > { %v5844_v43 = vpop.f32.mrb[150].mxu1  ;;  %v3730_v63 = vpop.permute.xlu0 %3729  ;;  %v4598_v14 = vadd.f32 %v8417_v44, %v4597_v0 }
 0x456   : > { %v4609_v39 = vadd.f32 %v5844_v43, %v8417_v44  ;;  %v3802_v31 = vsel %vm3777_vm8, %v3394_v29, %v3730_v63  ;;  %v4600_v55 = vpop.f32.mrb[151].mxu1  ;;  %v3732_v27 = vpop.permute.xlu1 %3731  ;;  %4720 = vrot.lane.b32.xlu0 %v4606_v1, %s6157_s15  ;;  %v4304_v63 = vadd.f32 %v8487_v45, %v8417_v44 }
 0x457   : > { %4853 = vst.msk [vmem:[%s8543_s19 + $0x180] sm:$0xff] %vm4804_vm9, %v3802_v31  ;;  %v3803_v40 = vsel %vm3777_vm8, %v3397_v26, %v3732_v27  ;;  %v4601_v33 = vadd.f32 %v8417_v44, %v4600_v55  ;;  %v4301_v26 = vadd.f32 %v8481_v17, %v8417_v44  ;;  %v4293_v55 = vadd.f32 %v8417_v44, %v8484_v2 }
 0x458   : > { %4854 = vst.msk [vmem:[%s8543_s19 + $0x188] sm:$0xff] %vm4804_vm9, %v3803_v40  ;;  %4722 = vrot.lane.b32.xlu1 %v4609_v39, %s6157_s15  ;;  %v4296_v40 = vadd.f32 %v8417_v44, %v8489_v19 }
 0x459   : > { %v3742_v34 = vpop.permute.xlu0 %3741 }
 0x45a   : > { %v3808_v36 = vsel %vm3777_vm8, %v3418_v41, %v3742_v34  ;;  %v3744_v52 = vpop.permute.xlu1 %3743  ;;  %4716 = vrot.lane.b32.xlu0 %v4598_v14, %s6157_s15  ;;  %v4317_v14 = vadd.f32 %v8491_v11, %v8417_v44  ;;  %v4320_v34 = vadd.f32 %v8495_v8, %v8417_v44 }
 0x45b   : > { %4865 = vst.msk [vmem:[%s8543_s19 + $0x1e0] sm:$0xff] %vm4804_vm9, %v3808_v36  ;;  %v3809_v51 = vsel %vm3777_vm8, %v3421_v4, %v3744_v52  ;;  %v5847_v7 = vpop.f32.mrb[152].mxu1  ;;  %v4309_v36 = vadd.f32 %v8417_v44, %v8493_v60 }
 0x45c   : > { %4866 = vst.msk [vmem:[%s8543_s19 + $0x1e8] sm:$0xff] %vm4804_vm9, %v3809_v51  ;;  %v4622_v18 = vadd.f32 %v5847_v7, %v8417_v44  ;;  %v4613_v57 = vpop.f32.mrb[153].mxu1  ;;  %4718 = vrot.lane.b32.xlu1 %v4601_v33, %s6157_s15  ;;  %v4312_v51 = vadd.f32 %v8417_v44, %v8497_v10 }
 0x45d   : > { %v5848_v46 = vpop.f32.mrb[154].mxu1  ;;  %v3738_v15 = vpop.permute.xlu0 %3737  ;;  %v4614_v12 = vadd.f32 %v8417_v44, %v4613_v57  ;;  %v4336_v57 = vadd.f32 %v8503_v13, %v8417_v44 }
 0x45e   : > { %v4625_v20 = vadd.f32 %v5848_v46, %v8417_v44  ;;  %v3806_v6 = vsel %vm3777_vm8, %v3410_v21, %v3738_v15  ;;  %v4616_v35 = vpop.f32.mrb[155].mxu1  ;;  %v3740_v30 = vpop.permute.xlu1 %3739  ;;  %4728 = vrot.lane.b32.xlu0 %v4622_v18, %s6157_s15  ;;  %v4333_v21 = vadd.f32 %v8499_v22, %v8417_v44  ;;  %v4325_v46 = vadd.f32 %v8417_v44, %v8501_v32 }
 0x45f   : > { %4861 = vst.msk [vmem:[%s8543_s19 + $0x1c0] sm:$0xff] %vm4804_vm9, %v3806_v6  ;;  %v3807_v38 = vsel %vm3777_vm8, %v3413_v3, %v3740_v30  ;;  %v4617_v37 = vadd.f32 %v8417_v44, %v4616_v35  ;;  %v4349_v35 = vadd.f32 %v8507_v61, %v8417_v44 }
 0x460   : > { %4862 = vst.msk [vmem:[%s8543_s19 + $0x1c8] sm:$0xff] %vm4804_vm9, %v3807_v38  ;;  %4730 = vrot.lane.b32.xlu1 %v4625_v20, %s6157_s15  ;;  %v4328_v20 = vadd.f32 %v8417_v44, %v8505_v58  ;;  %v4352_v38 = vadd.f32 %v8511_v25, %v8417_v44 }
 0x462   : > { %4724 = vrot.lane.b32.xlu0 %v4614_v12, %s6157_s15 }
 0x463   : > { %v5851_v49 = vpop.f32.mrb[156].mxu1 }
 0x464   : > { %v4629_v23 = vpop.f32.mrb[157].mxu1  ;;  %4726 = vrot.lane.b32.xlu1 %v4617_v37, %s6157_s15  ;;  %v4638_v1 = vadd.f32 %v5851_v49, %v8417_v44  ;;  %v4341_v37 = vadd.f32 %v8417_v44, %v8509_v47 }
 0x465   : > { %v4630_v62 = vadd.f32 %v8417_v44, %v4629_v23  ;;  %v5852_v53 = vpop.f32.mrb[158].mxu1  ;;  %v4344_v23 = vadd.f32 %v8417_v44, %v8513_v54 }
 0x466   : > { %v4632_v9 = vpop.f32.mrb[159].mxu1  ;;  %v4641_v0 = vadd.f32 %v5852_v53, %v8417_v44  ;;  %v4365_v53 = vadd.f32 %v8515_v48, %v8417_v44 }
 0x467   : > { %v4633_v29 = vadd.f32 %v8417_v44, %v4632_v9  ;;  %4732 = vrot.lane.b32.xlu0 %v4630_v62, %s6157_s15 }
 0x469   : > { %4734 = vrot.lane.b32.xlu1 %v4633_v29, %s6157_s15  ;;  %v4368_v29 = vadd.f32 %v8519_v56, %v8417_v44 }
 0x46b   : > { %4736 = vrot.lane.b32.xlu0 %v4638_v1, %s6157_s15 }
 0x46d   : > { %4738 = vrot.lane.b32.xlu1 %v4641_v0, %s6157_s15  ;;  %v4357_v0 = vadd.f32 %v8417_v44, %v8517_v5 }
 0x4a0   : > { %v4681_v43 = vpop.permute.xlu0 %4680 }
 0x4a1   : > { %v4774_v39 = vsel %vm3777_vm8, %v4301_v26, %v4681_v43  ;;  %v4360_v43 = vadd.f32 %v8417_v44, %v8521_v42 }
 0x4a2   : > { %4811 = vst.msk [vmem:[%s8543_s19 + $0x30] sm:$0xff] %vm4804_vm9, %v4774_v39  ;;  %v4683_v31 = vpop.permute.xlu1 %4682  ;;  %v4381_v39 = vadd.f32 %v8523_v59, %v8417_v44 }
 0x4a3   : > { %v4775_v27 = vsel %vm3777_vm8, %v4304_v63, %v4683_v31 }
 0x4a4   : > { %4812 = vst.msk [vmem:[%s8543_s19 + $0x38] sm:$0xff] %vm4804_vm9, %v4775_v27  ;;  %v4677_v17 = vpop.permute.xlu0 %4676 }
 0x4a5   : > { %v4772_v45 = vsel %vm3777_vm8, %v4293_v55, %v4677_v17  ;;  %v4384_v55 = vadd.f32 %v8527_v28, %v8417_v44  ;;  %v9265_v17 = vld [vmem:[#allocation30_spill] sm:$0xff] }
 0x4a6   : > { %4807 = vst.msk [vmem:[%s8543_s19 + $0x10] sm:$0xff] %vm4804_vm9, %v4772_v45  ;;  %v4679_v41 = vpop.permute.xlu1 %4678 }
 0x4a7   : > { %v4773_v2 = vsel %vm3777_vm8, %v4296_v40, %v4679_v41  ;;  %v4373_v40 = vadd.f32 %v8417_v44, %v9265_v17  ;;  %v9266_v41 = vld [vmem:[#allocation27_spill] sm:$0xff] }
 0x4a8   : > { %4808 = vst.msk [vmem:[%s8543_s19 + $0x18] sm:$0xff] %vm4804_vm9, %v4773_v2  ;;  %v4689_v4 = vpop.permute.xlu0 %4688 }
 0x4a9   : > { %v4778_v19 = vsel %vm3777_vm8, %v4317_v14, %v4689_v4  ;;  %v4376_v14 = vadd.f32 %v8417_v44, %v9266_v41  ;;  %v9267_v4 = vld [vmem:[#allocation33_spill] sm:$0xff] }
 0x4aa   : > { %4819 = vst.msk [vmem:[%s8543_s19 + $0x70] sm:$0xff] %vm4804_vm9, %v4778_v19  ;;  %v4691_v33 = vpop.permute.xlu1 %4690 }
 0x4ab   : > { %v4779_v11 = vsel %vm3777_vm8, %v4320_v34, %v4691_v33  ;;  %v4397_v34 = vadd.f32 %v9267_v4, %v8417_v44 }
 0x4ac   : > { %4820 = vst.msk [vmem:[%s8543_s19 + $0x78] sm:$0xff] %vm4804_vm9, %v4779_v11  ;;  %v4685_v52 = vpop.permute.xlu0 %4684 }
 0x4ad   : > { %v4776_v8 = vsel %vm3777_vm8, %v4309_v36, %v4685_v52  ;;  %v9268_v36 = vld [vmem:[#allocation36_spill] sm:$0xff] }
 0x4ae   : > { %4815 = vst.msk [vmem:[%s8543_s19 + $0x50] sm:$0xff] %vm4804_vm9, %v4776_v8  ;;  %v4687_v7 = vpop.permute.xlu1 %4686  ;;  %v4400_v11 = vadd.f32 %v9268_v36, %v8417_v44  ;;  %v9269_v8 = vld [vmem:[#allocation35_spill] sm:$0xff] }
 0x4af   : > { %v4777_v60 = vsel %vm3777_vm8, %v4312_v51, %v4687_v7  ;;  %v4389_v7 = vadd.f32 %v8417_v44, %v9269_v8 }
 0x4b0   : > { %4816 = vst.msk [vmem:[%s8543_s19 + $0x58] sm:$0xff] %vm4804_vm9, %v4777_v60  ;;  %v4697_v18 = vpop.permute.xlu0 %4696 }
 0x4b1   : > { %v4782_v10 = vsel %vm3777_vm8, %v4333_v21, %v4697_v18  ;;  %v9270_v18 = vld [vmem:[#allocation41_spill] sm:$0xff] }
 0x4b2   : > { %4827 = vst.msk [vmem:[%s8543_s19 + $0xb0] sm:$0xff] %vm4804_vm9, %v4782_v10  ;;  %v4699_v3 = vpop.permute.xlu1 %4698 }
 0x4b3   : > { %v4783_v22 = vsel %vm3777_vm8, %v4336_v57, %v4699_v3  ;;  %v4392_v57 = vadd.f32 %v8417_v44, %v9270_v18 }
 0x4b4   : > { %4828 = vst.msk [vmem:[%s8543_s19 + $0xb8] sm:$0xff] %vm4804_vm9, %v4783_v22  ;;  %v4693_v15 = vpop.permute.xlu0 %4692  ;;  %v4405_v22 = vadd.f32 %v8417_v44, %v8561_v24 }
 0x4b5   : > { %v4780_v13 = vsel %vm3777_vm8, %v4325_v46, %v4693_v15 }
 0x4b6   : > { %4823 = vst.msk [vmem:[%s8543_s19 + $0x90] sm:$0xff] %vm4804_vm9, %v4780_v13  ;;  %v4695_v6 = vpop.permute.xlu1 %4694 }
 0x4b7   : > { %v4781_v32 = vsel %vm3777_vm8, %v4328_v20, %v4695_v6  ;;  %v4408_v20 = vadd.f32 %v8417_v44, %v8569_v16 }
 0x4b8   : > { %4824 = vst.msk [vmem:[%s8543_s19 + $0x98] sm:$0xff] %vm4804_vm9, %v4781_v32  ;;  %v4705_v30 = vpop.permute.xlu0 %4704 }
 0x4b9   : > { %v4786_v58 = vsel %vm3777_vm8, %v4349_v35, %v4705_v30  ;;  %v4413_v35 = vadd.f32 %v8557_v50, %v8417_v44  ;;  %v9271_v30 = vld [vmem:[#allocation46_spill] sm:$0xff] }
 0x4ba   : > { %4835 = vst.msk [vmem:[%s8543_s19 + $0xf0] sm:$0xff] %vm4804_vm9, %v4786_v58  ;;  %v4707_v12 = vpop.permute.xlu1 %4706 }
 0x4bb   : > { %v4787_v61 = vsel %vm3777_vm8, %v4352_v38, %v4707_v12  ;;  %v4416_v38 = vadd.f32 %v9271_v30, %v8417_v44 }
 0x4bc   : > { %4836 = vst.msk [vmem:[%s8543_s19 + $0xf8] sm:$0xff] %vm4804_vm9, %v4787_v61  ;;  %v4701_v49 = vpop.permute.xlu0 %4700 }
 0x4bd   : > { %v4784_v25 = vsel %vm3777_vm8, %v4341_v37, %v4701_v49 }
 0x4be   : > { %4831 = vst.msk [vmem:[%s8543_s19 + $0xd0] sm:$0xff] %vm4804_vm9, %v4784_v25  ;;  %v4703_v62 = vpop.permute.xlu1 %4702 }
 0x4bf   : > { %v4785_v47 = vsel %vm3777_vm8, %v4344_v23, %v4703_v62 }
 0x4c0   : > { %4832 = vst.msk [vmem:[%s8543_s19 + $0xd8] sm:$0xff] %vm4804_vm9, %v4785_v47  ;;  %v4713_v9 = vpop.permute.xlu0 %4712 }
 0x4c1   : > { %v4790_v54 = vsel %vm3777_vm8, %v4365_v53, %v4713_v9 }
 0x4c2   : > { %4843 = vst.msk [vmem:[%s8543_s19 + $0x130] sm:$0xff] %vm4804_vm9, %v4790_v54  ;;  %v4715_v1 = vpop.permute.xlu1 %4714 }
 0x4c3   : > { %v4791_v48 = vsel %vm3777_vm8, %v4368_v29, %v4715_v1 }
 0x4c4   : > { %4844 = vst.msk [vmem:[%s8543_s19 + $0x138] sm:$0xff] %vm4804_vm9, %v4791_v48  ;;  %v4709_v26 = vpop.permute.xlu0 %4708 }
 0x4c5   : > { %v4788_v56 = vsel %vm3777_vm8, %v4357_v0, %v4709_v26 }
 0x4c6   : > { %4839 = vst.msk [vmem:[%s8543_s19 + $0x110] sm:$0xff] %vm4804_vm9, %v4788_v56  ;;  %v4711_v63 = vpop.permute.xlu1 %4710 }
 0x4c7   : > { %v4789_v5 = vsel %vm3777_vm8, %v4360_v43, %v4711_v63 }
 0x4c8   : > { %4840 = vst.msk [vmem:[%s8543_s19 + $0x118] sm:$0xff] %vm4804_vm9, %v4789_v5  ;;  %v4721_v31 = vpop.permute.xlu0 %4720 }
 0x4c9   : > { %v4794_v42 = vsel %vm3777_vm8, %v4381_v39, %v4721_v31 }
 0x4ca   : > { %4851 = vst.msk [vmem:[%s8543_s19 + $0x170] sm:$0xff] %vm4804_vm9, %v4794_v42  ;;  %v4723_v27 = vpop.permute.xlu1 %4722 }
 0x4cb   : > { %v4795_v59 = vsel %vm3777_vm8, %v4384_v55, %v4723_v27 }
 0x4cc   : > { %4852 = vst.msk [vmem:[%s8543_s19 + $0x178] sm:$0xff] %vm4804_vm9, %v4795_v59  ;;  %v4717_v45 = vpop.permute.xlu0 %4716 }
 0x4cd   : > { %v4792_v28 = vsel %vm3777_vm8, %v4373_v40, %v4717_v45 }
 0x4ce   : > { %4847 = vst.msk [vmem:[%s8543_s19 + $0x150] sm:$0xff] %vm4804_vm9, %v4792_v28  ;;  %v4719_v2 = vpop.permute.xlu1 %4718 }
 0x4cf   : > { %v4793_v19 = vsel %vm3777_vm8, %v4376_v14, %v4719_v2 }
 0x4d0   : > { %4848 = vst.msk [vmem:[%s8543_s19 + $0x158] sm:$0xff] %vm4804_vm9, %v4793_v19  ;;  %v4729_v33 = vpop.permute.xlu0 %4728 }
 0x4d1   : > { %v4798_v52 = vsel %vm3777_vm8, %v4397_v34, %v4729_v33 }
 0x4d2   : > { %4859 = vst.msk [vmem:[%s8543_s19 + $0x1b0] sm:$0xff] %vm4804_vm9, %v4798_v52  ;;  %v4731_v51 = vpop.permute.xlu1 %4730 }
 0x4d3   : > { %v4799_v21 = vsel %vm3777_vm8, %v4400_v11, %v4731_v51 }
 0x4d4   : > { %4860 = vst.msk [vmem:[%s8543_s19 + $0x1b8] sm:$0xff] %vm4804_vm9, %v4799_v21  ;;  %v4725_v60 = vpop.permute.xlu0 %4724 }
 0x4d5   : > { %v4796_v10 = vsel %vm3777_vm8, %v4389_v7, %v4725_v60 }
 0x4d6   : > { %4855 = vst.msk [vmem:[%s8543_s19 + $0x190] sm:$0xff] %vm4804_vm9, %v4796_v10  ;;  %v4727_v3 = vpop.permute.xlu1 %4726 }
 0x4d7   : > { %v4797_v46 = vsel %vm3777_vm8, %v4392_v57, %v4727_v3 }
 0x4d8   : > { %4856 = vst.msk [vmem:[%s8543_s19 + $0x198] sm:$0xff] %vm4804_vm9, %v4797_v46 }
 0x4d9   : > { %v4733_v15 = vpop.permute.xlu0 %4732 }
 0x4da   : > { %v4800_v13 = vsel %vm3777_vm8, %v4405_v22, %v4733_v15 }
 0x4db   : > { %4863 = vst.msk [vmem:[%s8543_s19 + $0x1d0] sm:$0xff] %vm4804_vm9, %v4800_v13  ;;  %v4735_v6 = vpop.permute.xlu1 %4734 }
 0x4dc   : > { %v4801_v32 = vsel %vm3777_vm8, %v4408_v20, %v4735_v6 }
 0x4dd   : > { %4864 = vst.msk [vmem:[%s8543_s19 + $0x1d8] sm:$0xff] %vm4804_vm9, %v4801_v32  ;;  %v4737_v24 = vpop.permute.xlu0 %4736 }
 0x4de   : > { %v4802_v58 = vsel %vm3777_vm8, %v4413_v35, %v4737_v24 }
 0x4df   : > { %4867 = vst.msk [vmem:[%s8543_s19 + $0x1f0] sm:$0xff] %vm4804_vm9, %v4802_v58  ;;  %v4739_v16 = vpop.permute.xlu1 %4738 }
 0x4e0   : > { %v4803_v12 = vsel %vm3777_vm8, %v4416_v38, %v4739_v16 }
 0x4e1   : > { %4868 = vst.msk [vmem:[%s8543_s19 + $0x1f8] sm:$0xff] %vm4804_vm9, %v4803_v12 }
 0x4e2 PF: > { %s18_s27 = sadd.s32 1, %s6154_s27  }
 0x4e3   : > { %p15_p4 = scmp.ge.s32.totalorder %s18_s27, 4  }
 0x4e5   :  { %17 = sbr.rel (!%p15_p4) target bundleno = 1 (0x1), region = 90 }

</bundles_post_ra>
